<compile_context>
chip_gen: v7x
topology: tpu7x:2x2x1
jax: 0.10.0
libtpu: 0.0.40
codegen_flags: <defaults>
</compile_context>

<pallas_src>
import functools

import jax
import jax.numpy as jnp
import numpy as np
from jax import lax
from jax.experimental import pallas as pl
from jax.experimental.pallas import tpu as pltpu


# ----------------------------------------------------------------------------
# Fused Pallas kernel: (hoisted input projection) + LSTM recurrence + attention + fc
# ----------------------------------------------------------------------------
def _lstm_attn_kernel(x_ref, w_ih_ref, w_hh_ref, b_ref, w_fc_ref, b_fc_ref,
                      out_ref, xp_ref, seq_ref, *, T):
    """Fused single-layer LSTM + attention + linear head (everything VMEM-resident).

    x_ref   : (T*B, D)  time-major, batch-flattened input sequence
    w_ih    : (D, 4H)   input->gates weights, gate order (i, f, g, o)
    w_hh    : (H, 4H)   hidden->gates weights
    b       : (1, 4H)   combined bias (b_ih + b_hh)
    w_fc    : (H, C), b_fc : (1, C)
    out_ref : (B, C)    final logits (B = padded batch)
    xp_ref  : (T*B, 4H) scratch: hoisted input projection (+bias)
    seq_ref : (T, B, H) scratch: hidden state of every timestep
    """
    TB, D = x_ref.shape
    B = TB // T
    H = w_hh_ref.shape[0]

    # ---- Hoisted input projection (review #1): ONE (T*B, D)x(D, 4H) MXU call at
    # 8x the per-step sublane occupancy, bias folded in.  Removes one MXU push/pop
    # and one VPU add from every iteration of the serial recurrence.
    x_bf = x_ref[...].astype(jnp.bfloat16)
    w_ih_bf = w_ih_ref[...].astype(jnp.bfloat16)
    xp_ref[...] = (jnp.dot(x_bf, w_ih_bf, preferred_element_type=jnp.float32)
                   + b_ref[...])                                 # (T*B, 4H) f32

    # bf16 operands for the recurrent matmul (review #2); f32 accumulation.
    w_hh_bf = w_hh_ref[...].astype(jnp.bfloat16)

    def step(t, carry):
        h, c = carry                                             # f32 (B, H) each
        row = pl.multiple_of(t * B, B)                           # sublane-aligned start
        gates = (xp_ref[pl.ds(row, B), :]
                 + jnp.dot(h.astype(jnp.bfloat16), w_hh_bf,
                           preferred_element_type=jnp.float32))  # (B, 4H) == one vreg
        # Full-vreg activations (B=8 sublanes x 4H=128 lanes), then static lane slices.
        sig = jax.nn.sigmoid(gates)
        tah = jnp.tanh(gates)
        i = sig[:, 0 * H:1 * H]
        f = sig[:, 1 * H:2 * H]
        g = tah[:, 2 * H:3 * H]
        o = sig[:, 3 * H:4 * H]
        c_new = f * c + i * g                                    # cell state stays f32
        h_new = o * jnp.tanh(c_new)
        seq_ref[t] = h_new                                       # leading-axis store
        return h_new, c_new

    h0 = jnp.zeros((B, H), jnp.float32)
    c0 = jnp.zeros((B, H), jnp.float32)
    h_final, _ = lax.fori_loop(0, T, step, (h0, c0), unroll=True)

    # ---- Attention exactly as written in the PyTorch module (requires T == H):
    #   scores[b,t] = output[b,t,:] . h_final[b,:]
    #   w = softmax_t(scores)
    #   attn[b,i]   = sum_j output[b,i,j] * w[b,j]      (bmm WITHOUT the permute)
    #   .view(-1, H) keeps the result as (B, H) because T == H.
    # TODO(synk): review #3 asked for batched dot_generals; the per-batch contractions
    # here are matvecs (no free rhs dim), so they stay as VPU-mul + XLU lane-reduce in
    # this one-off epilogue; revisit with a proper batched matmul if B/T/H grow.
    seq = seq_ref[...]                                           # (T, B, H)
    scores_tb = jnp.sum(seq * h_final[None, :, :], axis=-1)      # (T, B)
    scores_bt = scores_tb.T                                      # (B, T)
    m = jnp.max(scores_bt, axis=-1, keepdims=True)
    e = jnp.exp(scores_bt - m)
    inv = pl.reciprocal(jnp.sum(e, axis=-1, keepdims=True), approx=True)  # EUP (review #4)
    attn_w = e * inv                                             # (B, T) softmax over time
    attn_tb = jnp.sum(seq * attn_w[None, :, :], axis=-1)         # (T, B)   (uses T == H)
    attn = attn_tb.T                                             # (B, H) == .view(-1, H)

    out_ref[...] = (jnp.dot(attn, w_fc_ref[...],
                            preferred_element_type=jnp.float32) + b_fc_ref[...])


# ----------------------------------------------------------------------------
# Wrapper
# ----------------------------------------------------------------------------
def lstm_attn_forward(x, params):
    """x: (B, T, D) batch-first -> (B, n_classes). One fused pallas_call."""
    B, T, D = x.shape
    H = params["w_hh"].shape[0]
    C = params["w_fc"].shape[1]
    if T != H:
        raise ValueError("LSTM_ATTN's attention (torch.bmm(lstm_output, weights)) "
                         "requires seq_len == hidden_size")

    # Pad batch to a full 8-sublane tile (review #5): per-step gate block and
    # hidden-state stores become full-sublane; padded rows are independent garbage
    # and are sliced off below.
    B_pad = ((B + 7) // 8) * 8
    if B_pad != B:
        x = jnp.concatenate([x, jnp.zeros((B_pad - B, T, D), x.dtype)], axis=0)

    # Time-major, batch-flattened (T*B_pad, D) so the hoisted input projection is a
    # single 2-D MXU matmul inside the kernel (review #1).
    x_tm = jnp.transpose(x, (1, 0, 2)).reshape(T * B_pad, D)

    vmem = lambda: pl.BlockSpec(memory_space=pltpu.MemorySpace.VMEM)
    out = pl.pallas_call(
        functools.partial(_lstm_attn_kernel, T=T),
        out_shape=jax.ShapeDtypeStruct((B_pad, C), jnp.float32),
        in_specs=[vmem() for _ in range(6)],
        out_specs=vmem(),
        scratch_shapes=[
            pltpu.VMEM((T * B_pad, 4 * H), jnp.float32),  # hoisted input projection
            pltpu.VMEM((T, B_pad, H), jnp.float32),       # per-timestep hidden states
        ],
        # Resident footprint ~0.2 MiB: far below the default scoped-VMEM limit on
        # v5e/v6e/v7x, so no vmem_limit_bytes needed.  No grid -> one TensorCore.
        # TODO(synk): at larger B add a leading batch grid axis with
        # dimension_semantics=("parallel",) so v7x's 2 TCs split the batch, and
        # BlockSpec-pipeline x / seq once the resident footprint grows.
    )(x_tm, params["w_ih"], params["w_hh"], params["b"],
      params["w_fc"], params["b_fc"])
    return out[:B]


# ----------------------------------------------------------------------------
# Deterministic parameter init (mirrors nn.LSTM / nn.Linear uniform init)
# ----------------------------------------------------------------------------
def init_params(key, input_size, hidden, n_classes):
    k = 1.0 / np.sqrt(hidden)
    k1, k2, k3, k4, k5, k6 = jax.random.split(key, 6)
    w_ih = jax.random.uniform(k1, (input_size, 4 * hidden), jnp.float32, -k, k)
    w_hh = jax.random.uniform(k2, (hidden, 4 * hidden), jnp.float32, -k, k)
    b_ih = jax.random.uniform(k3, (4 * hidden,), jnp.float32, -k, k)
    b_hh = jax.random.uniform(k4, (4 * hidden,), jnp.float32, -k, k)
    w_fc = jax.random.uniform(k5, (hidden, n_classes), jnp.float32, -k, k)
    b_fc = jax.random.uniform(k6, (1, n_classes), jnp.float32, -k, k)
    return {"w_ih": w_ih, "w_hh": w_hh, "b": (b_ih + b_hh).reshape(1, -1),
            "w_fc": w_fc, "b_fc": b_fc}


# ----------------------------------------------------------------------------
# Pure-JAX f32 reference (as-written PyTorch semantics) for correctness check
# ----------------------------------------------------------------------------
def ref_forward(x, params):
    B, T, _ = x.shape
    H = params["w_hh"].shape[0]
    w_ih, w_hh, b = params["w_ih"], params["w_hh"], params["b"]
    h = jnp.zeros((B, H), jnp.float32)
    c = jnp.zeros((B, H), jnp.float32)
    outs = []
    for t in range(T):
        gates = x[:, t, :] @ w_ih + h @ w_hh + b
        i = jax.nn.sigmoid(gates[:, 0 * H:1 * H])
        f = jax.nn.sigmoid(gates[:, 1 * H:2 * H])
        g = jnp.tanh(gates[:, 2 * H:3 * H])
        o = jax.nn.sigmoid(gates[:, 3 * H:4 * H])
        c = f * c + i * g
        h = o * jnp.tanh(c)
        outs.append(h)
    output = jnp.stack(outs, axis=1)                     # (B, T, H)
    scores = jnp.einsum('bth,bh->bt', output, h)         # bmm(output, h_T.unsqueeze(2))
    w = jax.nn.softmax(scores, axis=1)                   # softmax over time
    attn = jnp.einsum('bij,bj->bi', output, w)           # bmm(output, w) -- needs T == H
    return attn @ params["w_fc"] + params["b_fc"]        # .view(-1, H) is identity here


# ----------------------------------------------------------------------------
if __name__ == "__main__":
    # Small shapes implied by the module; the as-written attention bmm forces T == H.
    B = 2
    HIDDEN = 32
    T = 32                      # must equal HIDDEN
    D = 16                      # input_feature_size
    N_CLASSES = 4

    key = jax.random.PRNGKey(0)
    k_params, k_x = jax.random.split(key)
    params = init_params(k_params, D, HIDDEN, N_CLASSES)
    x = jax.random.normal(k_x, (B, T, D), jnp.float32)

    fwd = jax.jit(functools.partial(lstm_attn_forward, params=params))
    out = fwd(x)
    jax.block_until_ready(out)
    assert out.shape == (B, N_CLASSES)

    # Tolerance loosened vs f32 reference: the kernel feeds bf16 operands to the MXU
    # across the 32-step recurrence (per the perf review) and uses an approximate
    # reciprocal for the softmax normalization.
    ref = ref_forward(x, params)
    np.testing.assert_allclose(np.asarray(out), np.asarray(ref),
                               rtol=5e-2, atol=5e-2)

    print("KERNEL_OK")
</pallas_src>

<mosaic_0001>
module attributes {stable_mosaic.version = 11 : i64} {
  func.func @_lstm_attn_kernel(%arg0: memref<256x16xf32, #tpu.memory_space<vmem>>, %arg1: memref<16x128xf32, #tpu.memory_space<vmem>>, %arg2: memref<32x128xf32, #tpu.memory_space<vmem>>, %arg3: memref<1x128xf32, #tpu.memory_space<vmem>>, %arg4: memref<32x4xf32, #tpu.memory_space<vmem>>, %arg5: memref<1x4xf32, #tpu.memory_space<vmem>>, %arg6: memref<8x4xf32, #tpu.memory_space<vmem>>, %arg7: memref<256x128xf32, #tpu.memory_space<vmem>>, %arg8: memref<32x8x32xf32, #tpu.memory_space<vmem>>) attributes {dimension_semantics = [], scalar_prefetch = 0 : i64, scratch_operands = 2 : i64, tpu.core_type = #tpu.core_type<tc>} {
    %c0 = arith.constant 0 : index
    %c0_0 = arith.constant 0 : index
    %0 = vector.load %arg0[%c0, %c0_0] : memref<256x16xf32, #tpu.memory_space<vmem>>, vector<256x16xf32>
    %1 = arith.truncf %0 : vector<256x16xf32> to vector<256x16xbf16>
    %c0_1 = arith.constant 0 : index
    %c0_2 = arith.constant 0 : index
    %2 = vector.load %arg1[%c0_1, %c0_2] : memref<16x128xf32, #tpu.memory_space<vmem>>, vector<16x128xf32>
    %3 = arith.truncf %2 : vector<16x128xf32> to vector<16x128xbf16>
    %cst = arith.constant dense<0.000000e+00> : vector<256x128xf32>
    %4 = tpu.matmul %1, %3, %cst {dimension_numbers = #tpu.dot_dimension_numbers<[1], [0], [0], [1], [0, 0, 1, 1], [], []>} : vector<256x16xbf16>, vector<16x128xbf16>, vector<256x128xf32> -> vector<256x128xf32>
    %c0_3 = arith.constant 0 : index
    %c0_4 = arith.constant 0 : index
    %5 = vector.load %arg3[%c0_3, %c0_4] : memref<1x128xf32, #tpu.memory_space<vmem>>, vector<1x128xf32>
    %6 = vector.broadcast %5 : vector<1x128xf32> to vector<256x128xf32>
    %7 = arith.addf %4, %6 : vector<256x128xf32>
    %c0_5 = arith.constant 0 : index
    %c0_6 = arith.constant 0 : index
    %8 = vector.load %arg7[%c0_5, %c0_6] : memref<256x128xf32, #tpu.memory_space<vmem>>, vector<256x128xf32>
    tpu.vector_store %arg7[%c0_5, %c0_6], %7 {strides = array<i32>} : memref<256x128xf32, #tpu.memory_space<vmem>>, vector<256x128xf32>,
    %c0_7 = arith.constant 0 : index
    %c0_8 = arith.constant 0 : index
    %9 = vector.load %arg2[%c0_7, %c0_8] : memref<32x128xf32, #tpu.memory_space<vmem>>, vector<32x128xf32>
    %10 = arith.truncf %9 : vector<32x128xf32> to vector<32x128xbf16>
    %cst_9 = arith.constant 0.000000e+00 : f32
    %11 = vector.broadcast %cst_9 : f32 to vector<8x32xf32>
    %cst_10 = arith.constant 0.000000e+00 : f32
    %12 = vector.broadcast %cst_10 : f32 to vector<8x32xf32>
    %c0_i32 = arith.constant 0 : i32
    %c8_i32 = arith.constant 8 : i32
    %13 = arith.muli %c0_i32, %c8_i32 : i32
    %14 = tpu.assume_multiple %13, 8 : i32
    %15 = arith.index_cast %14 : i32 to index
    %c0_11 = arith.constant 0 : index
    %16 = vector.load %arg7[%15, %c0_11] : memref<256x128xf32, #tpu.memory_space<vmem>>, vector<8x128xf32>
    %17 = arith.truncf %11 : vector<8x32xf32> to vector<8x32xbf16>
    %cst_12 = arith.constant dense<0.000000e+00> : vector<8x128xf32>
    %18 = tpu.matmul %17, %10, %cst_12 {dimension_numbers = #tpu.dot_dimension_numbers<[1], [0], [0], [1], [0, 0, 1, 1], [], []>} : vector<8x32xbf16>, vector<32x128xbf16>, vector<8x128xf32> -> vector<8x128xf32>
    %19 = arith.addf %16, %18 : vector<8x128xf32>
    %20 = arith.negf %19 : vector<8x128xf32>
    %21 = math.exp %20 : vector<8x128xf32>
    %cst_13 = arith.constant 1.000000e+00 : f32
    %22 = vector.broadcast %cst_13 : f32 to vector<8x128xf32>
    %23 = arith.addf %22, %21 : vector<8x128xf32>
    %24 = arith.divf %22, %23 : vector<8x128xf32>
    %25 = math.tanh %19 : vector<8x128xf32>
    %26 = vector.extract_strided_slice %24 {offsets = [0, 0], sizes = [8, 32], strides = [1, 1]} : vector<8x128xf32> to vector<8x32xf32>
    %27 = vector.extract_strided_slice %24 {offsets = [0, 32], sizes = [8, 32], strides = [1, 1]} : vector<8x128xf32> to vector<8x32xf32>
    %28 = vector.extract_strided_slice %25 {offsets = [0, 64], sizes = [8, 32], strides = [1, 1]} : vector<8x128xf32> to vector<8x32xf32>
    %29 = vector.extract_strided_slice %24 {offsets = [0, 96], sizes = [8, 32], strides = [1, 1]} : vector<8x128xf32> to vector<8x32xf32>
    %30 = arith.mulf %27, %12 : vector<8x32xf32>
    %31 = arith.mulf %26, %28 : vector<8x32xf32>
    %32 = arith.addf %30, %31 : vector<8x32xf32>
    %33 = math.tanh %32 : vector<8x32xf32>
    %34 = arith.mulf %29, %33 : vector<8x32xf32>
    %35 = arith.index_cast %c0_i32 : i32 to index
    %c0_14 = arith.constant 0 : index
    %c0_15 = arith.constant 0 : index
    %36 = vector.load %arg8[%35, %c0_14, %c0_15] : memref<32x8x32xf32, #tpu.memory_space<vmem>>, vector<1x8x32xf32>
    %37 = vector.shape_cast %36 : vector<1x8x32xf32> to vector<8x32xf32>
    %38 = vector.shape_cast %34 : vector<8x32xf32> to vector<1x8x32xf32>
    tpu.vector_store %arg8[%35, %c0_14, %c0_15], %38 {strides = array<i32>} : memref<32x8x32xf32, #tpu.memory_space<vmem>>, vector<1x8x32xf32>,
    %c1_i32 = arith.constant 1 : i32
    %c8_i32_16 = arith.constant 8 : i32
    %39 = arith.muli %c1_i32, %c8_i32_16 : i32
    %40 = tpu.assume_multiple %39, 8 : i32
    %41 = arith.index_cast %40 : i32 to index
    %c0_17 = arith.constant 0 : index
    %42 = vector.load %arg7[%41, %c0_17] : memref<256x128xf32, #tpu.memory_space<vmem>>, vector<8x128xf32>
    %43 = arith.truncf %34 : vector<8x32xf32> to vector<8x32xbf16>
    %cst_18 = arith.constant dense<0.000000e+00> : vector<8x128xf32>
    %44 = tpu.matmul %43, %10, %cst_18 {dimension_numbers = #tpu.dot_dimension_numbers<[1], [0], [0], [1], [0, 0, 1, 1], [], []>} : vector<8x32xbf16>, vector<32x128xbf16>, vector<8x128xf32> -> vector<8x128xf32>
    %45 = arith.addf %42, %44 : vector<8x128xf32>
    %46 = arith.negf %45 : vector<8x128xf32>
    %47 = math.exp %46 : vector<8x128xf32>
    %cst_19 = arith.constant 1.000000e+00 : f32
    %48 = vector.broadcast %cst_19 : f32 to vector<8x128xf32>
    %49 = arith.addf %48, %47 : vector<8x128xf32>
    %50 = arith.divf %48, %49 : vector<8x128xf32>
    %51 = math.tanh %45 : vector<8x128xf32>
    %52 = vector.extract_strided_slice %50 {offsets = [0, 0], sizes = [8, 32], strides = [1, 1]} : vector<8x128xf32> to vector<8x32xf32>
    %53 = vector.extract_strided_slice %50 {offsets = [0, 32], sizes = [8, 32], strides = [1, 1]} : vector<8x128xf32> to vector<8x32xf32>
    %54 = vector.extract_strided_slice %51 {offsets = [0, 64], sizes = [8, 32], strides = [1, 1]} : vector<8x128xf32> to vector<8x32xf32>
    %55 = vector.extract_strided_slice %50 {offsets = [0, 96], sizes = [8, 32], strides = [1, 1]} : vector<8x128xf32> to vector<8x32xf32>
    %56 = arith.mulf %53, %32 : vector<8x32xf32>
    %57 = arith.mulf %52, %54 : vector<8x32xf32>
    %58 = arith.addf %56, %57 : vector<8x32xf32>
    %59 = math.tanh %58 : vector<8x32xf32>
    %60 = arith.mulf %55, %59 : vector<8x32xf32>
    %61 = arith.index_cast %c1_i32 : i32 to index
    %c0_20 = arith.constant 0 : index
    %c0_21 = arith.constant 0 : index
    %62 = vector.load %arg8[%61, %c0_20, %c0_21] : memref<32x8x32xf32, #tpu.memory_space<vmem>>, vector<1x8x32xf32>
    %63 = vector.shape_cast %62 : vector<1x8x32xf32> to vector<8x32xf32>
    %64 = vector.shape_cast %60 : vector<8x32xf32> to vector<1x8x32xf32>
    tpu.vector_store %arg8[%61, %c0_20, %c0_21], %64 {strides = array<i32>} : memref<32x8x32xf32, #tpu.memory_space<vmem>>, vector<1x8x32xf32>,
    %c2_i32 = arith.constant 2 : i32
    %c8_i32_22 = arith.constant 8 : i32
    %65 = arith.muli %c2_i32, %c8_i32_22 : i32
    %66 = tpu.assume_multiple %65, 8 : i32
    %67 = arith.index_cast %66 : i32 to index
    %c0_23 = arith.constant 0 : index
    %68 = vector.load %arg7[%67, %c0_23] : memref<256x128xf32, #tpu.memory_space<vmem>>, vector<8x128xf32>
    %69 = arith.truncf %60 : vector<8x32xf32> to vector<8x32xbf16>
    %cst_24 = arith.constant dense<0.000000e+00> : vector<8x128xf32>
    %70 = tpu.matmul %69, %10, %cst_24 {dimension_numbers = #tpu.dot_dimension_numbers<[1], [0], [0], [1], [0, 0, 1, 1], [], []>} : vector<8x32xbf16>, vector<32x128xbf16>, vector<8x128xf32> -> vector<8x128xf32>
    %71 = arith.addf %68, %70 : vector<8x128xf32>
    %72 = arith.negf %71 : vector<8x128xf32>
    %73 = math.exp %72 : vector<8x128xf32>
    %cst_25 = arith.constant 1.000000e+00 : f32
    %74 = vector.broadcast %cst_25 : f32 to vector<8x128xf32>
    %75 = arith.addf %74, %73 : vector<8x128xf32>
    %76 = arith.divf %74, %75 : vector<8x128xf32>
    %77 = math.tanh %71 : vector<8x128xf32>
    %78 = vector.extract_strided_slice %76 {offsets = [0, 0], sizes = [8, 32], strides = [1, 1]} : vector<8x128xf32> to vector<8x32xf32>
    %79 = vector.extract_strided_slice %76 {offsets = [0, 32], sizes = [8, 32], strides = [1, 1]} : vector<8x128xf32> to vector<8x32xf32>
    %80 = vector.extract_strided_slice %77 {offsets = [0, 64], sizes = [8, 32], strides = [1, 1]} : vector<8x128xf32> to vector<8x32xf32>
    %81 = vector.extract_strided_slice %76 {offsets = [0, 96], sizes = [8, 32], strides = [1, 1]} : vector<8x128xf32> to vector<8x32xf32>
    %82 = arith.mulf %79, %58 : vector<8x32xf32>
    %83 = arith.mulf %78, %80 : vector<8x32xf32>
    %84 = arith.addf %82, %83 : vector<8x32xf32>
    %85 = math.tanh %84 : vector<8x32xf32>
    %86 = arith.mulf %81, %85 : vector<8x32xf32>
    %87 = arith.index_cast %c2_i32 : i32 to index
    %c0_26 = arith.constant 0 : index
    %c0_27 = arith.constant 0 : index
    %88 = vector.load %arg8[%87, %c0_26, %c0_27] : memref<32x8x32xf32, #tpu.memory_space<vmem>>, vector<1x8x32xf32>
    %89 = vector.shape_cast %88 : vector<1x8x32xf32> to vector<8x32xf32>
    %90 = vector.shape_cast %86 : vector<8x32xf32> to vector<1x8x32xf32>
    tpu.vector_store %arg8[%87, %c0_26, %c0_27], %90 {strides = array<i32>} : memref<32x8x32xf32, #tpu.memory_space<vmem>>, vector<1x8x32xf32>,
    %c3_i32 = arith.constant 3 : i32
    %c8_i32_28 = arith.constant 8 : i32
    %91 = arith.muli %c3_i32, %c8_i32_28 : i32
    %92 = tpu.assume_multiple %91, 8 : i32
    %93 = arith.index_cast %92 : i32 to index
    %c0_29 = arith.constant 0 : index
    %94 = vector.load %arg7[%93, %c0_29] : memref<256x128xf32, #tpu.memory_space<vmem>>, vector<8x128xf32>
    %95 = arith.truncf %86 : vector<8x32xf32> to vector<8x32xbf16>
    %cst_30 = arith.constant dense<0.000000e+00> : vector<8x128xf32>
    %96 = tpu.matmul %95, %10, %cst_30 {dimension_numbers = #tpu.dot_dimension_numbers<[1], [0], [0], [1], [0, 0, 1, 1], [], []>} : vector<8x32xbf16>, vector<32x128xbf16>, vector<8x128xf32> -> vector<8x128xf32>
    %97 = arith.addf %94, %96 : vector<8x128xf32>
    %98 = arith.negf %97 : vector<8x128xf32>
    %99 = math.exp %98 : vector<8x128xf32>
    %cst_31 = arith.constant 1.000000e+00 : f32
    %100 = vector.broadcast %cst_31 : f32 to vector<8x128xf32>
    %101 = arith.addf %100, %99 : vector<8x128xf32>
    %102 = arith.divf %100, %101 : vector<8x128xf32>
    %103 = math.tanh %97 : vector<8x128xf32>
    %104 = vector.extract_strided_slice %102 {offsets = [0, 0], sizes = [8, 32], strides = [1, 1]} : vector<8x128xf32> to vector<8x32xf32>
    %105 = vector.extract_strided_slice %102 {offsets = [0, 32], sizes = [8, 32], strides = [1, 1]} : vector<8x128xf32> to vector<8x32xf32>
    %106 = vector.extract_strided_slice %103 {offsets = [0, 64], sizes = [8, 32], strides = [1, 1]} : vector<8x128xf32> to vector<8x32xf32>
    %107 = vector.extract_strided_slice %102 {offsets = [0, 96], sizes = [8, 32], strides = [1, 1]} : vector<8x128xf32> to vector<8x32xf32>
    %108 = arith.mulf %105, %84 : vector<8x32xf32>
    %109 = arith.mulf %104, %106 : vector<8x32xf32>
    %110 = arith.addf %108, %109 : vector<8x32xf32>
    %111 = math.tanh %110 : vector<8x32xf32>
    %112 = arith.mulf %107, %111 : vector<8x32xf32>
    %113 = arith.index_cast %c3_i32 : i32 to index
    %c0_32 = arith.constant 0 : index
    %c0_33 = arith.constant 0 : index
    %114 = vector.load %arg8[%113, %c0_32, %c0_33] : memref<32x8x32xf32, #tpu.memory_space<vmem>>, vector<1x8x32xf32>
    %115 = vector.shape_cast %114 : vector<1x8x32xf32> to vector<8x32xf32>
    %116 = vector.shape_cast %112 : vector<8x32xf32> to vector<1x8x32xf32>
    tpu.vector_store %arg8[%113, %c0_32, %c0_33], %116 {strides = array<i32>} : memref<32x8x32xf32, #tpu.memory_space<vmem>>, vector<1x8x32xf32>,
    %c4_i32 = arith.constant 4 : i32
    %c8_i32_34 = arith.constant 8 : i32
    %117 = arith.muli %c4_i32, %c8_i32_34 : i32
    %118 = tpu.assume_multiple %117, 8 : i32
    %119 = arith.index_cast %118 : i32 to index
    %c0_35 = arith.constant 0 : index
    %120 = vector.load %arg7[%119, %c0_35] : memref<256x128xf32, #tpu.memory_space<vmem>>, vector<8x128xf32>
    %121 = arith.truncf %112 : vector<8x32xf32> to vector<8x32xbf16>
    %cst_36 = arith.constant dense<0.000000e+00> : vector<8x128xf32>
    %122 = tpu.matmul %121, %10, %cst_36 {dimension_numbers = #tpu.dot_dimension_numbers<[1], [0], [0], [1], [0, 0, 1, 1], [], []>} : vector<8x32xbf16>, vector<32x128xbf16>, vector<8x128xf32> -> vector<8x128xf32>
    %123 = arith.addf %120, %122 : vector<8x128xf32>
    %124 = arith.negf %123 : vector<8x128xf32>
    %125 = math.exp %124 : vector<8x128xf32>
    %cst_37 = arith.constant 1.000000e+00 : f32
    %126 = vector.broadcast %cst_37 : f32 to vector<8x128xf32>
    %127 = arith.addf %126, %125 : vector<8x128xf32>
    %128 = arith.divf %126, %127 : vector<8x128xf32>
    %129 = math.tanh %123 : vector<8x128xf32>
    %130 = vector.extract_strided_slice %128 {offsets = [0, 0], sizes = [8, 32], strides = [1, 1]} : vector<8x128xf32> to vector<8x32xf32>
    %131 = vector.extract_strided_slice %128 {offsets = [0, 32], sizes = [8, 32], strides = [1, 1]} : vector<8x128xf32> to vector<8x32xf32>
    %132 = vector.extract_strided_slice %129 {offsets = [0, 64], sizes = [8, 32], strides = [1, 1]} : vector<8x128xf32> to vector<8x32xf32>
    %133 = vector.extract_strided_slice %128 {offsets = [0, 96], sizes = [8, 32], strides = [1, 1]} : vector<8x128xf32> to vector<8x32xf32>
    %134 = arith.mulf %131, %110 : vector<8x32xf32>
    %135 = arith.mulf %130, %132 : vector<8x32xf32>
    %136 = arith.addf %134, %135 : vector<8x32xf32>
    %137 = math.tanh %136 : vector<8x32xf32>
    %138 = arith.mulf %133, %137 : vector<8x32xf32>
    %139 = arith.index_cast %c4_i32 : i32 to index
    %c0_38 = arith.constant 0 : index
    %c0_39 = arith.constant 0 : index
    %140 = vector.load %arg8[%139, %c0_38, %c0_39] : memref<32x8x32xf32, #tpu.memory_space<vmem>>, vector<1x8x32xf32>
    %141 = vector.shape_cast %140 : vector<1x8x32xf32> to vector<8x32xf32>
    %142 = vector.shape_cast %138 : vector<8x32xf32> to vector<1x8x32xf32>
    tpu.vector_store %arg8[%139, %c0_38, %c0_39], %142 {strides = array<i32>} : memref<32x8x32xf32, #tpu.memory_space<vmem>>, vector<1x8x32xf32>,
    %c5_i32 = arith.constant 5 : i32
    %c8_i32_40 = arith.constant 8 : i32
    %143 = arith.muli %c5_i32, %c8_i32_40 : i32
    %144 = tpu.assume_multiple %143, 8 : i32
    %145 = arith.index_cast %144 : i32 to index
    %c0_41 = arith.constant 0 : index
    %146 = vector.load %arg7[%145, %c0_41] : memref<256x128xf32, #tpu.memory_space<vmem>>, vector<8x128xf32>
    %147 = arith.truncf %138 : vector<8x32xf32> to vector<8x32xbf16>
    %cst_42 = arith.constant dense<0.000000e+00> : vector<8x128xf32>
    %148 = tpu.matmul %147, %10, %cst_42 {dimension_numbers = #tpu.dot_dimension_numbers<[1], [0], [0], [1], [0, 0, 1, 1], [], []>} : vector<8x32xbf16>, vector<32x128xbf16>, vector<8x128xf32> -> vector<8x128xf32>
    %149 = arith.addf %146, %148 : vector<8x128xf32>
    %150 = arith.negf %149 : vector<8x128xf32>
    %151 = math.exp %150 : vector<8x128xf32>
    %cst_43 = arith.constant 1.000000e+00 : f32
    %152 = vector.broadcast %cst_43 : f32 to vector<8x128xf32>
    %153 = arith.addf %152, %151 : vector<8x128xf32>
    %154 = arith.divf %152, %153 : vector<8x128xf32>
    %155 = math.tanh %149 : vector<8x128xf32>
    %156 = vector.extract_strided_slice %154 {offsets = [0, 0], sizes = [8, 32], strides = [1, 1]} : vector<8x128xf32> to vector<8x32xf32>
    %157 = vector.extract_strided_slice %154 {offsets = [0, 32], sizes = [8, 32], strides = [1, 1]} : vector<8x128xf32> to vector<8x32xf32>
    %158 = vector.extract_strided_slice %155 {offsets = [0, 64], sizes = [8, 32], strides = [1, 1]} : vector<8x128xf32> to vector<8x32xf32>
    %159 = vector.extract_strided_slice %154 {offsets = [0, 96], sizes = [8, 32], strides = [1, 1]} : vector<8x128xf32> to vector<8x32xf32>
    %160 = arith.mulf %157, %136 : vector<8x32xf32>
    %161 = arith.mulf %156, %158 : vector<8x32xf32>
    %162 = arith.addf %160, %161 : vector<8x32xf32>
    %163 = math.tanh %162 : vector<8x32xf32>
    %164 = arith.mulf %159, %163 : vector<8x32xf32>
    %165 = arith.index_cast %c5_i32 : i32 to index
    %c0_44 = arith.constant 0 : index
    %c0_45 = arith.constant 0 : index
    %166 = vector.load %arg8[%165, %c0_44, %c0_45] : memref<32x8x32xf32, #tpu.memory_space<vmem>>, vector<1x8x32xf32>
    %167 = vector.shape_cast %166 : vector<1x8x32xf32> to vector<8x32xf32>
    %168 = vector.shape_cast %164 : vector<8x32xf32> to vector<1x8x32xf32>
    tpu.vector_store %arg8[%165, %c0_44, %c0_45], %168 {strides = array<i32>} : memref<32x8x32xf32, #tpu.memory_space<vmem>>, vector<1x8x32xf32>,
    %c6_i32 = arith.constant 6 : i32
    %c8_i32_46 = arith.constant 8 : i32
    %169 = arith.muli %c6_i32, %c8_i32_46 : i32
    %170 = tpu.assume_multiple %169, 8 : i32
    %171 = arith.index_cast %170 : i32 to index
    %c0_47 = arith.constant 0 : index
    %172 = vector.load %arg7[%171, %c0_47] : memref<256x128xf32, #tpu.memory_space<vmem>>, vector<8x128xf32>
    %173 = arith.truncf %164 : vector<8x32xf32> to vector<8x32xbf16>
    %cst_48 = arith.constant dense<0.000000e+00> : vector<8x128xf32>
    %174 = tpu.matmul %173, %10, %cst_48 {dimension_numbers = #tpu.dot_dimension_numbers<[1], [0], [0], [1], [0, 0, 1, 1], [], []>} : vector<8x32xbf16>, vector<32x128xbf16>, vector<8x128xf32> -> vector<8x128xf32>
    %175 = arith.addf %172, %174 : vector<8x128xf32>
    %176 = arith.negf %175 : vector<8x128xf32>
    %177 = math.exp %176 : vector<8x128xf32>
    %cst_49 = arith.constant 1.000000e+00 : f32
    %178 = vector.broadcast %cst_49 : f32 to vector<8x128xf32>
    %179 = arith.addf %178, %177 : vector<8x128xf32>
    %180 = arith.divf %178, %179 : vector<8x128xf32>
    %181 = math.tanh %175 : vector<8x128xf32>
    %182 = vector.extract_strided_slice %180 {offsets = [0, 0], sizes = [8, 32], strides = [1, 1]} : vector<8x128xf32> to vector<8x32xf32>
    %183 = vector.extract_strided_slice %180 {offsets = [0, 32], sizes = [8, 32], strides = [1, 1]} : vector<8x128xf32> to vector<8x32xf32>
    %184 = vector.extract_strided_slice %181 {offsets = [0, 64], sizes = [8, 32], strides = [1, 1]} : vector<8x128xf32> to vector<8x32xf32>
    %185 = vector.extract_strided_slice %180 {offsets = [0, 96], sizes = [8, 32], strides = [1, 1]} : vector<8x128xf32> to vector<8x32xf32>
    %186 = arith.mulf %183, %162 : vector<8x32xf32>
    %187 = arith.mulf %182, %184 : vector<8x32xf32>
    %188 = arith.addf %186, %187 : vector<8x32xf32>
    %189 = math.tanh %188 : vector<8x32xf32>
    %190 = arith.mulf %185, %189 : vector<8x32xf32>
    %191 = arith.index_cast %c6_i32 : i32 to index
    %c0_50 = arith.constant 0 : index
    %c0_51 = arith.constant 0 : index
    %192 = vector.load %arg8[%191, %c0_50, %c0_51] : memref<32x8x32xf32, #tpu.memory_space<vmem>>, vector<1x8x32xf32>
    %193 = vector.shape_cast %192 : vector<1x8x32xf32> to vector<8x32xf32>
    %194 = vector.shape_cast %190 : vector<8x32xf32> to vector<1x8x32xf32>
    tpu.vector_store %arg8[%191, %c0_50, %c0_51], %194 {strides = array<i32>} : memref<32x8x32xf32, #tpu.memory_space<vmem>>, vector<1x8x32xf32>,
    %c7_i32 = arith.constant 7 : i32
    %c8_i32_52 = arith.constant 8 : i32
    %195 = arith.muli %c7_i32, %c8_i32_52 : i32
    %196 = tpu.assume_multiple %195, 8 : i32
    %197 = arith.index_cast %196 : i32 to index
    %c0_53 = arith.constant 0 : index
    %198 = vector.load %arg7[%197, %c0_53] : memref<256x128xf32, #tpu.memory_space<vmem>>, vector<8x128xf32>
    %199 = arith.truncf %190 : vector<8x32xf32> to vector<8x32xbf16>
    %cst_54 = arith.constant dense<0.000000e+00> : vector<8x128xf32>
    %200 = tpu.matmul %199, %10, %cst_54 {dimension_numbers = #tpu.dot_dimension_numbers<[1], [0], [0], [1], [0, 0, 1, 1], [], []>} : vector<8x32xbf16>, vector<32x128xbf16>, vector<8x128xf32> -> vector<8x128xf32>
    %201 = arith.addf %198, %200 : vector<8x128xf32>
    %202 = arith.negf %201 : vector<8x128xf32>
    %203 = math.exp %202 : vector<8x128xf32>
    %cst_55 = arith.constant 1.000000e+00 : f32
    %204 = vector.broadcast %cst_55 : f32 to vector<8x128xf32>
    %205 = arith.addf %204, %203 : vector<8x128xf32>
    %206 = arith.divf %204, %205 : vector<8x128xf32>
    %207 = math.tanh %201 : vector<8x128xf32>
    %208 = vector.extract_strided_slice %206 {offsets = [0, 0], sizes = [8, 32], strides = [1, 1]} : vector<8x128xf32> to vector<8x32xf32>
    %209 = vector.extract_strided_slice %206 {offsets = [0, 32], sizes = [8, 32], strides = [1, 1]} : vector<8x128xf32> to vector<8x32xf32>
    %210 = vector.extract_strided_slice %207 {offsets = [0, 64], sizes = [8, 32], strides = [1, 1]} : vector<8x128xf32> to vector<8x32xf32>
    %211 = vector.extract_strided_slice %206 {offsets = [0, 96], sizes = [8, 32], strides = [1, 1]} : vector<8x128xf32> to vector<8x32xf32>
    %212 = arith.mulf %209, %188 : vector<8x32xf32>
    %213 = arith.mulf %208, %210 : vector<8x32xf32>
    %214 = arith.addf %212, %213 : vector<8x32xf32>
    %215 = math.tanh %214 : vector<8x32xf32>
    %216 = arith.mulf %211, %215 : vector<8x32xf32>
    %217 = arith.index_cast %c7_i32 : i32 to index
    %c0_56 = arith.constant 0 : index
    %c0_57 = arith.constant 0 : index
    %218 = vector.load %arg8[%217, %c0_56, %c0_57] : memref<32x8x32xf32, #tpu.memory_space<vmem>>, vector<1x8x32xf32>
    %219 = vector.shape_cast %218 : vector<1x8x32xf32> to vector<8x32xf32>
    %220 = vector.shape_cast %216 : vector<8x32xf32> to vector<1x8x32xf32>
    tpu.vector_store %arg8[%217, %c0_56, %c0_57], %220 {strides = array<i32>} : memref<32x8x32xf32, #tpu.memory_space<vmem>>, vector<1x8x32xf32>,
    %c8_i32_58 = arith.constant 8 : i32
    %c8_i32_59 = arith.constant 8 : i32
    %221 = arith.muli %c8_i32_58, %c8_i32_59 : i32
    %222 = tpu.assume_multiple %221, 8 : i32
    %223 = arith.index_cast %222 : i32 to index
    %c0_60 = arith.constant 0 : index
    %224 = vector.load %arg7[%223, %c0_60] : memref<256x128xf32, #tpu.memory_space<vmem>>, vector<8x128xf32>
    %225 = arith.truncf %216 : vector<8x32xf32> to vector<8x32xbf16>
    %cst_61 = arith.constant dense<0.000000e+00> : vector<8x128xf32>
    %226 = tpu.matmul %225, %10, %cst_61 {dimension_numbers = #tpu.dot_dimension_numbers<[1], [0], [0], [1], [0, 0, 1, 1], [], []>} : vector<8x32xbf16>, vector<32x128xbf16>, vector<8x128xf32> -> vector<8x128xf32>
    %227 = arith.addf %224, %226 : vector<8x128xf32>
    %228 = arith.negf %227 : vector<8x128xf32>
    %229 = math.exp %228 : vector<8x128xf32>
    %cst_62 = arith.constant 1.000000e+00 : f32
    %230 = vector.broadcast %cst_62 : f32 to vector<8x128xf32>
    %231 = arith.addf %230, %229 : vector<8x128xf32>
    %232 = arith.divf %230, %231 : vector<8x128xf32>
    %233 = math.tanh %227 : vector<8x128xf32>
    %234 = vector.extract_strided_slice %232 {offsets = [0, 0], sizes = [8, 32], strides = [1, 1]} : vector<8x128xf32> to vector<8x32xf32>
    %235 = vector.extract_strided_slice %232 {offsets = [0, 32], sizes = [8, 32], strides = [1, 1]} : vector<8x128xf32> to vector<8x32xf32>
    %236 = vector.extract_strided_slice %233 {offsets = [0, 64], sizes = [8, 32], strides = [1, 1]} : vector<8x128xf32> to vector<8x32xf32>
    %237 = vector.extract_strided_slice %232 {offsets = [0, 96], sizes = [8, 32], strides = [1, 1]} : vector<8x128xf32> to vector<8x32xf32>
    %238 = arith.mulf %235, %214 : vector<8x32xf32>
    %239 = arith.mulf %234, %236 : vector<8x32xf32>
    %240 = arith.addf %238, %239 : vector<8x32xf32>
    %241 = math.tanh %240 : vector<8x32xf32>
    %242 = arith.mulf %237, %241 : vector<8x32xf32>
    %243 = arith.index_cast %c8_i32_58 : i32 to index
    %c0_63 = arith.constant 0 : index
    %c0_64 = arith.constant 0 : index
    %244 = vector.load %arg8[%243, %c0_63, %c0_64] : memref<32x8x32xf32, #tpu.memory_space<vmem>>, vector<1x8x32xf32>
    %245 = vector.shape_cast %244 : vector<1x8x32xf32> to vector<8x32xf32>
    %246 = vector.shape_cast %242 : vector<8x32xf32> to vector<1x8x32xf32>
    tpu.vector_store %arg8[%243, %c0_63, %c0_64], %246 {strides = array<i32>} : memref<32x8x32xf32, #tpu.memory_space<vmem>>, vector<1x8x32xf32>,
    %c9_i32 = arith.constant 9 : i32
    %c8_i32_65 = arith.constant 8 : i32
    %247 = arith.muli %c9_i32, %c8_i32_65 : i32
    %248 = tpu.assume_multiple %247, 8 : i32
    %249 = arith.index_cast %248 : i32 to index
    %c0_66 = arith.constant 0 : index
    %250 = vector.load %arg7[%249, %c0_66] : memref<256x128xf32, #tpu.memory_space<vmem>>, vector<8x128xf32>
    %251 = arith.truncf %242 : vector<8x32xf32> to vector<8x32xbf16>
    %cst_67 = arith.constant dense<0.000000e+00> : vector<8x128xf32>
    %252 = tpu.matmul %251, %10, %cst_67 {dimension_numbers = #tpu.dot_dimension_numbers<[1], [0], [0], [1], [0, 0, 1, 1], [], []>} : vector<8x32xbf16>, vector<32x128xbf16>, vector<8x128xf32> -> vector<8x128xf32>
    %253 = arith.addf %250, %252 : vector<8x128xf32>
    %254 = arith.negf %253 : vector<8x128xf32>
    %255 = math.exp %254 : vector<8x128xf32>
    %cst_68 = arith.constant 1.000000e+00 : f32
    %256 = vector.broadcast %cst_68 : f32 to vector<8x128xf32>
    %257 = arith.addf %256, %255 : vector<8x128xf32>
    %258 = arith.divf %256, %257 : vector<8x128xf32>
    %259 = math.tanh %253 : vector<8x128xf32>
    %260 = vector.extract_strided_slice %258 {offsets = [0, 0], sizes = [8, 32], strides = [1, 1]} : vector<8x128xf32> to vector<8x32xf32>
    %261 = vector.extract_strided_slice %258 {offsets = [0, 32], sizes = [8, 32], strides = [1, 1]} : vector<8x128xf32> to vector<8x32xf32>
    %262 = vector.extract_strided_slice %259 {offsets = [0, 64], sizes = [8, 32], strides = [1, 1]} : vector<8x128xf32> to vector<8x32xf32>
    %263 = vector.extract_strided_slice %258 {offsets = [0, 96], sizes = [8, 32], strides = [1, 1]} : vector<8x128xf32> to vector<8x32xf32>
    %264 = arith.mulf %261, %240 : vector<8x32xf32>
    %265 = arith.mulf %260, %262 : vector<8x32xf32>
    %266 = arith.addf %264, %265 : vector<8x32xf32>
    %267 = math.tanh %266 : vector<8x32xf32>
    %268 = arith.mulf %263, %267 : vector<8x32xf32>
    %269 = arith.index_cast %c9_i32 : i32 to index
    %c0_69 = arith.constant 0 : index
    %c0_70 = arith.constant 0 : index
    %270 = vector.load %arg8[%269, %c0_69, %c0_70] : memref<32x8x32xf32, #tpu.memory_space<vmem>>, vector<1x8x32xf32>
    %271 = vector.shape_cast %270 : vector<1x8x32xf32> to vector<8x32xf32>
    %272 = vector.shape_cast %268 : vector<8x32xf32> to vector<1x8x32xf32>
    tpu.vector_store %arg8[%269, %c0_69, %c0_70], %272 {strides = array<i32>} : memref<32x8x32xf32, #tpu.memory_space<vmem>>, vector<1x8x32xf32>,
    %c10_i32 = arith.constant 10 : i32
    %c8_i32_71 = arith.constant 8 : i32
    %273 = arith.muli %c10_i32, %c8_i32_71 : i32
    %274 = tpu.assume_multiple %273, 8 : i32
    %275 = arith.index_cast %274 : i32 to index
    %c0_72 = arith.constant 0 : index
    %276 = vector.load %arg7[%275, %c0_72] : memref<256x128xf32, #tpu.memory_space<vmem>>, vector<8x128xf32>
    %277 = arith.truncf %268 : vector<8x32xf32> to vector<8x32xbf16>
    %cst_73 = arith.constant dense<0.000000e+00> : vector<8x128xf32>
    %278 = tpu.matmul %277, %10, %cst_73 {dimension_numbers = #tpu.dot_dimension_numbers<[1], [0], [0], [1], [0, 0, 1, 1], [], []>} : vector<8x32xbf16>, vector<32x128xbf16>, vector<8x128xf32> -> vector<8x128xf32>
    %279 = arith.addf %276, %278 : vector<8x128xf32>
    %280 = arith.negf %279 : vector<8x128xf32>
    %281 = math.exp %280 : vector<8x128xf32>
    %cst_74 = arith.constant 1.000000e+00 : f32
    %282 = vector.broadcast %cst_74 : f32 to vector<8x128xf32>
    %283 = arith.addf %282, %281 : vector<8x128xf32>
    %284 = arith.divf %282, %283 : vector<8x128xf32>
    %285 = math.tanh %279 : vector<8x128xf32>
    %286 = vector.extract_strided_slice %284 {offsets = [0, 0], sizes = [8, 32], strides = [1, 1]} : vector<8x128xf32> to vector<8x32xf32>
    %287 = vector.extract_strided_slice %284 {offsets = [0, 32], sizes = [8, 32], strides = [1, 1]} : vector<8x128xf32> to vector<8x32xf32>
    %288 = vector.extract_strided_slice %285 {offsets = [0, 64], sizes = [8, 32], strides = [1, 1]} : vector<8x128xf32> to vector<8x32xf32>
    %289 = vector.extract_strided_slice %284 {offsets = [0, 96], sizes = [8, 32], strides = [1, 1]} : vector<8x128xf32> to vector<8x32xf32>
    %290 = arith.mulf %287, %266 : vector<8x32xf32>
    %291 = arith.mulf %286, %288 : vector<8x32xf32>
    %292 = arith.addf %290, %291 : vector<8x32xf32>
    %293 = math.tanh %292 : vector<8x32xf32>
    %294 = arith.mulf %289, %293 : vector<8x32xf32>
    %295 = arith.index_cast %c10_i32 : i32 to index
    %c0_75 = arith.constant 0 : index
    %c0_76 = arith.constant 0 : index
    %296 = vector.load %arg8[%295, %c0_75, %c0_76] : memref<32x8x32xf32, #tpu.memory_space<vmem>>, vector<1x8x32xf32>
    %297 = vector.shape_cast %296 : vector<1x8x32xf32> to vector<8x32xf32>
    %298 = vector.shape_cast %294 : vector<8x32xf32> to vector<1x8x32xf32>
    tpu.vector_store %arg8[%295, %c0_75, %c0_76], %298 {strides = array<i32>} : memref<32x8x32xf32, #tpu.memory_space<vmem>>, vector<1x8x32xf32>,
    %c11_i32 = arith.constant 11 : i32
    %c8_i32_77 = arith.constant 8 : i32
    %299 = arith.muli %c11_i32, %c8_i32_77 : i32
    %300 = tpu.assume_multiple %299, 8 : i32
    %301 = arith.index_cast %300 : i32 to index
    %c0_78 = arith.constant 0 : index
    %302 = vector.load %arg7[%301, %c0_78] : memref<256x128xf32, #tpu.memory_space<vmem>>, vector<8x128xf32>
    %303 = arith.truncf %294 : vector<8x32xf32> to vector<8x32xbf16>
    %cst_79 = arith.constant dense<0.000000e+00> : vector<8x128xf32>
    %304 = tpu.matmul %303, %10, %cst_79 {dimension_numbers = #tpu.dot_dimension_numbers<[1], [0], [0], [1], [0, 0, 1, 1], [], []>} : vector<8x32xbf16>, vector<32x128xbf16>, vector<8x128xf32> -> vector<8x128xf32>
    %305 = arith.addf %302, %304 : vector<8x128xf32>
    %306 = arith.negf %305 : vector<8x128xf32>
    %307 = math.exp %306 : vector<8x128xf32>
    %cst_80 = arith.constant 1.000000e+00 : f32
    %308 = vector.broadcast %cst_80 : f32 to vector<8x128xf32>
    %309 = arith.addf %308, %307 : vector<8x128xf32>
    %310 = arith.divf %308, %309 : vector<8x128xf32>
    %311 = math.tanh %305 : vector<8x128xf32>
    %312 = vector.extract_strided_slice %310 {offsets = [0, 0], sizes = [8, 32], strides = [1, 1]} : vector<8x128xf32> to vector<8x32xf32>
    %313 = vector.extract_strided_slice %310 {offsets = [0, 32], sizes = [8, 32], strides = [1, 1]} : vector<8x128xf32> to vector<8x32xf32>
    %314 = vector.extract_strided_slice %311 {offsets = [0, 64], sizes = [8, 32], strides = [1, 1]} : vector<8x128xf32> to vector<8x32xf32>
    %315 = vector.extract_strided_slice %310 {offsets = [0, 96], sizes = [8, 32], strides = [1, 1]} : vector<8x128xf32> to vector<8x32xf32>
    %316 = arith.mulf %313, %292 : vector<8x32xf32>
    %317 = arith.mulf %312, %314 : vector<8x32xf32>
    %318 = arith.addf %316, %317 : vector<8x32xf32>
    %319 = math.tanh %318 : vector<8x32xf32>
    %320 = arith.mulf %315, %319 : vector<8x32xf32>
    %321 = arith.index_cast %c11_i32 : i32 to index
    %c0_81 = arith.constant 0 : index
    %c0_82 = arith.constant 0 : index
    %322 = vector.load %arg8[%321, %c0_81, %c0_82] : memref<32x8x32xf32, #tpu.memory_space<vmem>>, vector<1x8x32xf32>
    %323 = vector.shape_cast %322 : vector<1x8x32xf32> to vector<8x32xf32>
    %324 = vector.shape_cast %320 : vector<8x32xf32> to vector<1x8x32xf32>
    tpu.vector_store %arg8[%321, %c0_81, %c0_82], %324 {strides = array<i32>} : memref<32x8x32xf32, #tpu.memory_space<vmem>>, vector<1x8x32xf32>,
    %c12_i32 = arith.constant 12 : i32
    %c8_i32_83 = arith.constant 8 : i32
    %325 = arith.muli %c12_i32, %c8_i32_83 : i32
    %326 = tpu.assume_multiple %325, 8 : i32
    %327 = arith.index_cast %326 : i32 to index
    %c0_84 = arith.constant 0 : index
    %328 = vector.load %arg7[%327, %c0_84] : memref<256x128xf32, #tpu.memory_space<vmem>>, vector<8x128xf32>
    %329 = arith.truncf %320 : vector<8x32xf32> to vector<8x32xbf16>
    %cst_85 = arith.constant dense<0.000000e+00> : vector<8x128xf32>
    %330 = tpu.matmul %329, %10, %cst_85 {dimension_numbers = #tpu.dot_dimension_numbers<[1], [0], [0], [1], [0, 0, 1, 1], [], []>} : vector<8x32xbf16>, vector<32x128xbf16>, vector<8x128xf32> -> vector<8x128xf32>
    %331 = arith.addf %328, %330 : vector<8x128xf32>
    %332 = arith.negf %331 : vector<8x128xf32>
    %333 = math.exp %332 : vector<8x128xf32>
    %cst_86 = arith.constant 1.000000e+00 : f32
    %334 = vector.broadcast %cst_86 : f32 to vector<8x128xf32>
    %335 = arith.addf %334, %333 : vector<8x128xf32>
    %336 = arith.divf %334, %335 : vector<8x128xf32>
    %337 = math.tanh %331 : vector<8x128xf32>
    %338 = vector.extract_strided_slice %336 {offsets = [0, 0], sizes = [8, 32], strides = [1, 1]} : vector<8x128xf32> to vector<8x32xf32>
    %339 = vector.extract_strided_slice %336 {offsets = [0, 32], sizes = [8, 32], strides = [1, 1]} : vector<8x128xf32> to vector<8x32xf32>
    %340 = vector.extract_strided_slice %337 {offsets = [0, 64], sizes = [8, 32], strides = [1, 1]} : vector<8x128xf32> to vector<8x32xf32>
    %341 = vector.extract_strided_slice %336 {offsets = [0, 96], sizes = [8, 32], strides = [1, 1]} : vector<8x128xf32> to vector<8x32xf32>
    %342 = arith.mulf %339, %318 : vector<8x32xf32>
    %343 = arith.mulf %338, %340 : vector<8x32xf32>
    %344 = arith.addf %342, %343 : vector<8x32xf32>
    %345 = math.tanh %344 : vector<8x32xf32>
    %346 = arith.mulf %341, %345 : vector<8x32xf32>
    %347 = arith.index_cast %c12_i32 : i32 to index
    %c0_87 = arith.constant 0 : index
    %c0_88 = arith.constant 0 : index
    %348 = vector.load %arg8[%347, %c0_87, %c0_88] : memref<32x8x32xf32, #tpu.memory_space<vmem>>, vector<1x8x32xf32>
    %349 = vector.shape_cast %348 : vector<1x8x32xf32> to vector<8x32xf32>
    %350 = vector.shape_cast %346 : vector<8x32xf32> to vector<1x8x32xf32>
    tpu.vector_store %arg8[%347, %c0_87, %c0_88], %350 {strides = array<i32>} : memref<32x8x32xf32, #tpu.memory_space<vmem>>, vector<1x8x32xf32>,
    %c13_i32 = arith.constant 13 : i32
    %c8_i32_89 = arith.constant 8 : i32
    %351 = arith.muli %c13_i32, %c8_i32_89 : i32
    %352 = tpu.assume_multiple %351, 8 : i32
    %353 = arith.index_cast %352 : i32 to index
    %c0_90 = arith.constant 0 : index
    %354 = vector.load %arg7[%353, %c0_90] : memref<256x128xf32, #tpu.memory_space<vmem>>, vector<8x128xf32>
    %355 = arith.truncf %346 : vector<8x32xf32> to vector<8x32xbf16>
    %cst_91 = arith.constant dense<0.000000e+00> : vector<8x128xf32>
    %356 = tpu.matmul %355, %10, %cst_91 {dimension_numbers = #tpu.dot_dimension_numbers<[1], [0], [0], [1], [0, 0, 1, 1], [], []>} : vector<8x32xbf16>, vector<32x128xbf16>, vector<8x128xf32> -> vector<8x128xf32>
    %357 = arith.addf %354, %356 : vector<8x128xf32>
    %358 = arith.negf %357 : vector<8x128xf32>
    %359 = math.exp %358 : vector<8x128xf32>
    %cst_92 = arith.constant 1.000000e+00 : f32
    %360 = vector.broadcast %cst_92 : f32 to vector<8x128xf32>
    %361 = arith.addf %360, %359 : vector<8x128xf32>
    %362 = arith.divf %360, %361 : vector<8x128xf32>
    %363 = math.tanh %357 : vector<8x128xf32>
    %364 = vector.extract_strided_slice %362 {offsets = [0, 0], sizes = [8, 32], strides = [1, 1]} : vector<8x128xf32> to vector<8x32xf32>
    %365 = vector.extract_strided_slice %362 {offsets = [0, 32], sizes = [8, 32], strides = [1, 1]} : vector<8x128xf32> to vector<8x32xf32>
    %366 = vector.extract_strided_slice %363 {offsets = [0, 64], sizes = [8, 32], strides = [1, 1]} : vector<8x128xf32> to vector<8x32xf32>
    %367 = vector.extract_strided_slice %362 {offsets = [0, 96], sizes = [8, 32], strides = [1, 1]} : vector<8x128xf32> to vector<8x32xf32>
    %368 = arith.mulf %365, %344 : vector<8x32xf32>
    %369 = arith.mulf %364, %366 : vector<8x32xf32>
    %370 = arith.addf %368, %369 : vector<8x32xf32>
    %371 = math.tanh %370 : vector<8x32xf32>
    %372 = arith.mulf %367, %371 : vector<8x32xf32>
    %373 = arith.index_cast %c13_i32 : i32 to index
    %c0_93 = arith.constant 0 : index
    %c0_94 = arith.constant 0 : index
    %374 = vector.load %arg8[%373, %c0_93, %c0_94] : memref<32x8x32xf32, #tpu.memory_space<vmem>>, vector<1x8x32xf32>
    %375 = vector.shape_cast %374 : vector<1x8x32xf32> to vector<8x32xf32>
    %376 = vector.shape_cast %372 : vector<8x32xf32> to vector<1x8x32xf32>
    tpu.vector_store %arg8[%373, %c0_93, %c0_94], %376 {strides = array<i32>} : memref<32x8x32xf32, #tpu.memory_space<vmem>>, vector<1x8x32xf32>,
    %c14_i32 = arith.constant 14 : i32
    %c8_i32_95 = arith.constant 8 : i32
    %377 = arith.muli %c14_i32, %c8_i32_95 : i32
    %378 = tpu.assume_multiple %377, 8 : i32
    %379 = arith.index_cast %378 : i32 to index
    %c0_96 = arith.constant 0 : index
    %380 = vector.load %arg7[%379, %c0_96] : memref<256x128xf32, #tpu.memory_space<vmem>>, vector<8x128xf32>
    %381 = arith.truncf %372 : vector<8x32xf32> to vector<8x32xbf16>
    %cst_97 = arith.constant dense<0.000000e+00> : vector<8x128xf32>
    %382 = tpu.matmul %381, %10, %cst_97 {dimension_numbers = #tpu.dot_dimension_numbers<[1], [0], [0], [1], [0, 0, 1, 1], [], []>} : vector<8x32xbf16>, vector<32x128xbf16>, vector<8x128xf32> -> vector<8x128xf32>
    %383 = arith.addf %380, %382 : vector<8x128xf32>
    %384 = arith.negf %383 : vector<8x128xf32>
    %385 = math.exp %384 : vector<8x128xf32>
    %cst_98 = arith.constant 1.000000e+00 : f32
    %386 = vector.broadcast %cst_98 : f32 to vector<8x128xf32>
    %387 = arith.addf %386, %385 : vector<8x128xf32>
    %388 = arith.divf %386, %387 : vector<8x128xf32>
    %389 = math.tanh %383 : vector<8x128xf32>
    %390 = vector.extract_strided_slice %388 {offsets = [0, 0], sizes = [8, 32], strides = [1, 1]} : vector<8x128xf32> to vector<8x32xf32>
    %391 = vector.extract_strided_slice %388 {offsets = [0, 32], sizes = [8, 32], strides = [1, 1]} : vector<8x128xf32> to vector<8x32xf32>
    %392 = vector.extract_strided_slice %389 {offsets = [0, 64], sizes = [8, 32], strides = [1, 1]} : vector<8x128xf32> to vector<8x32xf32>
    %393 = vector.extract_strided_slice %388 {offsets = [0, 96], sizes = [8, 32], strides = [1, 1]} : vector<8x128xf32> to vector<8x32xf32>
    %394 = arith.mulf %391, %370 : vector<8x32xf32>
    %395 = arith.mulf %390, %392 : vector<8x32xf32>
    %396 = arith.addf %394, %395 : vector<8x32xf32>
    %397 = math.tanh %396 : vector<8x32xf32>
    %398 = arith.mulf %393, %397 : vector<8x32xf32>
    %399 = arith.index_cast %c14_i32 : i32 to index
    %c0_99 = arith.constant 0 : index
    %c0_100 = arith.constant 0 : index
    %400 = vector.load %arg8[%399, %c0_99, %c0_100] : memref<32x8x32xf32, #tpu.memory_space<vmem>>, vector<1x8x32xf32>
    %401 = vector.shape_cast %400 : vector<1x8x32xf32> to vector<8x32xf32>
    %402 = vector.shape_cast %398 : vector<8x32xf32> to vector<1x8x32xf32>
    tpu.vector_store %arg8[%399, %c0_99, %c0_100], %402 {strides = array<i32>} : memref<32x8x32xf32, #tpu.memory_space<vmem>>, vector<1x8x32xf32>,
    %c15_i32 = arith.constant 15 : i32
    %c8_i32_101 = arith.constant 8 : i32
    %403 = arith.muli %c15_i32, %c8_i32_101 : i32
    %404 = tpu.assume_multiple %403, 8 : i32
    %405 = arith.index_cast %404 : i32 to index
    %c0_102 = arith.constant 0 : index
    %406 = vector.load %arg7[%405, %c0_102] : memref<256x128xf32, #tpu.memory_space<vmem>>, vector<8x128xf32>
    %407 = arith.truncf %398 : vector<8x32xf32> to vector<8x32xbf16>
    %cst_103 = arith.constant dense<0.000000e+00> : vector<8x128xf32>
    %408 = tpu.matmul %407, %10, %cst_103 {dimension_numbers = #tpu.dot_dimension_numbers<[1], [0], [0], [1], [0, 0, 1, 1], [], []>} : vector<8x32xbf16>, vector<32x128xbf16>, vector<8x128xf32> -> vector<8x128xf32>
    %409 = arith.addf %406, %408 : vector<8x128xf32>
    %410 = arith.negf %409 : vector<8x128xf32>
    %411 = math.exp %410 : vector<8x128xf32>
    %cst_104 = arith.constant 1.000000e+00 : f32
    %412 = vector.broadcast %cst_104 : f32 to vector<8x128xf32>
    %413 = arith.addf %412, %411 : vector<8x128xf32>
    %414 = arith.divf %412, %413 : vector<8x128xf32>
    %415 = math.tanh %409 : vector<8x128xf32>
    %416 = vector.extract_strided_slice %414 {offsets = [0, 0], sizes = [8, 32], strides = [1, 1]} : vector<8x128xf32> to vector<8x32xf32>
    %417 = vector.extract_strided_slice %414 {offsets = [0, 32], sizes = [8, 32], strides = [1, 1]} : vector<8x128xf32> to vector<8x32xf32>
    %418 = vector.extract_strided_slice %415 {offsets = [0, 64], sizes = [8, 32], strides = [1, 1]} : vector<8x128xf32> to vector<8x32xf32>
    %419 = vector.extract_strided_slice %414 {offsets = [0, 96], sizes = [8, 32], strides = [1, 1]} : vector<8x128xf32> to vector<8x32xf32>
    %420 = arith.mulf %417, %396 : vector<8x32xf32>
    %421 = arith.mulf %416, %418 : vector<8x32xf32>
    %422 = arith.addf %420, %421 : vector<8x32xf32>
    %423 = math.tanh %422 : vector<8x32xf32>
    %424 = arith.mulf %419, %423 : vector<8x32xf32>
    %425 = arith.index_cast %c15_i32 : i32 to index
    %c0_105 = arith.constant 0 : index
    %c0_106 = arith.constant 0 : index
    %426 = vector.load %arg8[%425, %c0_105, %c0_106] : memref<32x8x32xf32, #tpu.memory_space<vmem>>, vector<1x8x32xf32>
    %427 = vector.shape_cast %426 : vector<1x8x32xf32> to vector<8x32xf32>
    %428 = vector.shape_cast %424 : vector<8x32xf32> to vector<1x8x32xf32>
    tpu.vector_store %arg8[%425, %c0_105, %c0_106], %428 {strides = array<i32>} : memref<32x8x32xf32, #tpu.memory_space<vmem>>, vector<1x8x32xf32>,
    %c16_i32 = arith.constant 16 : i32
    %c8_i32_107 = arith.constant 8 : i32
    %429 = arith.muli %c16_i32, %c8_i32_107 : i32
    %430 = tpu.assume_multiple %429, 8 : i32
    %431 = arith.index_cast %430 : i32 to index
    %c0_108 = arith.constant 0 : index
    %432 = vector.load %arg7[%431, %c0_108] : memref<256x128xf32, #tpu.memory_space<vmem>>, vector<8x128xf32>
    %433 = arith.truncf %424 : vector<8x32xf32> to vector<8x32xbf16>
    %cst_109 = arith.constant dense<0.000000e+00> : vector<8x128xf32>
    %434 = tpu.matmul %433, %10, %cst_109 {dimension_numbers = #tpu.dot_dimension_numbers<[1], [0], [0], [1], [0, 0, 1, 1], [], []>} : vector<8x32xbf16>, vector<32x128xbf16>, vector<8x128xf32> -> vector<8x128xf32>
    %435 = arith.addf %432, %434 : vector<8x128xf32>
    %436 = arith.negf %435 : vector<8x128xf32>
    %437 = math.exp %436 : vector<8x128xf32>
    %cst_110 = arith.constant 1.000000e+00 : f32
    %438 = vector.broadcast %cst_110 : f32 to vector<8x128xf32>
    %439 = arith.addf %438, %437 : vector<8x128xf32>
    %440 = arith.divf %438, %439 : vector<8x128xf32>
    %441 = math.tanh %435 : vector<8x128xf32>
    %442 = vector.extract_strided_slice %440 {offsets = [0, 0], sizes = [8, 32], strides = [1, 1]} : vector<8x128xf32> to vector<8x32xf32>
    %443 = vector.extract_strided_slice %440 {offsets = [0, 32], sizes = [8, 32], strides = [1, 1]} : vector<8x128xf32> to vector<8x32xf32>
    %444 = vector.extract_strided_slice %441 {offsets = [0, 64], sizes = [8, 32], strides = [1, 1]} : vector<8x128xf32> to vector<8x32xf32>
    %445 = vector.extract_strided_slice %440 {offsets = [0, 96], sizes = [8, 32], strides = [1, 1]} : vector<8x128xf32> to vector<8x32xf32>
    %446 = arith.mulf %443, %422 : vector<8x32xf32>
    %447 = arith.mulf %442, %444 : vector<8x32xf32>
    %448 = arith.addf %446, %447 : vector<8x32xf32>
    %449 = math.tanh %448 : vector<8x32xf32>
    %450 = arith.mulf %445, %449 : vector<8x32xf32>
    %451 = arith.index_cast %c16_i32 : i32 to index
    %c0_111 = arith.constant 0 : index
    %c0_112 = arith.constant 0 : index
    %452 = vector.load %arg8[%451, %c0_111, %c0_112] : memref<32x8x32xf32, #tpu.memory_space<vmem>>, vector<1x8x32xf32>
    %453 = vector.shape_cast %452 : vector<1x8x32xf32> to vector<8x32xf32>
    %454 = vector.shape_cast %450 : vector<8x32xf32> to vector<1x8x32xf32>
    tpu.vector_store %arg8[%451, %c0_111, %c0_112], %454 {strides = array<i32>} : memref<32x8x32xf32, #tpu.memory_space<vmem>>, vector<1x8x32xf32>,
    %c17_i32 = arith.constant 17 : i32
    %c8_i32_113 = arith.constant 8 : i32
    %455 = arith.muli %c17_i32, %c8_i32_113 : i32
    %456 = tpu.assume_multiple %455, 8 : i32
    %457 = arith.index_cast %456 : i32 to index
    %c0_114 = arith.constant 0 : index
    %458 = vector.load %arg7[%457, %c0_114] : memref<256x128xf32, #tpu.memory_space<vmem>>, vector<8x128xf32>
    %459 = arith.truncf %450 : vector<8x32xf32> to vector<8x32xbf16>
    %cst_115 = arith.constant dense<0.000000e+00> : vector<8x128xf32>
    %460 = tpu.matmul %459, %10, %cst_115 {dimension_numbers = #tpu.dot_dimension_numbers<[1], [0], [0], [1], [0, 0, 1, 1], [], []>} : vector<8x32xbf16>, vector<32x128xbf16>, vector<8x128xf32> -> vector<8x128xf32>
    %461 = arith.addf %458, %460 : vector<8x128xf32>
    %462 = arith.negf %461 : vector<8x128xf32>
    %463 = math.exp %462 : vector<8x128xf32>
    %cst_116 = arith.constant 1.000000e+00 : f32
    %464 = vector.broadcast %cst_116 : f32 to vector<8x128xf32>
    %465 = arith.addf %464, %463 : vector<8x128xf32>
    %466 = arith.divf %464, %465 : vector<8x128xf32>
    %467 = math.tanh %461 : vector<8x128xf32>
    %468 = vector.extract_strided_slice %466 {offsets = [0, 0], sizes = [8, 32], strides = [1, 1]} : vector<8x128xf32> to vector<8x32xf32>
    %469 = vector.extract_strided_slice %466 {offsets = [0, 32], sizes = [8, 32], strides = [1, 1]} : vector<8x128xf32> to vector<8x32xf32>
    %470 = vector.extract_strided_slice %467 {offsets = [0, 64], sizes = [8, 32], strides = [1, 1]} : vector<8x128xf32> to vector<8x32xf32>
    %471 = vector.extract_strided_slice %466 {offsets = [0, 96], sizes = [8, 32], strides = [1, 1]} : vector<8x128xf32> to vector<8x32xf32>
    %472 = arith.mulf %469, %448 : vector<8x32xf32>
    %473 = arith.mulf %468, %470 : vector<8x32xf32>
    %474 = arith.addf %472, %473 : vector<8x32xf32>
    %475 = math.tanh %474 : vector<8x32xf32>
    %476 = arith.mulf %471, %475 : vector<8x32xf32>
    %477 = arith.index_cast %c17_i32 : i32 to index
    %c0_117 = arith.constant 0 : index
    %c0_118 = arith.constant 0 : index
    %478 = vector.load %arg8[%477, %c0_117, %c0_118] : memref<32x8x32xf32, #tpu.memory_space<vmem>>, vector<1x8x32xf32>
    %479 = vector.shape_cast %478 : vector<1x8x32xf32> to vector<8x32xf32>
    %480 = vector.shape_cast %476 : vector<8x32xf32> to vector<1x8x32xf32>
    tpu.vector_store %arg8[%477, %c0_117, %c0_118], %480 {strides = array<i32>} : memref<32x8x32xf32, #tpu.memory_space<vmem>>, vector<1x8x32xf32>,
    %c18_i32 = arith.constant 18 : i32
    %c8_i32_119 = arith.constant 8 : i32
    %481 = arith.muli %c18_i32, %c8_i32_119 : i32
    %482 = tpu.assume_multiple %481, 8 : i32
    %483 = arith.index_cast %482 : i32 to index
    %c0_120 = arith.constant 0 : index
    %484 = vector.load %arg7[%483, %c0_120] : memref<256x128xf32, #tpu.memory_space<vmem>>, vector<8x128xf32>
    %485 = arith.truncf %476 : vector<8x32xf32> to vector<8x32xbf16>
    %cst_121 = arith.constant dense<0.000000e+00> : vector<8x128xf32>
    %486 = tpu.matmul %485, %10, %cst_121 {dimension_numbers = #tpu.dot_dimension_numbers<[1], [0], [0], [1], [0, 0, 1, 1], [], []>} : vector<8x32xbf16>, vector<32x128xbf16>, vector<8x128xf32> -> vector<8x128xf32>
    %487 = arith.addf %484, %486 : vector<8x128xf32>
    %488 = arith.negf %487 : vector<8x128xf32>
    %489 = math.exp %488 : vector<8x128xf32>
    %cst_122 = arith.constant 1.000000e+00 : f32
    %490 = vector.broadcast %cst_122 : f32 to vector<8x128xf32>
    %491 = arith.addf %490, %489 : vector<8x128xf32>
    %492 = arith.divf %490, %491 : vector<8x128xf32>
    %493 = math.tanh %487 : vector<8x128xf32>
    %494 = vector.extract_strided_slice %492 {offsets = [0, 0], sizes = [8, 32], strides = [1, 1]} : vector<8x128xf32> to vector<8x32xf32>
    %495 = vector.extract_strided_slice %492 {offsets = [0, 32], sizes = [8, 32], strides = [1, 1]} : vector<8x128xf32> to vector<8x32xf32>
    %496 = vector.extract_strided_slice %493 {offsets = [0, 64], sizes = [8, 32], strides = [1, 1]} : vector<8x128xf32> to vector<8x32xf32>
    %497 = vector.extract_strided_slice %492 {offsets = [0, 96], sizes = [8, 32], strides = [1, 1]} : vector<8x128xf32> to vector<8x32xf32>
    %498 = arith.mulf %495, %474 : vector<8x32xf32>
    %499 = arith.mulf %494, %496 : vector<8x32xf32>
    %500 = arith.addf %498, %499 : vector<8x32xf32>
    %501 = math.tanh %500 : vector<8x32xf32>
    %502 = arith.mulf %497, %501 : vector<8x32xf32>
    %503 = arith.index_cast %c18_i32 : i32 to index
    %c0_123 = arith.constant 0 : index
    %c0_124 = arith.constant 0 : index
    %504 = vector.load %arg8[%503, %c0_123, %c0_124] : memref<32x8x32xf32, #tpu.memory_space<vmem>>, vector<1x8x32xf32>
    %505 = vector.shape_cast %504 : vector<1x8x32xf32> to vector<8x32xf32>
    %506 = vector.shape_cast %502 : vector<8x32xf32> to vector<1x8x32xf32>
    tpu.vector_store %arg8[%503, %c0_123, %c0_124], %506 {strides = array<i32>} : memref<32x8x32xf32, #tpu.memory_space<vmem>>, vector<1x8x32xf32>,
    %c19_i32 = arith.constant 19 : i32
    %c8_i32_125 = arith.constant 8 : i32
    %507 = arith.muli %c19_i32, %c8_i32_125 : i32
    %508 = tpu.assume_multiple %507, 8 : i32
    %509 = arith.index_cast %508 : i32 to index
    %c0_126 = arith.constant 0 : index
    %510 = vector.load %arg7[%509, %c0_126] : memref<256x128xf32, #tpu.memory_space<vmem>>, vector<8x128xf32>
    %511 = arith.truncf %502 : vector<8x32xf32> to vector<8x32xbf16>
    %cst_127 = arith.constant dense<0.000000e+00> : vector<8x128xf32>
    %512 = tpu.matmul %511, %10, %cst_127 {dimension_numbers = #tpu.dot_dimension_numbers<[1], [0], [0], [1], [0, 0, 1, 1], [], []>} : vector<8x32xbf16>, vector<32x128xbf16>, vector<8x128xf32> -> vector<8x128xf32>
    %513 = arith.addf %510, %512 : vector<8x128xf32>
    %514 = arith.negf %513 : vector<8x128xf32>
    %515 = math.exp %514 : vector<8x128xf32>
    %cst_128 = arith.constant 1.000000e+00 : f32
    %516 = vector.broadcast %cst_128 : f32 to vector<8x128xf32>
    %517 = arith.addf %516, %515 : vector<8x128xf32>
    %518 = arith.divf %516, %517 : vector<8x128xf32>
    %519 = math.tanh %513 : vector<8x128xf32>
    %520 = vector.extract_strided_slice %518 {offsets = [0, 0], sizes = [8, 32], strides = [1, 1]} : vector<8x128xf32> to vector<8x32xf32>
    %521 = vector.extract_strided_slice %518 {offsets = [0, 32], sizes = [8, 32], strides = [1, 1]} : vector<8x128xf32> to vector<8x32xf32>
    %522 = vector.extract_strided_slice %519 {offsets = [0, 64], sizes = [8, 32], strides = [1, 1]} : vector<8x128xf32> to vector<8x32xf32>
    %523 = vector.extract_strided_slice %518 {offsets = [0, 96], sizes = [8, 32], strides = [1, 1]} : vector<8x128xf32> to vector<8x32xf32>
    %524 = arith.mulf %521, %500 : vector<8x32xf32>
    %525 = arith.mulf %520, %522 : vector<8x32xf32>
    %526 = arith.addf %524, %525 : vector<8x32xf32>
    %527 = math.tanh %526 : vector<8x32xf32>
    %528 = arith.mulf %523, %527 : vector<8x32xf32>
    %529 = arith.index_cast %c19_i32 : i32 to index
    %c0_129 = arith.constant 0 : index
    %c0_130 = arith.constant 0 : index
    %530 = vector.load %arg8[%529, %c0_129, %c0_130] : memref<32x8x32xf32, #tpu.memory_space<vmem>>, vector<1x8x32xf32>
    %531 = vector.shape_cast %530 : vector<1x8x32xf32> to vector<8x32xf32>
    %532 = vector.shape_cast %528 : vector<8x32xf32> to vector<1x8x32xf32>
    tpu.vector_store %arg8[%529, %c0_129, %c0_130], %532 {strides = array<i32>} : memref<32x8x32xf32, #tpu.memory_space<vmem>>, vector<1x8x32xf32>,
    %c20_i32 = arith.constant 20 : i32
    %c8_i32_131 = arith.constant 8 : i32
    %533 = arith.muli %c20_i32, %c8_i32_131 : i32
    %534 = tpu.assume_multiple %533, 8 : i32
    %535 = arith.index_cast %534 : i32 to index
    %c0_132 = arith.constant 0 : index
    %536 = vector.load %arg7[%535, %c0_132] : memref<256x128xf32, #tpu.memory_space<vmem>>, vector<8x128xf32>
    %537 = arith.truncf %528 : vector<8x32xf32> to vector<8x32xbf16>
    %cst_133 = arith.constant dense<0.000000e+00> : vector<8x128xf32>
    %538 = tpu.matmul %537, %10, %cst_133 {dimension_numbers = #tpu.dot_dimension_numbers<[1], [0], [0], [1], [0, 0, 1, 1], [], []>} : vector<8x32xbf16>, vector<32x128xbf16>, vector<8x128xf32> -> vector<8x128xf32>
    %539 = arith.addf %536, %538 : vector<8x128xf32>
    %540 = arith.negf %539 : vector<8x128xf32>
    %541 = math.exp %540 : vector<8x128xf32>
    %cst_134 = arith.constant 1.000000e+00 : f32
    %542 = vector.broadcast %cst_134 : f32 to vector<8x128xf32>
    %543 = arith.addf %542, %541 : vector<8x128xf32>
    %544 = arith.divf %542, %543 : vector<8x128xf32>
    %545 = math.tanh %539 : vector<8x128xf32>
    %546 = vector.extract_strided_slice %544 {offsets = [0, 0], sizes = [8, 32], strides = [1, 1]} : vector<8x128xf32> to vector<8x32xf32>
    %547 = vector.extract_strided_slice %544 {offsets = [0, 32], sizes = [8, 32], strides = [1, 1]} : vector<8x128xf32> to vector<8x32xf32>
    %548 = vector.extract_strided_slice %545 {offsets = [0, 64], sizes = [8, 32], strides = [1, 1]} : vector<8x128xf32> to vector<8x32xf32>
    %549 = vector.extract_strided_slice %544 {offsets = [0, 96], sizes = [8, 32], strides = [1, 1]} : vector<8x128xf32> to vector<8x32xf32>
    %550 = arith.mulf %547, %526 : vector<8x32xf32>
    %551 = arith.mulf %546, %548 : vector<8x32xf32>
    %552 = arith.addf %550, %551 : vector<8x32xf32>
    %553 = math.tanh %552 : vector<8x32xf32>
    %554 = arith.mulf %549, %553 : vector<8x32xf32>
    %555 = arith.index_cast %c20_i32 : i32 to index
    %c0_135 = arith.constant 0 : index
    %c0_136 = arith.constant 0 : index
    %556 = vector.load %arg8[%555, %c0_135, %c0_136] : memref<32x8x32xf32, #tpu.memory_space<vmem>>, vector<1x8x32xf32>
    %557 = vector.shape_cast %556 : vector<1x8x32xf32> to vector<8x32xf32>
    %558 = vector.shape_cast %554 : vector<8x32xf32> to vector<1x8x32xf32>
    tpu.vector_store %arg8[%555, %c0_135, %c0_136], %558 {strides = array<i32>} : memref<32x8x32xf32, #tpu.memory_space<vmem>>, vector<1x8x32xf32>,
    %c21_i32 = arith.constant 21 : i32
    %c8_i32_137 = arith.constant 8 : i32
    %559 = arith.muli %c21_i32, %c8_i32_137 : i32
    %560 = tpu.assume_multiple %559, 8 : i32
    %561 = arith.index_cast %560 : i32 to index
    %c0_138 = arith.constant 0 : index
    %562 = vector.load %arg7[%561, %c0_138] : memref<256x128xf32, #tpu.memory_space<vmem>>, vector<8x128xf32>
    %563 = arith.truncf %554 : vector<8x32xf32> to vector<8x32xbf16>
    %cst_139 = arith.constant dense<0.000000e+00> : vector<8x128xf32>
    %564 = tpu.matmul %563, %10, %cst_139 {dimension_numbers = #tpu.dot_dimension_numbers<[1], [0], [0], [1], [0, 0, 1, 1], [], []>} : vector<8x32xbf16>, vector<32x128xbf16>, vector<8x128xf32> -> vector<8x128xf32>
    %565 = arith.addf %562, %564 : vector<8x128xf32>
    %566 = arith.negf %565 : vector<8x128xf32>
    %567 = math.exp %566 : vector<8x128xf32>
    %cst_140 = arith.constant 1.000000e+00 : f32
    %568 = vector.broadcast %cst_140 : f32 to vector<8x128xf32>
    %569 = arith.addf %568, %567 : vector<8x128xf32>
    %570 = arith.divf %568, %569 : vector<8x128xf32>
    %571 = math.tanh %565 : vector<8x128xf32>
    %572 = vector.extract_strided_slice %570 {offsets = [0, 0], sizes = [8, 32], strides = [1, 1]} : vector<8x128xf32> to vector<8x32xf32>
    %573 = vector.extract_strided_slice %570 {offsets = [0, 32], sizes = [8, 32], strides = [1, 1]} : vector<8x128xf32> to vector<8x32xf32>
    %574 = vector.extract_strided_slice %571 {offsets = [0, 64], sizes = [8, 32], strides = [1, 1]} : vector<8x128xf32> to vector<8x32xf32>
    %575 = vector.extract_strided_slice %570 {offsets = [0, 96], sizes = [8, 32], strides = [1, 1]} : vector<8x128xf32> to vector<8x32xf32>
    %576 = arith.mulf %573, %552 : vector<8x32xf32>
    %577 = arith.mulf %572, %574 : vector<8x32xf32>
    %578 = arith.addf %576, %577 : vector<8x32xf32>
    %579 = math.tanh %578 : vector<8x32xf32>
    %580 = arith.mulf %575, %579 : vector<8x32xf32>
    %581 = arith.index_cast %c21_i32 : i32 to index
    %c0_141 = arith.constant 0 : index
    %c0_142 = arith.constant 0 : index
    %582 = vector.load %arg8[%581, %c0_141, %c0_142] : memref<32x8x32xf32, #tpu.memory_space<vmem>>, vector<1x8x32xf32>
    %583 = vector.shape_cast %582 : vector<1x8x32xf32> to vector<8x32xf32>
    %584 = vector.shape_cast %580 : vector<8x32xf32> to vector<1x8x32xf32>
    tpu.vector_store %arg8[%581, %c0_141, %c0_142], %584 {strides = array<i32>} : memref<32x8x32xf32, #tpu.memory_space<vmem>>, vector<1x8x32xf32>,
    %c22_i32 = arith.constant 22 : i32
    %c8_i32_143 = arith.constant 8 : i32
    %585 = arith.muli %c22_i32, %c8_i32_143 : i32
    %586 = tpu.assume_multiple %585, 8 : i32
    %587 = arith.index_cast %586 : i32 to index
    %c0_144 = arith.constant 0 : index
    %588 = vector.load %arg7[%587, %c0_144] : memref<256x128xf32, #tpu.memory_space<vmem>>, vector<8x128xf32>
    %589 = arith.truncf %580 : vector<8x32xf32> to vector<8x32xbf16>
    %cst_145 = arith.constant dense<0.000000e+00> : vector<8x128xf32>
    %590 = tpu.matmul %589, %10, %cst_145 {dimension_numbers = #tpu.dot_dimension_numbers<[1], [0], [0], [1], [0, 0, 1, 1], [], []>} : vector<8x32xbf16>, vector<32x128xbf16>, vector<8x128xf32> -> vector<8x128xf32>
    %591 = arith.addf %588, %590 : vector<8x128xf32>
    %592 = arith.negf %591 : vector<8x128xf32>
    %593 = math.exp %592 : vector<8x128xf32>
    %cst_146 = arith.constant 1.000000e+00 : f32
    %594 = vector.broadcast %cst_146 : f32 to vector<8x128xf32>
    %595 = arith.addf %594, %593 : vector<8x128xf32>
    %596 = arith.divf %594, %595 : vector<8x128xf32>
    %597 = math.tanh %591 : vector<8x128xf32>
    %598 = vector.extract_strided_slice %596 {offsets = [0, 0], sizes = [8, 32], strides = [1, 1]} : vector<8x128xf32> to vector<8x32xf32>
    %599 = vector.extract_strided_slice %596 {offsets = [0, 32], sizes = [8, 32], strides = [1, 1]} : vector<8x128xf32> to vector<8x32xf32>
    %600 = vector.extract_strided_slice %597 {offsets = [0, 64], sizes = [8, 32], strides = [1, 1]} : vector<8x128xf32> to vector<8x32xf32>
    %601 = vector.extract_strided_slice %596 {offsets = [0, 96], sizes = [8, 32], strides = [1, 1]} : vector<8x128xf32> to vector<8x32xf32>
    %602 = arith.mulf %599, %578 : vector<8x32xf32>
    %603 = arith.mulf %598, %600 : vector<8x32xf32>
    %604 = arith.addf %602, %603 : vector<8x32xf32>
    %605 = math.tanh %604 : vector<8x32xf32>
    %606 = arith.mulf %601, %605 : vector<8x32xf32>
    %607 = arith.index_cast %c22_i32 : i32 to index
    %c0_147 = arith.constant 0 : index
    %c0_148 = arith.constant 0 : index
    %608 = vector.load %arg8[%607, %c0_147, %c0_148] : memref<32x8x32xf32, #tpu.memory_space<vmem>>, vector<1x8x32xf32>
    %609 = vector.shape_cast %608 : vector<1x8x32xf32> to vector<8x32xf32>
    %610 = vector.shape_cast %606 : vector<8x32xf32> to vector<1x8x32xf32>
    tpu.vector_store %arg8[%607, %c0_147, %c0_148], %610 {strides = array<i32>} : memref<32x8x32xf32, #tpu.memory_space<vmem>>, vector<1x8x32xf32>,
    %c23_i32 = arith.constant 23 : i32
    %c8_i32_149 = arith.constant 8 : i32
    %611 = arith.muli %c23_i32, %c8_i32_149 : i32
    %612 = tpu.assume_multiple %611, 8 : i32
    %613 = arith.index_cast %612 : i32 to index
    %c0_150 = arith.constant 0 : index
    %614 = vector.load %arg7[%613, %c0_150] : memref<256x128xf32, #tpu.memory_space<vmem>>, vector<8x128xf32>
    %615 = arith.truncf %606 : vector<8x32xf32> to vector<8x32xbf16>
    %cst_151 = arith.constant dense<0.000000e+00> : vector<8x128xf32>
    %616 = tpu.matmul %615, %10, %cst_151 {dimension_numbers = #tpu.dot_dimension_numbers<[1], [0], [0], [1], [0, 0, 1, 1], [], []>} : vector<8x32xbf16>, vector<32x128xbf16>, vector<8x128xf32> -> vector<8x128xf32>
    %617 = arith.addf %614, %616 : vector<8x128xf32>
    %618 = arith.negf %617 : vector<8x128xf32>
    %619 = math.exp %618 : vector<8x128xf32>
    %cst_152 = arith.constant 1.000000e+00 : f32
    %620 = vector.broadcast %cst_152 : f32 to vector<8x128xf32>
    %621 = arith.addf %620, %619 : vector<8x128xf32>
    %622 = arith.divf %620, %621 : vector<8x128xf32>
    %623 = math.tanh %617 : vector<8x128xf32>
    %624 = vector.extract_strided_slice %622 {offsets = [0, 0], sizes = [8, 32], strides = [1, 1]} : vector<8x128xf32> to vector<8x32xf32>
    %625 = vector.extract_strided_slice %622 {offsets = [0, 32], sizes = [8, 32], strides = [1, 1]} : vector<8x128xf32> to vector<8x32xf32>
    %626 = vector.extract_strided_slice %623 {offsets = [0, 64], sizes = [8, 32], strides = [1, 1]} : vector<8x128xf32> to vector<8x32xf32>
    %627 = vector.extract_strided_slice %622 {offsets = [0, 96], sizes = [8, 32], strides = [1, 1]} : vector<8x128xf32> to vector<8x32xf32>
    %628 = arith.mulf %625, %604 : vector<8x32xf32>
    %629 = arith.mulf %624, %626 : vector<8x32xf32>
    %630 = arith.addf %628, %629 : vector<8x32xf32>
    %631 = math.tanh %630 : vector<8x32xf32>
    %632 = arith.mulf %627, %631 : vector<8x32xf32>
    %633 = arith.index_cast %c23_i32 : i32 to index
    %c0_153 = arith.constant 0 : index
    %c0_154 = arith.constant 0 : index
    %634 = vector.load %arg8[%633, %c0_153, %c0_154] : memref<32x8x32xf32, #tpu.memory_space<vmem>>, vector<1x8x32xf32>
    %635 = vector.shape_cast %634 : vector<1x8x32xf32> to vector<8x32xf32>
    %636 = vector.shape_cast %632 : vector<8x32xf32> to vector<1x8x32xf32>
    tpu.vector_store %arg8[%633, %c0_153, %c0_154], %636 {strides = array<i32>} : memref<32x8x32xf32, #tpu.memory_space<vmem>>, vector<1x8x32xf32>,
    %c24_i32 = arith.constant 24 : i32
    %c8_i32_155 = arith.constant 8 : i32
    %637 = arith.muli %c24_i32, %c8_i32_155 : i32
    %638 = tpu.assume_multiple %637, 8 : i32
    %639 = arith.index_cast %638 : i32 to index
    %c0_156 = arith.constant 0 : index
    %640 = vector.load %arg7[%639, %c0_156] : memref<256x128xf32, #tpu.memory_space<vmem>>, vector<8x128xf32>
    %641 = arith.truncf %632 : vector<8x32xf32> to vector<8x32xbf16>
    %cst_157 = arith.constant dense<0.000000e+00> : vector<8x128xf32>
    %642 = tpu.matmul %641, %10, %cst_157 {dimension_numbers = #tpu.dot_dimension_numbers<[1], [0], [0], [1], [0, 0, 1, 1], [], []>} : vector<8x32xbf16>, vector<32x128xbf16>, vector<8x128xf32> -> vector<8x128xf32>
    %643 = arith.addf %640, %642 : vector<8x128xf32>
    %644 = arith.negf %643 : vector<8x128xf32>
    %645 = math.exp %644 : vector<8x128xf32>
    %cst_158 = arith.constant 1.000000e+00 : f32
    %646 = vector.broadcast %cst_158 : f32 to vector<8x128xf32>
    %647 = arith.addf %646, %645 : vector<8x128xf32>
    %648 = arith.divf %646, %647 : vector<8x128xf32>
    %649 = math.tanh %643 : vector<8x128xf32>
    %650 = vector.extract_strided_slice %648 {offsets = [0, 0], sizes = [8, 32], strides = [1, 1]} : vector<8x128xf32> to vector<8x32xf32>
    %651 = vector.extract_strided_slice %648 {offsets = [0, 32], sizes = [8, 32], strides = [1, 1]} : vector<8x128xf32> to vector<8x32xf32>
    %652 = vector.extract_strided_slice %649 {offsets = [0, 64], sizes = [8, 32], strides = [1, 1]} : vector<8x128xf32> to vector<8x32xf32>
    %653 = vector.extract_strided_slice %648 {offsets = [0, 96], sizes = [8, 32], strides = [1, 1]} : vector<8x128xf32> to vector<8x32xf32>
    %654 = arith.mulf %651, %630 : vector<8x32xf32>
    %655 = arith.mulf %650, %652 : vector<8x32xf32>
    %656 = arith.addf %654, %655 : vector<8x32xf32>
    %657 = math.tanh %656 : vector<8x32xf32>
    %658 = arith.mulf %653, %657 : vector<8x32xf32>
    %659 = arith.index_cast %c24_i32 : i32 to index
    %c0_159 = arith.constant 0 : index
    %c0_160 = arith.constant 0 : index
    %660 = vector.load %arg8[%659, %c0_159, %c0_160] : memref<32x8x32xf32, #tpu.memory_space<vmem>>, vector<1x8x32xf32>
    %661 = vector.shape_cast %660 : vector<1x8x32xf32> to vector<8x32xf32>
    %662 = vector.shape_cast %658 : vector<8x32xf32> to vector<1x8x32xf32>
    tpu.vector_store %arg8[%659, %c0_159, %c0_160], %662 {strides = array<i32>} : memref<32x8x32xf32, #tpu.memory_space<vmem>>, vector<1x8x32xf32>,
    %c25_i32 = arith.constant 25 : i32
    %c8_i32_161 = arith.constant 8 : i32
    %663 = arith.muli %c25_i32, %c8_i32_161 : i32
    %664 = tpu.assume_multiple %663, 8 : i32
    %665 = arith.index_cast %664 : i32 to index
    %c0_162 = arith.constant 0 : index
    %666 = vector.load %arg7[%665, %c0_162] : memref<256x128xf32, #tpu.memory_space<vmem>>, vector<8x128xf32>
    %667 = arith.truncf %658 : vector<8x32xf32> to vector<8x32xbf16>
    %cst_163 = arith.constant dense<0.000000e+00> : vector<8x128xf32>
    %668 = tpu.matmul %667, %10, %cst_163 {dimension_numbers = #tpu.dot_dimension_numbers<[1], [0], [0], [1], [0, 0, 1, 1], [], []>} : vector<8x32xbf16>, vector<32x128xbf16>, vector<8x128xf32> -> vector<8x128xf32>
    %669 = arith.addf %666, %668 : vector<8x128xf32>
    %670 = arith.negf %669 : vector<8x128xf32>
    %671 = math.exp %670 : vector<8x128xf32>
    %cst_164 = arith.constant 1.000000e+00 : f32
    %672 = vector.broadcast %cst_164 : f32 to vector<8x128xf32>
    %673 = arith.addf %672, %671 : vector<8x128xf32>
    %674 = arith.divf %672, %673 : vector<8x128xf32>
    %675 = math.tanh %669 : vector<8x128xf32>
    %676 = vector.extract_strided_slice %674 {offsets = [0, 0], sizes = [8, 32], strides = [1, 1]} : vector<8x128xf32> to vector<8x32xf32>
    %677 = vector.extract_strided_slice %674 {offsets = [0, 32], sizes = [8, 32], strides = [1, 1]} : vector<8x128xf32> to vector<8x32xf32>
    %678 = vector.extract_strided_slice %675 {offsets = [0, 64], sizes = [8, 32], strides = [1, 1]} : vector<8x128xf32> to vector<8x32xf32>
    %679 = vector.extract_strided_slice %674 {offsets = [0, 96], sizes = [8, 32], strides = [1, 1]} : vector<8x128xf32> to vector<8x32xf32>
    %680 = arith.mulf %677, %656 : vector<8x32xf32>
    %681 = arith.mulf %676, %678 : vector<8x32xf32>
    %682 = arith.addf %680, %681 : vector<8x32xf32>
    %683 = math.tanh %682 : vector<8x32xf32>
    %684 = arith.mulf %679, %683 : vector<8x32xf32>
    %685 = arith.index_cast %c25_i32 : i32 to index
    %c0_165 = arith.constant 0 : index
    %c0_166 = arith.constant 0 : index
    %686 = vector.load %arg8[%685, %c0_165, %c0_166] : memref<32x8x32xf32, #tpu.memory_space<vmem>>, vector<1x8x32xf32>
    %687 = vector.shape_cast %686 : vector<1x8x32xf32> to vector<8x32xf32>
    %688 = vector.shape_cast %684 : vector<8x32xf32> to vector<1x8x32xf32>
    tpu.vector_store %arg8[%685, %c0_165, %c0_166], %688 {strides = array<i32>} : memref<32x8x32xf32, #tpu.memory_space<vmem>>, vector<1x8x32xf32>,
    %c26_i32 = arith.constant 26 : i32
    %c8_i32_167 = arith.constant 8 : i32
    %689 = arith.muli %c26_i32, %c8_i32_167 : i32
    %690 = tpu.assume_multiple %689, 8 : i32
    %691 = arith.index_cast %690 : i32 to index
    %c0_168 = arith.constant 0 : index
    %692 = vector.load %arg7[%691, %c0_168] : memref<256x128xf32, #tpu.memory_space<vmem>>, vector<8x128xf32>
    %693 = arith.truncf %684 : vector<8x32xf32> to vector<8x32xbf16>
    %cst_169 = arith.constant dense<0.000000e+00> : vector<8x128xf32>
    %694 = tpu.matmul %693, %10, %cst_169 {dimension_numbers = #tpu.dot_dimension_numbers<[1], [0], [0], [1], [0, 0, 1, 1], [], []>} : vector<8x32xbf16>, vector<32x128xbf16>, vector<8x128xf32> -> vector<8x128xf32>
    %695 = arith.addf %692, %694 : vector<8x128xf32>
    %696 = arith.negf %695 : vector<8x128xf32>
    %697 = math.exp %696 : vector<8x128xf32>
    %cst_170 = arith.constant 1.000000e+00 : f32
    %698 = vector.broadcast %cst_170 : f32 to vector<8x128xf32>
    %699 = arith.addf %698, %697 : vector<8x128xf32>
    %700 = arith.divf %698, %699 : vector<8x128xf32>
    %701 = math.tanh %695 : vector<8x128xf32>
    %702 = vector.extract_strided_slice %700 {offsets = [0, 0], sizes = [8, 32], strides = [1, 1]} : vector<8x128xf32> to vector<8x32xf32>
    %703 = vector.extract_strided_slice %700 {offsets = [0, 32], sizes = [8, 32], strides = [1, 1]} : vector<8x128xf32> to vector<8x32xf32>
    %704 = vector.extract_strided_slice %701 {offsets = [0, 64], sizes = [8, 32], strides = [1, 1]} : vector<8x128xf32> to vector<8x32xf32>
    %705 = vector.extract_strided_slice %700 {offsets = [0, 96], sizes = [8, 32], strides = [1, 1]} : vector<8x128xf32> to vector<8x32xf32>
    %706 = arith.mulf %703, %682 : vector<8x32xf32>
    %707 = arith.mulf %702, %704 : vector<8x32xf32>
    %708 = arith.addf %706, %707 : vector<8x32xf32>
    %709 = math.tanh %708 : vector<8x32xf32>
    %710 = arith.mulf %705, %709 : vector<8x32xf32>
    %711 = arith.index_cast %c26_i32 : i32 to index
    %c0_171 = arith.constant 0 : index
    %c0_172 = arith.constant 0 : index
    %712 = vector.load %arg8[%711, %c0_171, %c0_172] : memref<32x8x32xf32, #tpu.memory_space<vmem>>, vector<1x8x32xf32>
    %713 = vector.shape_cast %712 : vector<1x8x32xf32> to vector<8x32xf32>
    %714 = vector.shape_cast %710 : vector<8x32xf32> to vector<1x8x32xf32>
    tpu.vector_store %arg8[%711, %c0_171, %c0_172], %714 {strides = array<i32>} : memref<32x8x32xf32, #tpu.memory_space<vmem>>, vector<1x8x32xf32>,
    %c27_i32 = arith.constant 27 : i32
    %c8_i32_173 = arith.constant 8 : i32
    %715 = arith.muli %c27_i32, %c8_i32_173 : i32
    %716 = tpu.assume_multiple %715, 8 : i32
    %717 = arith.index_cast %716 : i32 to index
    %c0_174 = arith.constant 0 : index
    %718 = vector.load %arg7[%717, %c0_174] : memref<256x128xf32, #tpu.memory_space<vmem>>, vector<8x128xf32>
    %719 = arith.truncf %710 : vector<8x32xf32> to vector<8x32xbf16>
    %cst_175 = arith.constant dense<0.000000e+00> : vector<8x128xf32>
    %720 = tpu.matmul %719, %10, %cst_175 {dimension_numbers = #tpu.dot_dimension_numbers<[1], [0], [0], [1], [0, 0, 1, 1], [], []>} : vector<8x32xbf16>, vector<32x128xbf16>, vector<8x128xf32> -> vector<8x128xf32>
    %721 = arith.addf %718, %720 : vector<8x128xf32>
    %722 = arith.negf %721 : vector<8x128xf32>
    %723 = math.exp %722 : vector<8x128xf32>
    %cst_176 = arith.constant 1.000000e+00 : f32
    %724 = vector.broadcast %cst_176 : f32 to vector<8x128xf32>
    %725 = arith.addf %724, %723 : vector<8x128xf32>
    %726 = arith.divf %724, %725 : vector<8x128xf32>
    %727 = math.tanh %721 : vector<8x128xf32>
    %728 = vector.extract_strided_slice %726 {offsets = [0, 0], sizes = [8, 32], strides = [1, 1]} : vector<8x128xf32> to vector<8x32xf32>
    %729 = vector.extract_strided_slice %726 {offsets = [0, 32], sizes = [8, 32], strides = [1, 1]} : vector<8x128xf32> to vector<8x32xf32>
    %730 = vector.extract_strided_slice %727 {offsets = [0, 64], sizes = [8, 32], strides = [1, 1]} : vector<8x128xf32> to vector<8x32xf32>
    %731 = vector.extract_strided_slice %726 {offsets = [0, 96], sizes = [8, 32], strides = [1, 1]} : vector<8x128xf32> to vector<8x32xf32>
    %732 = arith.mulf %729, %708 : vector<8x32xf32>
    %733 = arith.mulf %728, %730 : vector<8x32xf32>
    %734 = arith.addf %732, %733 : vector<8x32xf32>
    %735 = math.tanh %734 : vector<8x32xf32>
    %736 = arith.mulf %731, %735 : vector<8x32xf32>
    %737 = arith.index_cast %c27_i32 : i32 to index
    %c0_177 = arith.constant 0 : index
    %c0_178 = arith.constant 0 : index
    %738 = vector.load %arg8[%737, %c0_177, %c0_178] : memref<32x8x32xf32, #tpu.memory_space<vmem>>, vector<1x8x32xf32>
    %739 = vector.shape_cast %738 : vector<1x8x32xf32> to vector<8x32xf32>
    %740 = vector.shape_cast %736 : vector<8x32xf32> to vector<1x8x32xf32>
    tpu.vector_store %arg8[%737, %c0_177, %c0_178], %740 {strides = array<i32>} : memref<32x8x32xf32, #tpu.memory_space<vmem>>, vector<1x8x32xf32>,
    %c28_i32 = arith.constant 28 : i32
    %c8_i32_179 = arith.constant 8 : i32
    %741 = arith.muli %c28_i32, %c8_i32_179 : i32
    %742 = tpu.assume_multiple %741, 8 : i32
    %743 = arith.index_cast %742 : i32 to index
    %c0_180 = arith.constant 0 : index
    %744 = vector.load %arg7[%743, %c0_180] : memref<256x128xf32, #tpu.memory_space<vmem>>, vector<8x128xf32>
    %745 = arith.truncf %736 : vector<8x32xf32> to vector<8x32xbf16>
    %cst_181 = arith.constant dense<0.000000e+00> : vector<8x128xf32>
    %746 = tpu.matmul %745, %10, %cst_181 {dimension_numbers = #tpu.dot_dimension_numbers<[1], [0], [0], [1], [0, 0, 1, 1], [], []>} : vector<8x32xbf16>, vector<32x128xbf16>, vector<8x128xf32> -> vector<8x128xf32>
    %747 = arith.addf %744, %746 : vector<8x128xf32>
    %748 = arith.negf %747 : vector<8x128xf32>
    %749 = math.exp %748 : vector<8x128xf32>
    %cst_182 = arith.constant 1.000000e+00 : f32
    %750 = vector.broadcast %cst_182 : f32 to vector<8x128xf32>
    %751 = arith.addf %750, %749 : vector<8x128xf32>
    %752 = arith.divf %750, %751 : vector<8x128xf32>
    %753 = math.tanh %747 : vector<8x128xf32>
    %754 = vector.extract_strided_slice %752 {offsets = [0, 0], sizes = [8, 32], strides = [1, 1]} : vector<8x128xf32> to vector<8x32xf32>
    %755 = vector.extract_strided_slice %752 {offsets = [0, 32], sizes = [8, 32], strides = [1, 1]} : vector<8x128xf32> to vector<8x32xf32>
    %756 = vector.extract_strided_slice %753 {offsets = [0, 64], sizes = [8, 32], strides = [1, 1]} : vector<8x128xf32> to vector<8x32xf32>
    %757 = vector.extract_strided_slice %752 {offsets = [0, 96], sizes = [8, 32], strides = [1, 1]} : vector<8x128xf32> to vector<8x32xf32>
    %758 = arith.mulf %755, %734 : vector<8x32xf32>
    %759 = arith.mulf %754, %756 : vector<8x32xf32>
    %760 = arith.addf %758, %759 : vector<8x32xf32>
    %761 = math.tanh %760 : vector<8x32xf32>
    %762 = arith.mulf %757, %761 : vector<8x32xf32>
    %763 = arith.index_cast %c28_i32 : i32 to index
    %c0_183 = arith.constant 0 : index
    %c0_184 = arith.constant 0 : index
    %764 = vector.load %arg8[%763, %c0_183, %c0_184] : memref<32x8x32xf32, #tpu.memory_space<vmem>>, vector<1x8x32xf32>
    %765 = vector.shape_cast %764 : vector<1x8x32xf32> to vector<8x32xf32>
    %766 = vector.shape_cast %762 : vector<8x32xf32> to vector<1x8x32xf32>
    tpu.vector_store %arg8[%763, %c0_183, %c0_184], %766 {strides = array<i32>} : memref<32x8x32xf32, #tpu.memory_space<vmem>>, vector<1x8x32xf32>,
    %c29_i32 = arith.constant 29 : i32
    %c8_i32_185 = arith.constant 8 : i32
    %767 = arith.muli %c29_i32, %c8_i32_185 : i32
    %768 = tpu.assume_multiple %767, 8 : i32
    %769 = arith.index_cast %768 : i32 to index
    %c0_186 = arith.constant 0 : index
    %770 = vector.load %arg7[%769, %c0_186] : memref<256x128xf32, #tpu.memory_space<vmem>>, vector<8x128xf32>
    %771 = arith.truncf %762 : vector<8x32xf32> to vector<8x32xbf16>
    %cst_187 = arith.constant dense<0.000000e+00> : vector<8x128xf32>
    %772 = tpu.matmul %771, %10, %cst_187 {dimension_numbers = #tpu.dot_dimension_numbers<[1], [0], [0], [1], [0, 0, 1, 1], [], []>} : vector<8x32xbf16>, vector<32x128xbf16>, vector<8x128xf32> -> vector<8x128xf32>
    %773 = arith.addf %770, %772 : vector<8x128xf32>
    %774 = arith.negf %773 : vector<8x128xf32>
    %775 = math.exp %774 : vector<8x128xf32>
    %cst_188 = arith.constant 1.000000e+00 : f32
    %776 = vector.broadcast %cst_188 : f32 to vector<8x128xf32>
    %777 = arith.addf %776, %775 : vector<8x128xf32>
    %778 = arith.divf %776, %777 : vector<8x128xf32>
    %779 = math.tanh %773 : vector<8x128xf32>
    %780 = vector.extract_strided_slice %778 {offsets = [0, 0], sizes = [8, 32], strides = [1, 1]} : vector<8x128xf32> to vector<8x32xf32>
    %781 = vector.extract_strided_slice %778 {offsets = [0, 32], sizes = [8, 32], strides = [1, 1]} : vector<8x128xf32> to vector<8x32xf32>
    %782 = vector.extract_strided_slice %779 {offsets = [0, 64], sizes = [8, 32], strides = [1, 1]} : vector<8x128xf32> to vector<8x32xf32>
    %783 = vector.extract_strided_slice %778 {offsets = [0, 96], sizes = [8, 32], strides = [1, 1]} : vector<8x128xf32> to vector<8x32xf32>
    %784 = arith.mulf %781, %760 : vector<8x32xf32>
    %785 = arith.mulf %780, %782 : vector<8x32xf32>
    %786 = arith.addf %784, %785 : vector<8x32xf32>
    %787 = math.tanh %786 : vector<8x32xf32>
    %788 = arith.mulf %783, %787 : vector<8x32xf32>
    %789 = arith.index_cast %c29_i32 : i32 to index
    %c0_189 = arith.constant 0 : index
    %c0_190 = arith.constant 0 : index
    %790 = vector.load %arg8[%789, %c0_189, %c0_190] : memref<32x8x32xf32, #tpu.memory_space<vmem>>, vector<1x8x32xf32>
    %791 = vector.shape_cast %790 : vector<1x8x32xf32> to vector<8x32xf32>
    %792 = vector.shape_cast %788 : vector<8x32xf32> to vector<1x8x32xf32>
    tpu.vector_store %arg8[%789, %c0_189, %c0_190], %792 {strides = array<i32>} : memref<32x8x32xf32, #tpu.memory_space<vmem>>, vector<1x8x32xf32>,
    %c30_i32 = arith.constant 30 : i32
    %c8_i32_191 = arith.constant 8 : i32
    %793 = arith.muli %c30_i32, %c8_i32_191 : i32
    %794 = tpu.assume_multiple %793, 8 : i32
    %795 = arith.index_cast %794 : i32 to index
    %c0_192 = arith.constant 0 : index
    %796 = vector.load %arg7[%795, %c0_192] : memref<256x128xf32, #tpu.memory_space<vmem>>, vector<8x128xf32>
    %797 = arith.truncf %788 : vector<8x32xf32> to vector<8x32xbf16>
    %cst_193 = arith.constant dense<0.000000e+00> : vector<8x128xf32>
    %798 = tpu.matmul %797, %10, %cst_193 {dimension_numbers = #tpu.dot_dimension_numbers<[1], [0], [0], [1], [0, 0, 1, 1], [], []>} : vector<8x32xbf16>, vector<32x128xbf16>, vector<8x128xf32> -> vector<8x128xf32>
    %799 = arith.addf %796, %798 : vector<8x128xf32>
    %800 = arith.negf %799 : vector<8x128xf32>
    %801 = math.exp %800 : vector<8x128xf32>
    %cst_194 = arith.constant 1.000000e+00 : f32
    %802 = vector.broadcast %cst_194 : f32 to vector<8x128xf32>
    %803 = arith.addf %802, %801 : vector<8x128xf32>
    %804 = arith.divf %802, %803 : vector<8x128xf32>
    %805 = math.tanh %799 : vector<8x128xf32>
    %806 = vector.extract_strided_slice %804 {offsets = [0, 0], sizes = [8, 32], strides = [1, 1]} : vector<8x128xf32> to vector<8x32xf32>
    %807 = vector.extract_strided_slice %804 {offsets = [0, 32], sizes = [8, 32], strides = [1, 1]} : vector<8x128xf32> to vector<8x32xf32>
    %808 = vector.extract_strided_slice %805 {offsets = [0, 64], sizes = [8, 32], strides = [1, 1]} : vector<8x128xf32> to vector<8x32xf32>
    %809 = vector.extract_strided_slice %804 {offsets = [0, 96], sizes = [8, 32], strides = [1, 1]} : vector<8x128xf32> to vector<8x32xf32>
    %810 = arith.mulf %807, %786 : vector<8x32xf32>
    %811 = arith.mulf %806, %808 : vector<8x32xf32>
    %812 = arith.addf %810, %811 : vector<8x32xf32>
    %813 = math.tanh %812 : vector<8x32xf32>
    %814 = arith.mulf %809, %813 : vector<8x32xf32>
    %815 = arith.index_cast %c30_i32 : i32 to index
    %c0_195 = arith.constant 0 : index
    %c0_196 = arith.constant 0 : index
    %816 = vector.load %arg8[%815, %c0_195, %c0_196] : memref<32x8x32xf32, #tpu.memory_space<vmem>>, vector<1x8x32xf32>
    %817 = vector.shape_cast %816 : vector<1x8x32xf32> to vector<8x32xf32>
    %818 = vector.shape_cast %814 : vector<8x32xf32> to vector<1x8x32xf32>
    tpu.vector_store %arg8[%815, %c0_195, %c0_196], %818 {strides = array<i32>} : memref<32x8x32xf32, #tpu.memory_space<vmem>>, vector<1x8x32xf32>,
    %c31_i32 = arith.constant 31 : i32
    %c8_i32_197 = arith.constant 8 : i32
    %819 = arith.muli %c31_i32, %c8_i32_197 : i32
    %820 = tpu.assume_multiple %819, 8 : i32
    %821 = arith.index_cast %820 : i32 to index
    %c0_198 = arith.constant 0 : index
    %822 = vector.load %arg7[%821, %c0_198] : memref<256x128xf32, #tpu.memory_space<vmem>>, vector<8x128xf32>
    %823 = arith.truncf %814 : vector<8x32xf32> to vector<8x32xbf16>
    %cst_199 = arith.constant dense<0.000000e+00> : vector<8x128xf32>
    %824 = tpu.matmul %823, %10, %cst_199 {dimension_numbers = #tpu.dot_dimension_numbers<[1], [0], [0], [1], [0, 0, 1, 1], [], []>} : vector<8x32xbf16>, vector<32x128xbf16>, vector<8x128xf32> -> vector<8x128xf32>
    %825 = arith.addf %822, %824 : vector<8x128xf32>
    %826 = arith.negf %825 : vector<8x128xf32>
    %827 = math.exp %826 : vector<8x128xf32>
    %cst_200 = arith.constant 1.000000e+00 : f32
    %828 = vector.broadcast %cst_200 : f32 to vector<8x128xf32>
    %829 = arith.addf %828, %827 : vector<8x128xf32>
    %830 = arith.divf %828, %829 : vector<8x128xf32>
    %831 = math.tanh %825 : vector<8x128xf32>
    %832 = vector.extract_strided_slice %830 {offsets = [0, 0], sizes = [8, 32], strides = [1, 1]} : vector<8x128xf32> to vector<8x32xf32>
    %833 = vector.extract_strided_slice %830 {offsets = [0, 32], sizes = [8, 32], strides = [1, 1]} : vector<8x128xf32> to vector<8x32xf32>
    %834 = vector.extract_strided_slice %831 {offsets = [0, 64], sizes = [8, 32], strides = [1, 1]} : vector<8x128xf32> to vector<8x32xf32>
    %835 = vector.extract_strided_slice %830 {offsets = [0, 96], sizes = [8, 32], strides = [1, 1]} : vector<8x128xf32> to vector<8x32xf32>
    %836 = arith.mulf %833, %812 : vector<8x32xf32>
    %837 = arith.mulf %832, %834 : vector<8x32xf32>
    %838 = arith.addf %836, %837 : vector<8x32xf32>
    %839 = math.tanh %838 : vector<8x32xf32>
    %840 = arith.mulf %835, %839 : vector<8x32xf32>
    %841 = arith.index_cast %c31_i32 : i32 to index
    %c0_201 = arith.constant 0 : index
    %c0_202 = arith.constant 0 : index
    %842 = vector.load %arg8[%841, %c0_201, %c0_202] : memref<32x8x32xf32, #tpu.memory_space<vmem>>, vector<1x8x32xf32>
    %843 = vector.shape_cast %842 : vector<1x8x32xf32> to vector<8x32xf32>
    %844 = vector.shape_cast %840 : vector<8x32xf32> to vector<1x8x32xf32>
    tpu.vector_store %arg8[%841, %c0_201, %c0_202], %844 {strides = array<i32>} : memref<32x8x32xf32, #tpu.memory_space<vmem>>, vector<1x8x32xf32>,
    %c32_i32 = arith.constant 32 : i32
    %c0_203 = arith.constant 0 : index
    %c0_204 = arith.constant 0 : index
    %c0_205 = arith.constant 0 : index
    %845 = vector.load %arg8[%c0_203, %c0_204, %c0_205] : memref<32x8x32xf32, #tpu.memory_space<vmem>>, vector<32x8x32xf32>
    %846 = vector.shape_cast %840 : vector<8x32xf32> to vector<1x8x32xf32>
    %847 = vector.broadcast %846 : vector<1x8x32xf32> to vector<32x8x32xf32>
    %848 = arith.mulf %845, %847 : vector<32x8x32xf32>
    %cst_206 = arith.constant dense<0.000000e+00> : vector<32x8xf32>
    %849 = vector.multi_reduction <add>, %848, %cst_206 [2] : vector<32x8x32xf32> to vector<32x8xf32>
    %850 = tpu.transpose %849, [1, 0] : vector<32x8xf32> -> vector<8x32xf32>
    %cst_207 = arith.constant dense<0xFF800000> : vector<8xf32>
    %851 = vector.multi_reduction <maximumf>, %850, %cst_207 [1] : vector<8x32xf32> to vector<8xf32>
    %852 = vector.shape_cast %851 : vector<8xf32> to vector<8x1xf32>
    %853 = vector.broadcast %852 : vector<8x1xf32> to vector<8x32xf32>
    %854 = arith.subf %850, %853 : vector<8x32xf32>
    %855 = math.exp %854 : vector<8x32xf32>
    %cst_208 = arith.constant dense<0.000000e+00> : vector<8xf32>
    %856 = vector.multi_reduction <add>, %855, %cst_208 [1] : vector<8x32xf32> to vector<8xf32>
    %857 = vector.shape_cast %856 : vector<8xf32> to vector<8x1xf32>
    %858 = tpu.reciprocal %857 {approx = true} : vector<8x1xf32> -> vector<8x1xf32>
    %859 = vector.broadcast %858 : vector<8x1xf32> to vector<8x32xf32>
    %860 = arith.mulf %855, %859 : vector<8x32xf32>
    %861 = vector.shape_cast %860 : vector<8x32xf32> to vector<1x8x32xf32>
    %862 = vector.broadcast %861 : vector<1x8x32xf32> to vector<32x8x32xf32>
    %863 = arith.mulf %845, %862 : vector<32x8x32xf32>
    %cst_209 = arith.constant dense<0.000000e+00> : vector<32x8xf32>
    %864 = vector.multi_reduction <add>, %863, %cst_209 [2] : vector<32x8x32xf32> to vector<32x8xf32>
    %865 = tpu.transpose %864, [1, 0] : vector<32x8xf32> -> vector<8x32xf32>
    %c0_210 = arith.constant 0 : index
    %c0_211 = arith.constant 0 : index
    %866 = vector.load %arg4[%c0_210, %c0_211] : memref<32x4xf32, #tpu.memory_space<vmem>>, vector<32x4xf32>
    %cst_212 = arith.constant dense<0.000000e+00> : vector<8x4xf32>
    %867 = tpu.matmul %865, %866, %cst_212 {dimension_numbers = #tpu.dot_dimension_numbers<[1], [0], [0], [1], [0, 0, 1, 1], [], []>} : vector<8x32xf32>, vector<32x4xf32>, vector<8x4xf32> -> vector<8x4xf32>
    %c0_213 = arith.constant 0 : index
    %c0_214 = arith.constant 0 : index
    %868 = vector.load %arg5[%c0_213, %c0_214] : memref<1x4xf32, #tpu.memory_space<vmem>>, vector<1x4xf32>
    %869 = vector.broadcast %868 : vector<1x4xf32> to vector<8x4xf32>
    %870 = arith.addf %867, %869 : vector<8x4xf32>
    %c0_215 = arith.constant 0 : index
    %c0_216 = arith.constant 0 : index
    %871 = vector.load %arg6[%c0_215, %c0_216] : memref<8x4xf32, #tpu.memory_space<vmem>>, vector<8x4xf32>
    tpu.vector_store %arg6[%c0_215, %c0_216], %870 {strides = array<i32>} : memref<8x4xf32, #tpu.memory_space<vmem>>, vector<8x4xf32>,
    return
  }
}

</mosaic_0001>

<bundles_post_ra>
// kernel: lstm_attn_forward.1
= control target key start
LH: loop header
LB: loop body
LE: loop exit
PB: predicated region body
PF: predicated region fallthrough
CT: control target
= control target key end

     0   :  { %v4506_v0 = vmov 0.0   ;;  %vm4507_vm0 = vmmov 0   ;;  %vm82_vm1 = vcmask 130048   ;;  %v4508_v16 = vmov 0   ;;  %s4509_s17 = smov 64   ;;  %s4510_s18 = smov 32   ;;  %s5793_s1 = inlined_call_operand.vmem [shape: f32[16,128], index: 1, kind: input, shape index: {}]   ;;  %s5794_s2 = inlined_call_operand.vmem [shape: f32[32,128], index: 2, kind: input, shape index: {}]   ;;  %s5795_s0 = inlined_call_operand.vmem [shape: f32[256,16], index: 0, kind: input, shape index: {}]   ;;  %s5796_s3 = inlined_call_operand.vmem [shape: f32[1,128], index: 3, kind: input, shape index: {}]   ;;  %s5797_s4 = inlined_call_operand.vmem [shape: f32[32,4], index: 4, kind: input, shape index: {}]   ;;  %s5798_s5 = inlined_call_operand.vmem [shape: f32[1,4], index: 5, kind: input, shape index: {}]   ;;  %s5799_s6 = inlined_call_operand.vmem [shape: f32[8,4], index: 6, kind: output, shape index: {}]  }
   0x1   :  { %3965 = vmatprep.subr.bf16.mxu1 %v4506_v0  ;;  %v72_v1 = vld [vmem:[%s5793_s1] sm:$0xff]  ;;  %v73_v2 = vld [vmem:[%s5793_s1 + $0x8] sm:$0xff]  ;;  %3969 = vmatprep.mubr.msk.bf16.mxu1 %vm4507_vm0, %v4506_v0  ;;  %v26_v10 = vld [vmem:[%s5795_s0 + $0x10] sm:$0xff]  ;;  %vm331_vm2 = vcmask 261120   ;;  %vm3207_vm3 = vcmask 1041409   ;;  %vm3209_vm4 = vcmask 1042434  }
   0x2   :  { %v324_v3 = vld [vmem:[%s5794_s2] sm:$0xff]  ;;  %v74_v4 = vpack.c.bf16 %v73_v2, %v72_v1  ;;  %v325_v5 = vld [vmem:[%s5794_s2 + $0x8] sm:$0xff]  ;;  %v27_v11 = vld [vmem:[%s5795_s0 + $0x18] sm:$0xff]  ;;  %vm3211_vm5 = vcmask 1043459   ;;  %vm3213_vm6 = vcmask 1044484   ;;  %vm3215_vm7 = vcmask 1045509  }
   0x3   :  { %v24_v6 = vld [vmem:[%s5795_s0] sm:$0xff]  ;;  %v25_v7 = vld [vmem:[%s5795_s0 + $0x8] sm:$0xff]  ;;  %v4568_v8 = vpack.c.bf16 %v325_v5, %v324_v3  ;;  %v326_v12 = vld [vmem:[%s5794_s2 + $0x10] sm:$0xff]  ;;  %v57_v13 = vpack.c.bf16 %v27_v11, %v26_v10  ;;  %vm3217_vm8 = vcmask 1046534   ;;  %vm3219_vm9 = vcmask 1047559  }
   0x4   :  { %v56_v9 = vpack.c.bf16 %v25_v7, %v24_v6  ;;  %3931 = vmatprep.subr.bf16.mxu0 %v74_v4  ;;  %v327_v14 = vld [vmem:[%s5794_s2 + $0x18] sm:$0xff]  ;;  %v4604_v17 = vld [vmem:[%s5796_s3] ss:$0 sm:$0xff]  ;;  %vm3725_vm10 = vcmask 31744  }
   0x5   :  { %3966 = vmatpush3.bf16.msra.mxu1 %v4568_v8  ;;  %3932 = vmatpush3.bf16.msra.mxu0 %v74_v4  ;;  %v4583_v15 = vpack.c.bf16 %v327_v14, %v326_v12 }
   0x6   :  { %3933 = vmatprep.mubr.msk.bf16.mxu0 %vm82_vm1, %v56_v9  ;;  %3967 = vmatprep.subr.bf16.mxu1 %v4506_v0 }
   0x7   :  { %4029 = vmatprep.subr.bf16.mxu0 %v4506_v0 }
   0x8   :  { %3934 = vmatmul.mubr.msk.bf16.vlgmr.msra.gmra.mrb[0].mxu0 %vm82_vm1, %v57_v13 }
   0x9   :  { %3968 = vmatpush3.bf16.msra.mxu1 %v4583_v15  ;;  %4030 = vmatpush3.bf16.msra.mxu0 %v4568_v8 }
   0xa   :  { %3973 = vmatprep.subr.bf16.mxu1 %v4506_v0  ;;  %4031 = vmatprep.subr.bf16.mxu0 %v4506_v0 }
   0xc   :  { %3970 = vmatmul.mubr.bf16.vlgmr.msra.gmra.mrb[0].mxu1 %v4508_v16 }
   0xd   :  { %3974 = vmatpush3.bf16.msra.mxu1 %v4568_v8  ;;  %3977 = vmatprep.mubr.msk.bf16.mxu1 %vm4507_vm0, %v4506_v0 }
   0xe   :  { %3975 = vmatprep.subr.bf16.mxu1 %v4506_v0  ;;  %4032 = vmatpush3.bf16.msra.mxu0 %v4583_v15 }
   0xf   :  { %4045 = vmatprep.subr.bf16.mxu0 %v4506_v0 }
  0x11   :  { %3976 = vmatpush3.bf16.msra.mxu1 %v4583_v15 }
  0x12   :  { %3981 = vmatprep.subr.bf16.mxu1 %v4506_v0 }
  0xdb   :  { %v4606_v18 = vpop.f32.mrb[0].mxu0 }
  0xdc   :  { %v165_v19 = vpop.f32.mrb[1].mxu0  ;;  %v174_v1 = vadd.f32 %v4606_v18, %v4604_v17 }
  0xdd   :  { %v166_v20 = vadd.f32 %v4604_v17, %v165_v19  ;;  %v4609_v21 = vpop.f32.mrb[2].mxu0 }
  0xde   :  { %v168_v22 = vpop.f32.mrb[3].mxu0 }
  0xdf   :  { %v369_v23 = vpop.f32.mrb[0].mxu1  ;;  %v169_v43 = vadd.f32 %v4604_v17, %v168_v22 }
  0xe0   :  { %v375_v24 = vadd.f32 %v369_v23, %v166_v20  ;;  %v3971_v25 = vpop.f32.mrb[1].mxu1 }
  0xe1   :  { %v372_v26 = vpop.f32.mrb[2].mxu1 }
  0xe2   :  { %4244 = vtanh.f32 %v375_v24  ;;  %v3972_v27 = vpop.f32.mrb[3].mxu1  ;;  %v3748_v29 = vmul.f32 -1.442695, %v375_v24  ;;  %v177_v26 = vadd.f32 %v4609_v21, %v4604_v17 }
  0xe4   :  { %4246 = vpow2.f32 %v3748_v29 }
  0xec   :  { %v4245_v28 = vpop.eup %4244 }
  0xed   :  { %385 = vrot.lane.b32.xlu0 %v4245_v28, %s4509_s17 }
  0xee   :  { %v4247_v30 = vpop.eup %4246 }
  0xef   :  { %v379_v31 = vadd.f32 1.0, %v4247_v30 }
  0xf1   :  { %4248 = vrcp.f32 %v379_v31 }
  0xfb   :  { %v4249_v32 = vpop.eup %4248 }
  0xfc   :  { %v383_v35 = vmul.f32 0.0, %v4249_v32 }
 0x15f   :  { %v386_v33 = vpop.permute.xlu0 %385 }
 0x160   :  { %v388_v34 = vmul.f32 %v4249_v32, %v386_v33 }
 0x162   :  { %390 = vrot.lane.b32.xlu0 %v388_v34, %s4510_s18 }
 0x1d4   :  { %v391_v36 = vpop.permute.xlu0 %390 }
 0x1d5   :  { %v393_v37 = vadd.f32 %v391_v36, %v383_v35 }
 0x1d7   :  { %4250 = vtanh.f32 %v393_v37 }
 0x1e1   :  { %v4251_v38 = vpop.eup %4250 }
 0x1e2   :  { %396 = vrot.lane.b32.xlu1 %v4251_v38, %s4509_s17 }
 0x254   :  { %v397_v39 = vpop.permute.xlu1 %396 }
 0x255   :  { %v4614_v40 = vmul.f32 %v4249_v32, %v397_v39 }
 0x257   :  { %v407_v41 = vpack.c.bf16 %v4614_v40, %v4614_v40 }
 0x259   :  { %409 = vrot.lane.b32.xlu1 %v407_v41, %s4510_s18 }
 0x2cb   :  { %v410_v42 = vpop.permute.xlu1 %409 }
 0x2cc   :  { %3978 = vmatmul.mubr.msk.bf16.vlgmr.msra.gmra.mrb[4].mxu1 %vm331_vm2, %v410_v42  ;;  %v28_v42 = vld [vmem:[%s5795_s0 + $0x20] sm:$0xff] }
 0x2cd   :  { %3982 = vmatpush3.bf16.msra.mxu1 %v4568_v8  ;;  %3985 = vmatprep.mubr.msk.bf16.mxu1 %vm4507_vm0, %v4506_v0 }
 0x2ce   :  { %3983 = vmatprep.subr.bf16.mxu1 %v4506_v0 }
 0x2d1   :  { %3984 = vmatpush3.bf16.msra.mxu1 %v4583_v15 }
 0x2d2   :  { %3989 = vmatprep.subr.bf16.mxu1 %v4506_v0 }
 0x39f   :  { %v448_v44 = vpop.f32.mrb[4].mxu1 }
 0x3a0   :  { %v454_v45 = vadd.f32 %v448_v44, %v169_v43  ;;  %v3979_v46 = vpop.f32.mrb[5].mxu1  ;;  %v29_v43 = vld [vmem:[%s5795_s0 + $0x28] sm:$0xff]  ;;  %v30_v44 = vld [vmem:[%s5795_s0 + $0x30] sm:$0xff] }
 0x3a1   :  { %v451_v47 = vpop.f32.mrb[6].mxu1  ;;  %v31_v46 = vld [vmem:[%s5795_s0 + $0x38] sm:$0xff] }
 0x3a2   :  { %4252 = vtanh.f32 %v454_v45  ;;  %v3980_v48 = vpop.f32.mrb[7].mxu1  ;;  %v3750_v50 = vmul.f32 -1.442695, %v454_v45  ;;  %v58_v45 = vpack.c.bf16 %v29_v43, %v28_v42  ;;  %v59_v47 = vpack.c.bf16 %v31_v46, %v30_v44 }
 0x3a4   :  { %4254 = vpow2.f32 %v3750_v50  ;;  %3937 = vmatprep.mubr.msk.bf16.mxu0 %vm82_vm1, %v58_v45 }
 0x3a5   :  { %3938 = vmatmul.mubr.msk.bf16.gmra.mrb[4].mxu0 %vm82_vm1, %v59_v47 }
 0x3ac   :  { %v4253_v49 = vpop.eup %4252 }
 0x3ad   :  { %464 = vrot.lane.b32.xlu0 %v4253_v49, %s4509_s17 }
 0x3ae   :  { %v4255_v51 = vpop.eup %4254 }
 0x3af   :  { %v458_v52 = vadd.f32 1.0, %v4255_v51 }
 0x3b1   :  { %4256 = vrcp.f32 %v458_v52 }
 0x3bb   :  { %v4257_v53 = vpop.eup %4256 }
 0x3bc   :  { %v462_v56 = vmul.f32 %v4257_v53, %v393_v37 }
 0x41f   :  { %v465_v54 = vpop.permute.xlu0 %464 }
 0x420   :  { %v467_v55 = vmul.f32 %v4257_v53, %v465_v54 }
 0x422   :  { %469 = vrot.lane.b32.xlu1 %v467_v55, %s4510_s18 }
 0x478   :  { %v4683_v52 = vpop.f32.mrb[4].mxu0 }
 0x479   :  { %v190_v42 = vadd.f32 %v4683_v52, %v4604_v17 }
 0x494   :  { %v470_v57 = vpop.permute.xlu1 %469 }
 0x495   :  { %v472_v58 = vadd.f32 %v470_v57, %v462_v56 }
 0x497   :  { %4258 = vtanh.f32 %v472_v58 }
 0x4a1   :  { %v4259_v59 = vpop.eup %4258 }
 0x4a2   :  { %475 = vrot.lane.b32.xlu0 %v4259_v59, %s4509_s17 }
 0x514   :  { %v476_v60 = vpop.permute.xlu0 %475 }
 0x515   :  { %v4630_v61 = vmul.f32 %v4257_v53, %v476_v60  ;;  %v181_v53 = vpop.f32.mrb[5].mxu0 }
 0x516   :  { %v4685_v54 = vpop.f32.mrb[6].mxu0  ;;  %v182_v57 = vadd.f32 %v4604_v17, %v181_v53 }
 0x517   :  { %v487_v62 = vpack.c.bf16 %v4630_v61, %v4630_v61  ;;  %v184_v55 = vpop.f32.mrb[7].mxu0 }
 0x519   :  { %489 = vrot.lane.b32.xlu1 %v487_v62, %s4510_s18 }
 0x58b   :  { %v490_v63 = vpop.permute.xlu1 %489 }
 0x58c   :  { %3986 = vmatmul.mubr.msk.bf16.vlgmr.msra.gmra.mrb[8].mxu1 %vm331_vm2, %v490_v63 }
 0x58d   :  { %3990 = vmatpush3.bf16.msra.mxu1 %v4568_v8  ;;  %3993 = vmatprep.mubr.msk.bf16.mxu1 %vm4507_vm0, %v4506_v0 }
 0x58e   :  { %3991 = vmatprep.subr.bf16.mxu1 %v4506_v0 }
 0x591   :  { %3992 = vmatpush3.bf16.msra.mxu1 %v4583_v15 }
 0x592   :  { %3997 = vmatprep.subr.bf16.mxu1 %v4506_v0 }
 0x65f   :  { %v528_v2 = vpop.f32.mrb[8].mxu1 }
 0x660   :  { %v534_v3 = vadd.f32 %v528_v2, %v174_v1  ;;  %v3987_v4 = vpop.f32.mrb[9].mxu1 }
 0x661   :  { %v531_v5 = vpop.f32.mrb[10].mxu1 }
 0x662   :  { %4260 = vtanh.f32 %v534_v3  ;;  %v3988_v6 = vpop.f32.mrb[11].mxu1  ;;  %v3752_v9 = vmul.f32 -1.442695, %v534_v3 }
 0x664   :  { %4262 = vpow2.f32 %v3752_v9 }
 0x66c   :  { %v4261_v7 = vpop.eup %4260 }
 0x66d   :  { %544 = vrot.lane.b32.xlu0 %v4261_v7, %s4509_s17 }
 0x66e   :  { %v4263_v10 = vpop.eup %4262 }
 0x66f   :  { %v538_v11 = vadd.f32 1.0, %v4263_v10 }
 0x671   :  { %4264 = vrcp.f32 %v538_v11 }
 0x67b   :  { %v4265_v12 = vpop.eup %4264 }
 0x67c   :  { %v542_v16 = vmul.f32 %v4265_v12, %v472_v58 }
 0x6df   :  { %v545_v13 = vpop.permute.xlu0 %544 }
 0x6e0   :  { %v547_v14 = vmul.f32 %v4265_v12, %v545_v13 }
 0x6e2   :  { %549 = vrot.lane.b32.xlu1 %v547_v14, %s4510_s18 }
 0x754   :  { %v550_v18 = vpop.permute.xlu1 %549 }
 0x755   :  { %v552_v19 = vadd.f32 %v550_v18, %v542_v16 }
 0x757   :  { %4266 = vtanh.f32 %v552_v19 }
 0x761   :  { %v4267_v20 = vpop.eup %4266 }
 0x762   :  { %555 = vrot.lane.b32.xlu0 %v4267_v20, %s4509_s17 }
 0x7d4   :  { %v556_v22 = vpop.permute.xlu0 %555 }
 0x7d5   :  { %v4647_v23 = vmul.f32 %v4265_v12, %v556_v22 }
 0x7d7   :  { %v567_v24 = vpack.c.bf16 %v4647_v23, %v4647_v23 }
 0x7d9   :  { %569 = vrot.lane.b32.xlu1 %v567_v24, %s4510_s18 }
 0x84b   :  { %v570_v25 = vpop.permute.xlu1 %569 }
 0x84c   :  { %3994 = vmatmul.mubr.msk.bf16.vlgmr.msra.gmra.mrb[12].mxu1 %vm331_vm2, %v570_v25 }
 0x84d   :  { %3998 = vmatpush3.bf16.msra.mxu1 %v4568_v8  ;;  %4001 = vmatprep.mubr.msk.bf16.mxu1 %vm4507_vm0, %v4506_v0 }
 0x84e   :  { %3999 = vmatprep.subr.bf16.mxu1 %v4506_v0 }
 0x851   :  { %4000 = vmatpush3.bf16.msra.mxu1 %v4583_v15 }
 0x852   :  { %4005 = vmatprep.subr.bf16.mxu1 %v4506_v0 }
 0x91f   :  { %v608_v27 = vpop.f32.mrb[12].mxu1 }
 0x920   :  { %v614_v28 = vadd.f32 %v608_v27, %v177_v26  ;;  %v3995_v29 = vpop.f32.mrb[13].mxu1 }
 0x921   :  { %v611_v30 = vpop.f32.mrb[14].mxu1 }
 0x922   :  { %4268 = vtanh.f32 %v614_v28  ;;  %v3996_v31 = vpop.f32.mrb[15].mxu1  ;;  %v3754_v33 = vmul.f32 -1.442695, %v614_v28 }
 0x924   :  { %4270 = vpow2.f32 %v3754_v33 }
 0x92c   :  { %v4269_v32 = vpop.eup %4268 }
 0x92d   :  { %624 = vrot.lane.b32.xlu0 %v4269_v32, %s4509_s17 }
 0x92e   :  { %v4271_v34 = vpop.eup %4270 }
 0x92f   :  { %v618_v35 = vadd.f32 1.0, %v4271_v34 }
 0x931   :  { %4272 = vrcp.f32 %v618_v35 }
 0x93b   :  { %v4273_v36 = vpop.eup %4272 }
 0x93c   :  { %v622_v21 = vmul.f32 %v4273_v36, %v552_v19  ;;  %v185_v19 = vadd.f32 %v4604_v17, %v184_v55 }
 0x99f   :  { %v625_v37 = vpop.permute.xlu0 %624 }
 0x9a0   :  { %v627_v38 = vmul.f32 %v4273_v36, %v625_v37 }
 0x9a2   :  { %629 = vrot.lane.b32.xlu1 %v627_v38, %s4510_s18 }
 0xa14   :  { %v630_v39 = vpop.permute.xlu1 %629 }
 0xa15   :  { %v632_v41 = vadd.f32 %v630_v39, %v622_v21 }
 0xa17   :  { %4274 = vtanh.f32 %v632_v41 }
 0xa21   :  { %v4275_v48 = vpop.eup %4274 }
 0xa22   :  { %635 = vrot.lane.b32.xlu0 %v4275_v48, %s4509_s17 }
 0xa94   :  { %v636_v49 = vpop.permute.xlu0 %635 }
 0xa95   :  { %v4678_v50 = vmul.f32 %v4273_v36, %v636_v49 }
 0xa97   :  { %v647_v51 = vpack.c.bf16 %v4678_v50, %v4678_v50 }
 0xa99   :  { %649 = vrot.lane.b32.xlu1 %v647_v51, %s4510_s18 }
 0xb0b   :  { %v650_v56 = vpop.permute.xlu1 %649 }
 0xb0c   :  { %4002 = vmatmul.mubr.msk.bf16.vlgmr.msra.gmra.mrb[16].mxu1 %vm331_vm2, %v650_v56 }
 0xb0d   :  { %4006 = vmatpush3.bf16.msra.mxu1 %v4568_v8  ;;  %4009 = vmatprep.mubr.msk.bf16.mxu1 %vm4507_vm0, %v4506_v0 }
 0xb0e   :  { %4007 = vmatprep.subr.bf16.mxu1 %v4506_v0 }
 0xb11   :  { %4008 = vmatpush3.bf16.msra.mxu1 %v4583_v15 }
 0xb12   :  { %4013 = vmatprep.subr.bf16.mxu1 %v4506_v0 }
 0xbdf   :  { %v688_v58 = vpop.f32.mrb[16].mxu1 }
 0xbe0   :  { %v694_v59 = vadd.f32 %v688_v58, %v182_v57  ;;  %v4003_v60 = vpop.f32.mrb[17].mxu1 }
 0xbe1   :  { %v691_v62 = vpop.f32.mrb[18].mxu1 }
 0xbe2   :  { %4276 = vtanh.f32 %v694_v59  ;;  %v4004_v63 = vpop.f32.mrb[19].mxu1  ;;  %v3756_v2 = vmul.f32 -1.442695, %v694_v59 }
 0xbe4   :  { %4278 = vpow2.f32 %v3756_v2 }
 0xbec   :  { %v4277_v1 = vpop.eup %4276 }
 0xbed   :  { %704 = vrot.lane.b32.xlu0 %v4277_v1, %s4509_s17 }
 0xbee   :  { %v4279_v3 = vpop.eup %4278 }
 0xbef   :  { %v698_v4 = vadd.f32 1.0, %v4279_v3  ;;  %v193_v3 = vadd.f32 %v4685_v54, %v4604_v17 }
 0xbf1   :  { %4280 = vrcp.f32 %v698_v4 }
 0xbfb   :  { %v4281_v5 = vpop.eup %4280 }
 0xbfc   :  { %v702_v9 = vmul.f32 %v4281_v5, %v632_v41 }
 0xc5f   :  { %v705_v6 = vpop.permute.xlu0 %704 }
 0xc60   :  { %v707_v7 = vmul.f32 %v4281_v5, %v705_v6 }
 0xc62   :  { %709 = vrot.lane.b32.xlu1 %v707_v7, %s4510_s18 }
 0xcd4   :  { %v710_v10 = vpop.permute.xlu1 %709 }
 0xcd5   :  { %v712_v11 = vadd.f32 %v710_v10, %v702_v9 }
 0xcd7   :  { %4282 = vtanh.f32 %v712_v11 }
 0xce1   :  { %v4283_v12 = vpop.eup %4282 }
 0xce2   :  { %715 = vrot.lane.b32.xlu0 %v4283_v12, %s4509_s17 }
 0xd54   :  { %v716_v13 = vpop.permute.xlu0 %715 }
 0xd55   :  { %v4698_v14 = vmul.f32 %v4281_v5, %v716_v13 }
 0xd57   :  { %v727_v16 = vpack.c.bf16 %v4698_v14, %v4698_v14 }
 0xd59   :  { %729 = vrot.lane.b32.xlu1 %v727_v16, %s4510_s18 }
 0xdcb   :  { %v730_v18 = vpop.permute.xlu1 %729 }
 0xdcc   :  { %4010 = vmatmul.mubr.msk.bf16.vlgmr.msra.gmra.mrb[20].mxu1 %vm331_vm2, %v730_v18 }
 0xdcd   :  { %4014 = vmatpush3.bf16.msra.mxu1 %v4568_v8  ;;  %4017 = vmatprep.mubr.msk.bf16.mxu1 %vm4507_vm0, %v4506_v0 }
 0xdce   :  { %4015 = vmatprep.subr.bf16.mxu1 %v4506_v0 }
 0xdd1   :  { %4016 = vmatpush3.bf16.msra.mxu1 %v4583_v15 }
 0xdd2   :  { %4021 = vmatprep.subr.bf16.mxu1 %v4506_v0 }
 0xe9f   :  { %v768_v20 = vpop.f32.mrb[20].mxu1 }
 0xea0   :  { %v774_v22 = vadd.f32 %v768_v20, %v185_v19  ;;  %v4011_v24 = vpop.f32.mrb[21].mxu1 }
 0xea1   :  { %v771_v25 = vpop.f32.mrb[22].mxu1  ;;  %v32_v24 = vld [vmem:[%s5795_s0 + $0x40] sm:$0xff] }
 0xea2   :  { %4284 = vtanh.f32 %v774_v22  ;;  %v4012_v26 = vpop.f32.mrb[23].mxu1  ;;  %v3758_v28 = vmul.f32 -1.442695, %v774_v22  ;;  %v33_v25 = vld [vmem:[%s5795_s0 + $0x48] sm:$0xff] }
 0xea3   :  { %v34_v26 = vld [vmem:[%s5795_s0 + $0x50] sm:$0xff] }
 0xea4   :  { %4286 = vpow2.f32 %v3758_v28  ;;  %v35_v28 = vld [vmem:[%s5795_s0 + $0x58] sm:$0xff] }
 0xeac   :  { %v4285_v27 = vpop.eup %4284 }
 0xead   :  { %784 = vrot.lane.b32.xlu0 %v4285_v27, %s4509_s17  ;;  %v60_v27 = vpack.c.bf16 %v33_v25, %v32_v24 }
 0xeae   :  { %v4287_v29 = vpop.eup %4286 }
 0xeaf   :  { %v778_v30 = vadd.f32 1.0, %v4287_v29  ;;  %v36_v29 = vld [vmem:[%s5795_s0 + $0x60] sm:$0xff]  ;;  %3941 = vmatprep.mubr.msk.bf16.mxu0 %vm82_vm1, %v60_v27 }
 0xeb1   :  { %4288 = vrcp.f32 %v778_v30  ;;  %v37_v30 = vld [vmem:[%s5795_s0 + $0x68] sm:$0xff] }
 0xebb   :  { %v4289_v31 = vpop.eup %4288 }
 0xebc   :  { %v782_v34 = vmul.f32 %v4289_v31, %v712_v11 }
 0xf1f   :  { %v785_v32 = vpop.permute.xlu0 %784 }
 0xf20   :  { %v787_v33 = vmul.f32 %v4289_v31, %v785_v32  ;;  %v62_v32 = vpack.c.bf16 %v37_v30, %v36_v29 }
 0xf22   :  { %789 = vrot.lane.b32.xlu1 %v787_v33, %s4510_s18  ;;  %v38_v33 = vld [vmem:[%s5795_s0 + $0x70] sm:$0xff] }
 0xf94   :  { %v790_v35 = vpop.permute.xlu1 %789 }
 0xf95   :  { %v792_v36 = vadd.f32 %v790_v35, %v782_v34  ;;  %v39_v34 = vld [vmem:[%s5795_s0 + $0x78] sm:$0xff]  ;;  %v40_v35 = vld [vmem:[%s5795_s0 + $0x80] sm:$0xff] }
 0xf97   :  { %4290 = vtanh.f32 %v792_v36 }
 0xfa1   :  { %v4291_v37 = vpop.eup %4290 }
 0xfa2   :  { %795 = vrot.lane.b32.xlu0 %v4291_v37, %s4509_s17 }
0x1014   :  { %v796_v38 = vpop.permute.xlu0 %795 }
0x1015   :  { %v4714_v21 = vmul.f32 %v4289_v31, %v796_v38  ;;  %v61_v31 = vpack.c.bf16 %v35_v28, %v34_v26  ;;  %v63_v38 = vpack.c.bf16 %v39_v34, %v38_v33 }
0x1017   :  { %v807_v39 = vpack.c.bf16 %v4714_v21, %v4714_v21  ;;  %3942 = vmatmul.mubr.msk.bf16.gmra.mrb[8].mxu0 %vm82_vm1, %v61_v31 }
0x1018   :  { %3945 = vmatprep.mubr.msk.bf16.mxu0 %vm82_vm1, %v62_v32 }
0x1019   :  { %809 = vrot.lane.b32.xlu1 %v807_v39, %s4510_s18 }
0x101f   :  { %3946 = vmatmul.mubr.msk.bf16.gmra.mrb[12].mxu0 %vm82_vm1, %v63_v38 }
0x108b   :  { %v810_v41 = vpop.permute.xlu1 %809 }
0x108c   :  { %4018 = vmatmul.mubr.msk.bf16.vlgmr.msra.gmra.mrb[24].mxu1 %vm331_vm2, %v810_v41  ;;  %v42_v41 = vld [vmem:[%s5795_s0 + $0x90] sm:$0xff] }
0x108d   :  { %4022 = vmatpush3.bf16.msra.mxu1 %v4568_v8  ;;  %4025 = vmatprep.mubr.msk.bf16.mxu1 %vm4507_vm0, %v4506_v0 }
0x108e   :  { %4023 = vmatprep.subr.bf16.mxu1 %v4506_v0 }
0x1091   :  { %4024 = vmatpush3.bf16.msra.mxu1 %v4583_v15 }
0x1092   :  { %4037 = vmatprep.subr.bf16.mxu1 %v4506_v0 }
0x115f   :  { %v848_v43 = vpop.f32.mrb[24].mxu1 }
0x1160   :  { %v854_v44 = vadd.f32 %v848_v43, %v190_v42  ;;  %v4019_v45 = vpop.f32.mrb[25].mxu1  ;;  %v43_v42 = vld [vmem:[%s5795_s0 + $0x98] sm:$0xff]  ;;  %v44_v43 = vld [vmem:[%s5795_s0 + $0xa0] sm:$0xff] }
0x1161   :  { %v851_v46 = vpop.f32.mrb[26].mxu1  ;;  %v65_v45 = vpack.c.bf16 %v43_v42, %v42_v41 }
0x1162   :  { %4292 = vtanh.f32 %v854_v44  ;;  %v4020_v47 = vpop.f32.mrb[27].mxu1  ;;  %v3760_v49 = vmul.f32 -1.442695, %v854_v44  ;;  %v45_v44 = vld [vmem:[%s5795_s0 + $0xa8] sm:$0xff] }
0x1163   :  { %v66_v46 = vpack.c.bf16 %v45_v44, %v44_v43  ;;  %v46_v47 = vld [vmem:[%s5795_s0 + $0xb0] sm:$0xff] }
0x1164   :  { %4294 = vpow2.f32 %v3760_v49  ;;  %v48_v49 = vld [vmem:[%s5795_s0 + $0xc0] sm:$0xff] }
0x116c   :  { %v4293_v48 = vpop.eup %4292 }
0x116d   :  { %864 = vrot.lane.b32.xlu0 %v4293_v48, %s4509_s17  ;;  %v47_v48 = vld [vmem:[%s5795_s0 + $0xb8] sm:$0xff] }
0x116e   :  { %v4295_v51 = vpop.eup %4294 }
0x116f   :  { %v858_v53 = vadd.f32 1.0, %v4295_v51  ;;  %v49_v51 = vld [vmem:[%s5795_s0 + $0xc8] sm:$0xff] }
0x1171   :  { %4296 = vrcp.f32 %v858_v53  ;;  %v67_v53 = vpack.c.bf16 %v47_v48, %v46_v47 }
0x117b   :  { %v4297_v55 = vpop.eup %4296 }
0x117c   :  { %v862_v52 = vmul.f32 %v4297_v55, %v792_v36  ;;  %v41_v36 = vld [vmem:[%s5795_s0 + $0x88] sm:$0xff] }
0x117d   :  { %v64_v39 = vpack.c.bf16 %v41_v36, %v40_v35 }
0x117f   :  { %3949 = vmatprep.mubr.msk.bf16.mxu0 %vm82_vm1, %v64_v39 }
0x1180   :  { %3950 = vmatmul.mubr.msk.bf16.gmra.mrb[16].mxu0 %vm82_vm1, %v65_v45 }
0x1181   :  { %3953 = vmatprep.mubr.msk.bf16.mxu0 %vm82_vm1, %v66_v46 }
0x1188   :  { %3954 = vmatmul.mubr.msk.bf16.gmra.mrb[20].mxu0 %vm82_vm1, %v67_v53 }
0x11df   :  { %v865_v56 = vpop.permute.xlu0 %864 }
0x11e0   :  { %v867_v57 = vmul.f32 %v4297_v55, %v865_v56  ;;  %v50_v56 = vld [vmem:[%s5795_s0 + $0xd0] sm:$0xff] }
0x11e2   :  { %869 = vrot.lane.b32.xlu1 %v867_v57, %s4510_s18  ;;  %v51_v57 = vld [vmem:[%s5795_s0 + $0xd8] sm:$0xff] }
0x1254   :  { %v870_v58 = vpop.permute.xlu1 %869 }
0x1255   :  { %v872_v59 = vadd.f32 %v870_v58, %v862_v52  ;;  %v52_v52 = vld [vmem:[%s5795_s0 + $0xe0] sm:$0xff]  ;;  %v53_v58 = vld [vmem:[%s5795_s0 + $0xe8] sm:$0xff] }
0x1257   :  { %4298 = vtanh.f32 %v872_v59 }
0x1261   :  { %v4299_v60 = vpop.eup %4298 }
0x1262   :  { %875 = vrot.lane.b32.xlu0 %v4299_v60, %s4509_s17  ;;  %v70_v60 = vpack.c.bf16 %v53_v58, %v52_v52 }
0x12d4   :  { %v876_v62 = vpop.permute.xlu0 %875 }
0x12d5   :  { %v4731_v63 = vmul.f32 %v4297_v55, %v876_v62  ;;  %v68_v55 = vpack.c.bf16 %v49_v51, %v48_v49  ;;  %v54_v62 = vld [vmem:[%s5795_s0 + $0xf0] sm:$0xff] }
0x12d7   :  { %v887_v1 = vpack.c.bf16 %v4731_v63, %v4731_v63  ;;  %3957 = vmatprep.mubr.msk.bf16.mxu0 %vm82_vm1, %v68_v55 }
0x12d9   :  { %889 = vrot.lane.b32.xlu1 %v887_v1, %s4510_s18  ;;  %v55_v1 = vld [vmem:[%s5795_s0 + $0xf8] sm:$0xff] }
0x134b   :  { %v890_v2 = vpop.permute.xlu1 %889 }
0x134c   :  { %4026 = vmatmul.mubr.msk.bf16.vlgmr.msra.gmra.mrb[28].mxu1 %vm331_vm2, %v890_v2  ;;  %v71_v2 = vpack.c.bf16 %v55_v1, %v54_v62 }
0x134d   :  { %4038 = vmatpush3.bf16.msra.mxu1 %v4568_v8  ;;  %4041 = vmatprep.mubr.msk.bf16.mxu1 %vm4507_vm0, %v4506_v0 }
0x134e   :  { %4039 = vmatprep.subr.bf16.mxu1 %v4506_v0 }
0x1351   :  { %4040 = vmatpush3.bf16.msra.mxu1 %v4583_v15 }
0x1352   :  { %4053 = vmatprep.subr.bf16.mxu1 %v4506_v0 }
0x141f   :  { %v928_v4 = vpop.f32.mrb[28].mxu1 }
0x1420   :  { %v934_v5 = vadd.f32 %v928_v4, %v193_v3  ;;  %v4027_v6 = vpop.f32.mrb[29].mxu1 }
0x1421   :  { %v931_v7 = vpop.f32.mrb[30].mxu1  ;;  %v4842_v6 = vpop.f32.mrb[8].mxu0 }
0x1422   :  { %4300 = vtanh.f32 %v934_v5  ;;  %v4028_v9 = vpop.f32.mrb[31].mxu1  ;;  %v3762_v11 = vmul.f32 -1.442695, %v934_v5  ;;  %v197_v7 = vpop.f32.mrb[9].mxu0 }
0x1423   :  { %v4844_v9 = vpop.f32.mrb[10].mxu0 }
0x1424   :  { %4302 = vpow2.f32 %v3762_v11 }
0x142c   :  { %v4301_v10 = vpop.eup %4300 }
0x142d   :  { %944 = vrot.lane.b32.xlu0 %v4301_v10, %s4509_s17  ;;  %v4846_v10 = vpop.f32.mrb[11].mxu0 }
0x142e   :  { %v4303_v12 = vpop.eup %4302  ;;  %v4848_v11 = vpop.f32.mrb[12].mxu0 }
0x142f   :  { %v938_v13 = vadd.f32 1.0, %v4303_v12  ;;  %v4850_v12 = vpop.f32.mrb[13].mxu0 }
0x1431   :  { %4304 = vrcp.f32 %v938_v13  ;;  %v4852_v13 = vpop.f32.mrb[14].mxu0 }
0x143b   :  { %v4305_v16 = vpop.eup %4304 }
0x143c   :  { %v942_v54 = vmul.f32 %v4305_v16, %v872_v59  ;;  %v69_v59 = vpack.c.bf16 %v51_v57, %v50_v56 }
0x143e   :  { %3958 = vmatmul.mubr.msk.bf16.gmra.mrb[24].mxu0 %vm82_vm1, %v69_v59 }
0x143f   :  { %3961 = vmatprep.mubr.msk.bf16.mxu0 %vm82_vm1, %v70_v60 }
0x1446   :  { %3962 = vmatmul.mubr.msk.bf16.gmra.mrb[28].mxu0 %vm82_vm1, %v71_v2 }
0x1447   :  { %4033 = vmatprep.mubr.msk.bf16.mxu0 %vm4507_vm0, %v4506_v0 }
0x149f   :  { %v945_v18 = vpop.permute.xlu0 %944 }
0x14a0   :  { %v947_v19 = vmul.f32 %v4305_v16, %v945_v18 }
0x14a2   :  { %949 = vrot.lane.b32.xlu1 %v947_v19, %s4510_s18 }
0x1514   :  { %v950_v20 = vpop.permute.xlu1 %949 }
0x1515   :  { %v4747_v22 = vadd.f32 %v950_v20, %v942_v54 }
0x1517   :  { %4306 = vtanh.f32 %v4747_v22 }
0x1521   :  { %v4307_v37 = vpop.eup %4306 }
0x1522   :  { %955 = vrot.lane.b32.xlu0 %v4307_v37, %s4509_s17  ;;  %v198_v37 = vadd.f32 %v4604_v17, %v197_v7 }
0x1594   :  { %v956_v3 = vpop.permute.xlu0 %955 }
0x1595   :  { %v4837_v4 = vmul.f32 %v4305_v16, %v956_v3  ;;  %v4854_v16 = vpop.f32.mrb[15].mxu0 }
0x1596   :  { %v4856_v18 = vpop.f32.mrb[16].mxu0 }
0x1597   :  { %v967_v5 = vpack.c.bf16 %v4837_v4, %v4837_v4  ;;  %v4858_v19 = vpop.f32.mrb[17].mxu0 }
0x1598   :  { %v4860_v54 = vpop.f32.mrb[18].mxu0 }
0x1599   :  { %969 = vrot.lane.b32.xlu1 %v967_v5, %s4510_s18  ;;  %v4862_v20 = vpop.f32.mrb[19].mxu0 }
0x159a   :  { %v4864_v24 = vpop.f32.mrb[20].mxu0 }
0x159b   :  { %v4866_v25 = vpop.f32.mrb[21].mxu0 }
0x159c   :  { %v4868_v26 = vpop.f32.mrb[22].mxu0 }
0x159d   :  { %v4870_v28 = vpop.f32.mrb[23].mxu0 }
0x159e   :  { %v4877_v29 = vpop.f32.mrb[24].mxu0 }
0x159f   :  { %v4879_v30 = vpop.f32.mrb[25].mxu0 }
0x15a0   :  { %v4882_v31 = vpop.f32.mrb[26].mxu0 }
0x15a1   :  { %v4885_v32 = vpop.f32.mrb[27].mxu0 }
0x15a2   :  { %v4887_v33 = vpop.f32.mrb[28].mxu0 }
0x15a3   :  { %v4889_v34 = vpop.f32.mrb[29].mxu0 }
0x15a4   :  { %v4891_v35 = vpop.f32.mrb[30].mxu0 }
0x15a5   :  { %v4893_v36 = vpop.f32.mrb[31].mxu0 }
0x160b   :  { %v970_v27 = vpop.permute.xlu1 %969 }
0x160c   :  { %4034 = vmatmul.mubr.msk.bf16.vlgmr.msra.gmra.mrb[32].mxu0 %vm331_vm2, %v970_v27 }
0x160d   :  { %4046 = vmatpush3.bf16.msra.mxu0 %v4568_v8  ;;  %4049 = vmatprep.mubr.msk.bf16.mxu0 %vm4507_vm0, %v4506_v0 }
0x160e   :  { %4047 = vmatprep.subr.bf16.mxu0 %v4506_v0 }
0x1611   :  { %4048 = vmatpush3.bf16.msra.mxu0 %v4583_v15 }
0x1612   :  { %4061 = vmatprep.subr.bf16.mxu0 %v4506_v0 }
0x16df   :  { %v1008_v38 = vpop.f32.mrb[32].mxu0 }
0x16e0   :  { %v1014_v39 = vadd.f32 %v1008_v38, %v198_v37  ;;  %v4035_v41 = vpop.f32.mrb[33].mxu0 }
0x16e1   :  { %v1011_v42 = vpop.f32.mrb[34].mxu0 }
0x16e2   :  { %4308 = vtanh.f32 %v1014_v39  ;;  %v4036_v43 = vpop.f32.mrb[35].mxu0  ;;  %v3764_v45 = vmul.f32 -1.442695, %v1014_v39 }
0x16e4   :  { %4310 = vpow2.f32 %v3764_v45 }
0x16ec   :  { %v4309_v44 = vpop.eup %4308 }
0x16ed   :  { %1024 = vrot.lane.b32.xlu0 %v4309_v44, %s4509_s17 }
0x16ee   :  { %v4311_v46 = vpop.eup %4310 }
0x16ef   :  { %v1018_v47 = vadd.f32 1.0, %v4311_v46 }
0x16f1   :  { %4312 = vrcp.f32 %v1018_v47 }
0x16fb   :  { %v4313_v48 = vpop.eup %4312 }
0x16fc   :  { %v1022_v53 = vmul.f32 %v4313_v48, %v4747_v22  ;;  %v201_v22 = vadd.f32 %v4604_v17, %v4846_v10 }
0x175f   :  { %v1025_v49 = vpop.permute.xlu0 %1024 }
0x1760   :  { %v1027_v51 = vmul.f32 %v4313_v48, %v1025_v49 }
0x1762   :  { %1029 = vrot.lane.b32.xlu1 %v1027_v51, %s4510_s18  ;;  %v206_v51 = vadd.f32 %v4842_v6, %v4604_v17 }
0x17d4   :  { %v1030_v55 = vpop.permute.xlu1 %1029 }
0x17d5   :  { %v1032_v56 = vadd.f32 %v1030_v55, %v1022_v53 }
0x17d7   :  { %4314 = vtanh.f32 %v1032_v56 }
0x17e1   :  { %v4315_v57 = vpop.eup %4314 }
0x17e2   :  { %1035 = vrot.lane.b32.xlu0 %v4315_v57, %s4509_s17 }
0x1854   :  { %v1036_v52 = vpop.permute.xlu0 %1035 }
0x1855   :  { %v4900_v58 = vmul.f32 %v4313_v48, %v1036_v52 }
0x1857   :  { %v1047_v59 = vpack.c.bf16 %v4900_v58, %v4900_v58 }
0x1859   :  { %1049 = vrot.lane.b32.xlu1 %v1047_v59, %s4510_s18 }
0x18cb   :  { %v1050_v60 = vpop.permute.xlu1 %1049 }
0x18cc   :  { %4042 = vmatmul.mubr.msk.bf16.vlgmr.msra.gmra.mrb[32].mxu1 %vm331_vm2, %v1050_v60 }
0x18cd   :  { %4054 = vmatpush3.bf16.msra.mxu1 %v4568_v8  ;;  %4057 = vmatprep.mubr.msk.bf16.mxu1 %vm4507_vm0, %v4506_v0 }
0x18ce   :  { %4055 = vmatprep.subr.bf16.mxu1 %v4506_v0 }
0x18d1   :  { %4056 = vmatpush3.bf16.msra.mxu1 %v4583_v15 }
0x18d2   :  { %4069 = vmatprep.subr.bf16.mxu1 %v4506_v0 }
0x199f   :  { %v1088_v62 = vpop.f32.mrb[32].mxu1 }
0x19a0   :  { %v1094_v1 = vadd.f32 %v1088_v62, %v201_v22  ;;  %v4043_v2 = vpop.f32.mrb[33].mxu1 }
0x19a1   :  { %v1091_v3 = vpop.f32.mrb[34].mxu1 }
0x19a2   :  { %4316 = vtanh.f32 %v1094_v1  ;;  %v4044_v5 = vpop.f32.mrb[35].mxu1  ;;  %v3766_v27 = vmul.f32 -1.442695, %v1094_v1 }
0x19a4   :  { %4318 = vpow2.f32 %v3766_v27 }
0x19ac   :  { %v4317_v7 = vpop.eup %4316 }
0x19ad   :  { %1104 = vrot.lane.b32.xlu0 %v4317_v7, %s4509_s17 }
0x19ae   :  { %v4319_v37 = vpop.eup %4318 }
0x19af   :  { %v1098_v38 = vadd.f32 1.0, %v4319_v37 }
0x19b1   :  { %4320 = vrcp.f32 %v1098_v38 }
0x19bb   :  { %v4321_v39 = vpop.eup %4320 }
0x19bc   :  { %v1102_v10 = vmul.f32 %v4321_v39, %v1032_v56 }
0x1a1f   :  { %v1105_v41 = vpop.permute.xlu0 %1104 }
0x1a20   :  { %v1107_v42 = vmul.f32 %v4321_v39, %v1105_v41 }
0x1a22   :  { %1109 = vrot.lane.b32.xlu1 %v1107_v42, %s4510_s18  ;;  %v209_v42 = vadd.f32 %v4844_v9, %v4604_v17 }
0x1a94   :  { %v1110_v43 = vpop.permute.xlu1 %1109 }
0x1a95   :  { %v1112_v44 = vadd.f32 %v1110_v43, %v1102_v10 }
0x1a97   :  { %4322 = vtanh.f32 %v1112_v44 }
0x1aa1   :  { %v4323_v45 = vpop.eup %4322 }
0x1aa2   :  { %1115 = vrot.lane.b32.xlu0 %v4323_v45, %s4509_s17 }
0x1b14   :  { %v1116_v46 = vpop.permute.xlu0 %1115 }
0x1b15   :  { %v4917_v47 = vmul.f32 %v4321_v39, %v1116_v46 }
0x1b17   :  { %v1127_v48 = vpack.c.bf16 %v4917_v47, %v4917_v47 }
0x1b19   :  { %1129 = vrot.lane.b32.xlu1 %v1127_v48, %s4510_s18 }
0x1b8b   :  { %v1130_v49 = vpop.permute.xlu1 %1129 }
0x1b8c   :  { %4050 = vmatmul.mubr.msk.bf16.vlgmr.msra.gmra.mrb[36].mxu0 %vm331_vm2, %v1130_v49 }
0x1b8d   :  { %4062 = vmatpush3.bf16.msra.mxu0 %v4568_v8  ;;  %4065 = vmatprep.mubr.msk.bf16.mxu0 %vm4507_vm0, %v4506_v0 }
0x1b8e   :  { %4063 = vmatprep.subr.bf16.mxu0 %v4506_v0 }
0x1b91   :  { %4064 = vmatpush3.bf16.msra.mxu0 %v4583_v15 }
0x1b92   :  { %4077 = vmatprep.subr.bf16.mxu0 %v4506_v0 }
0x1c5f   :  { %v1168_v53 = vpop.f32.mrb[36].mxu0 }
0x1c60   :  { %v1174_v55 = vadd.f32 %v1168_v53, %v206_v51  ;;  %v4051_v56 = vpop.f32.mrb[37].mxu0 }
0x1c61   :  { %v1171_v57 = vpop.f32.mrb[38].mxu0 }
0x1c62   :  { %4324 = vtanh.f32 %v1174_v55  ;;  %v4052_v52 = vpop.f32.mrb[39].mxu0  ;;  %v3768_v60 = vmul.f32 -1.442695, %v1174_v55 }
0x1c64   :  { %4326 = vpow2.f32 %v3768_v60 }
0x1c6c   :  { %v4325_v59 = vpop.eup %4324 }
0x1c6d   :  { %1184 = vrot.lane.b32.xlu0 %v4325_v59, %s4509_s17 }
0x1c6e   :  { %v4327_v22 = vpop.eup %4326 }
0x1c6f   :  { %v1178_v62 = vadd.f32 1.0, %v4327_v22 }
0x1c71   :  { %4328 = vrcp.f32 %v1178_v62 }
0x1c7b   :  { %v4329_v1 = vpop.eup %4328 }
0x1c7c   :  { %v1182_v6 = vmul.f32 %v4329_v1, %v1112_v44 }
0x1cdf   :  { %v1185_v2 = vpop.permute.xlu0 %1184 }
0x1ce0   :  { %v1187_v3 = vmul.f32 %v4329_v1, %v1185_v2  ;;  %v4966_v2 = vld [vmem:[%s5796_s3] ss:$0 sm:$0xff] }
0x1ce2   :  { %1189 = vrot.lane.b32.xlu1 %v1187_v3, %s4510_s18  ;;  %v214_v3 = vadd.f32 %v4966_v2, %v4850_v12 }
0x1d54   :  { %v1190_v5 = vpop.permute.xlu1 %1189 }
0x1d55   :  { %v1192_v7 = vadd.f32 %v1190_v5, %v1182_v6 }
0x1d57   :  { %4330 = vtanh.f32 %v1192_v7 }
0x1d61   :  { %v4331_v27 = vpop.eup %4330 }
0x1d62   :  { %1195 = vrot.lane.b32.xlu0 %v4331_v27, %s4509_s17 }
0x1dd4   :  { %v1196_v37 = vpop.permute.xlu0 %1195 }
0x1dd5   :  { %v4934_v38 = vmul.f32 %v4329_v1, %v1196_v37 }
0x1dd7   :  { %v1207_v39 = vpack.c.bf16 %v4934_v38, %v4934_v38 }
0x1dd9   :  { %1209 = vrot.lane.b32.xlu1 %v1207_v39, %s4510_s18 }
0x1e4b   :  { %v1210_v41 = vpop.permute.xlu1 %1209 }
0x1e4c   :  { %4058 = vmatmul.mubr.msk.bf16.vlgmr.msra.gmra.mrb[36].mxu1 %vm331_vm2, %v1210_v41 }
0x1e4d   :  { %4070 = vmatpush3.bf16.msra.mxu1 %v4568_v8  ;;  %4073 = vmatprep.mubr.msk.bf16.mxu1 %vm4507_vm0, %v4506_v0 }
0x1e4e   :  { %4071 = vmatprep.subr.bf16.mxu1 %v4506_v0 }
0x1e51   :  { %4072 = vmatpush3.bf16.msra.mxu1 %v4583_v15 }
0x1e52   :  { %4085 = vmatprep.subr.bf16.mxu1 %v4506_v0 }
0x1f1f   :  { %v1248_v10 = vpop.f32.mrb[36].mxu1 }
0x1f20   :  { %v1254_v43 = vadd.f32 %v1248_v10, %v209_v42  ;;  %v4059_v44 = vpop.f32.mrb[37].mxu1 }
0x1f21   :  { %v1251_v45 = vpop.f32.mrb[38].mxu1 }
0x1f22   :  { %4332 = vtanh.f32 %v1254_v43  ;;  %v4060_v46 = vpop.f32.mrb[39].mxu1  ;;  %v3770_v49 = vmul.f32 -1.442695, %v1254_v43 }
0x1f24   :  { %4334 = vpow2.f32 %v3770_v49 }
0x1f2c   :  { %v4333_v48 = vpop.eup %4332 }
0x1f2d   :  { %1264 = vrot.lane.b32.xlu0 %v4333_v48, %s4509_s17 }
0x1f2e   :  { %v4335_v51 = vpop.eup %4334 }
0x1f2f   :  { %v1258_v53 = vadd.f32 1.0, %v4335_v51 }
0x1f31   :  { %4336 = vrcp.f32 %v1258_v53 }
0x1f3b   :  { %v4337_v55 = vpop.eup %4336 }
0x1f3c   :  { %v1262_v17 = vmul.f32 %v4337_v55, %v1192_v7 }
0x1f9f   :  { %v1265_v56 = vpop.permute.xlu0 %1264 }
0x1fa0   :  { %v1267_v57 = vmul.f32 %v4337_v55, %v1265_v56 }
0x1fa2   :  { %1269 = vrot.lane.b32.xlu1 %v1267_v57, %s4510_s18  ;;  %v217_v57 = vadd.f32 %v4966_v2, %v4854_v16 }
0x2014   :  { %v1270_v9 = vpop.permute.xlu1 %1269 }
0x2015   :  { %v1272_v52 = vadd.f32 %v1270_v9, %v1262_v17 }
0x2017   :  { %4338 = vtanh.f32 %v1272_v52 }
0x2021   :  { %v4339_v59 = vpop.eup %4338 }
0x2022   :  { %1275 = vrot.lane.b32.xlu0 %v4339_v59, %s4509_s17 }
0x2094   :  { %v1276_v60 = vpop.permute.xlu0 %1275 }
0x2095   :  { %v4951_v22 = vmul.f32 %v4337_v55, %v1276_v60 }
0x2097   :  { %v1287_v62 = vpack.c.bf16 %v4951_v22, %v4951_v22 }
0x2099   :  { %1289 = vrot.lane.b32.xlu1 %v1287_v62, %s4510_s18 }
0x210b   :  { %v1290_v1 = vpop.permute.xlu1 %1289 }
0x210c   :  { %4066 = vmatmul.mubr.msk.bf16.vlgmr.msra.gmra.mrb[40].mxu0 %vm331_vm2, %v1290_v1 }
0x210d   :  { %4078 = vmatpush3.bf16.msra.mxu0 %v4568_v8  ;;  %4081 = vmatprep.mubr.msk.bf16.mxu0 %vm4507_vm0, %v4506_v0 }
0x210e   :  { %4079 = vmatprep.subr.bf16.mxu0 %v4506_v0 }
0x2111   :  { %4080 = vmatpush3.bf16.msra.mxu0 %v4583_v15 }
0x2112   :  { %4093 = vmatprep.subr.bf16.mxu0 %v4506_v0 }
0x21df   :  { %v1328_v6 = vpop.f32.mrb[40].mxu0 }
0x21e0   :  { %v1334_v5 = vadd.f32 %v1328_v6, %v214_v3  ;;  %v4067_v7 = vpop.f32.mrb[41].mxu0 }
0x21e1   :  { %v1331_v27 = vpop.f32.mrb[42].mxu0 }
0x21e2   :  { %4340 = vtanh.f32 %v1334_v5  ;;  %v4068_v37 = vpop.f32.mrb[43].mxu0  ;;  %v3772_v41 = vmul.f32 -1.442695, %v1334_v5 }
0x21e4   :  { %4342 = vpow2.f32 %v3772_v41 }
0x21ec   :  { %v4341_v39 = vpop.eup %4340 }
0x21ed   :  { %1344 = vrot.lane.b32.xlu0 %v4341_v39, %s4509_s17 }
0x21ee   :  { %v4343_v42 = vpop.eup %4342 }
0x21ef   :  { %v1338_v10 = vadd.f32 1.0, %v4343_v42 }
0x21f1   :  { %4344 = vrcp.f32 %v1338_v10 }
0x21fb   :  { %v4345_v43 = vpop.eup %4344 }
0x21fc   :  { %v1342_v12 = vmul.f32 %v4345_v43, %v1272_v52 }
0x225f   :  { %v1345_v44 = vpop.permute.xlu0 %1344 }
0x2260   :  { %v1347_v45 = vmul.f32 %v4345_v43, %v1345_v44 }
0x2262   :  { %1349 = vrot.lane.b32.xlu1 %v1347_v45, %s4510_s18  ;;  %v222_v45 = vadd.f32 %v4966_v2, %v4848_v11 }
0x22d4   :  { %v1350_v46 = vpop.permute.xlu1 %1349 }
0x22d5   :  { %v1352_v48 = vadd.f32 %v1350_v46, %v1342_v12 }
0x22d7   :  { %4346 = vtanh.f32 %v1352_v48 }
0x22e1   :  { %v4347_v49 = vpop.eup %4346 }
0x22e2   :  { %1355 = vrot.lane.b32.xlu0 %v4347_v49, %s4509_s17 }
0x2354   :  { %v1356_v51 = vpop.permute.xlu0 %1355 }
0x2355   :  { %v4973_v53 = vmul.f32 %v4345_v43, %v1356_v51 }
0x2357   :  { %v1367_v55 = vpack.c.bf16 %v4973_v53, %v4973_v53 }
0x2359   :  { %1369 = vrot.lane.b32.xlu1 %v1367_v55, %s4510_s18 }
0x23cb   :  { %v1370_v56 = vpop.permute.xlu1 %1369 }
0x23cc   :  { %4074 = vmatmul.mubr.msk.bf16.vlgmr.msra.gmra.mrb[40].mxu1 %vm331_vm2, %v1370_v56 }
0x23cd   :  { %4086 = vmatpush3.bf16.msra.mxu1 %v4568_v8  ;;  %4089 = vmatprep.mubr.msk.bf16.mxu1 %vm4507_vm0, %v4506_v0 }
0x23ce   :  { %4087 = vmatprep.subr.bf16.mxu1 %v4506_v0 }
0x23d1   :  { %4088 = vmatpush3.bf16.msra.mxu1 %v4583_v15 }
0x23d2   :  { %4101 = vmatprep.subr.bf16.mxu1 %v4506_v0 }
0x249f   :  { %v1408_v17 = vpop.f32.mrb[40].mxu1 }
0x24a0   :  { %v1414_v9 = vadd.f32 %v1408_v17, %v217_v57  ;;  %v4075_v52 = vpop.f32.mrb[41].mxu1 }
0x24a1   :  { %v1411_v59 = vpop.f32.mrb[42].mxu1 }
0x24a2   :  { %4348 = vtanh.f32 %v1414_v9  ;;  %v4076_v60 = vpop.f32.mrb[43].mxu1  ;;  %v3774_v1 = vmul.f32 -1.442695, %v1414_v9 }
0x24a4   :  { %4350 = vpow2.f32 %v3774_v1 }
0x24ac   :  { %v4349_v62 = vpop.eup %4348 }
0x24ad   :  { %1424 = vrot.lane.b32.xlu0 %v4349_v62, %s4509_s17 }
0x24ae   :  { %v4351_v3 = vpop.eup %4350 }
0x24af   :  { %v1418_v6 = vadd.f32 1.0, %v4351_v3 }
0x24b1   :  { %4352 = vrcp.f32 %v1418_v6 }
0x24bb   :  { %v4353_v5 = vpop.eup %4352 }
0x24bc   :  { %v1422_v16 = vmul.f32 %v4353_v5, %v1352_v48 }
0x251f   :  { %v1425_v7 = vpop.permute.xlu0 %1424 }
0x2520   :  { %v1427_v27 = vmul.f32 %v4353_v5, %v1425_v7 }
0x2522   :  { %1429 = vrot.lane.b32.xlu1 %v1427_v27, %s4510_s18  ;;  %v225_v27 = vadd.f32 %v4966_v2, %v4852_v13 }
0x2594   :  { %v1430_v37 = vpop.permute.xlu1 %1429 }
0x2595   :  { %v1432_v39 = vadd.f32 %v1430_v37, %v1422_v16 }
0x2597   :  { %4354 = vtanh.f32 %v1432_v39 }
0x25a1   :  { %v4355_v41 = vpop.eup %4354 }
0x25a2   :  { %1435 = vrot.lane.b32.xlu0 %v4355_v41, %s4509_s17 }
0x2614   :  { %v1436_v42 = vpop.permute.xlu0 %1435 }
0x2615   :  { %v4990_v10 = vmul.f32 %v4353_v5, %v1436_v42 }
0x2617   :  { %v1447_v43 = vpack.c.bf16 %v4990_v10, %v4990_v10 }
0x2619   :  { %1449 = vrot.lane.b32.xlu1 %v1447_v43, %s4510_s18 }
0x268b   :  { %v1450_v44 = vpop.permute.xlu1 %1449 }
0x268c   :  { %4082 = vmatmul.mubr.msk.bf16.vlgmr.msra.gmra.mrb[44].mxu0 %vm331_vm2, %v1450_v44 }
0x268d   :  { %4094 = vmatpush3.bf16.msra.mxu0 %v4568_v8  ;;  %4097 = vmatprep.mubr.msk.bf16.mxu0 %vm4507_vm0, %v4506_v0 }
0x268e   :  { %4095 = vmatprep.subr.bf16.mxu0 %v4506_v0 }
0x2691   :  { %4096 = vmatpush3.bf16.msra.mxu0 %v4583_v15 }
0x2692   :  { %4109 = vmatprep.subr.bf16.mxu0 %v4506_v0 }
0x275f   :  { %v1488_v12 = vpop.f32.mrb[44].mxu0 }
0x2760   :  { %v1494_v46 = vadd.f32 %v1488_v12, %v222_v45  ;;  %v4083_v48 = vpop.f32.mrb[45].mxu0 }
0x2761   :  { %v1491_v49 = vpop.f32.mrb[46].mxu0 }
0x2762   :  { %4356 = vtanh.f32 %v1494_v46  ;;  %v4084_v51 = vpop.f32.mrb[47].mxu0  ;;  %v3776_v56 = vmul.f32 -1.442695, %v1494_v46 }
0x2764   :  { %4358 = vpow2.f32 %v3776_v56 }
0x276c   :  { %v4357_v55 = vpop.eup %4356 }
0x276d   :  { %1504 = vrot.lane.b32.xlu0 %v4357_v55, %s4509_s17 }
0x276e   :  { %v4359_v57 = vpop.eup %4358 }
0x276f   :  { %v1498_v17 = vadd.f32 1.0, %v4359_v57 }
0x2771   :  { %4360 = vrcp.f32 %v1498_v17 }
0x277b   :  { %v4361_v9 = vpop.eup %4360 }
0x277c   :  { %v1502_v11 = vmul.f32 %v4361_v9, %v1432_v39 }
0x27df   :  { %v1505_v52 = vpop.permute.xlu0 %1504 }
0x27e0   :  { %v1507_v59 = vmul.f32 %v4361_v9, %v1505_v52 }
0x27e2   :  { %1509 = vrot.lane.b32.xlu1 %v1507_v59, %s4510_s18  ;;  %v230_v59 = vadd.f32 %v4966_v2, %v4858_v19 }
0x2854   :  { %v1510_v60 = vpop.permute.xlu1 %1509 }
0x2855   :  { %v1512_v62 = vadd.f32 %v1510_v60, %v1502_v11 }
0x2857   :  { %4362 = vtanh.f32 %v1512_v62 }
0x2861   :  { %v4363_v1 = vpop.eup %4362 }
0x2862   :  { %1515 = vrot.lane.b32.xlu0 %v4363_v1, %s4509_s17 }
0x28d4   :  { %v1516_v3 = vpop.permute.xlu0 %1515 }
0x28d5   :  { %v5007_v6 = vmul.f32 %v4361_v9, %v1516_v3 }
0x28d7   :  { %v1527_v5 = vpack.c.bf16 %v5007_v6, %v5007_v6 }
0x28d9   :  { %1529 = vrot.lane.b32.xlu1 %v1527_v5, %s4510_s18 }
0x294b   :  { %v1530_v7 = vpop.permute.xlu1 %1529 }
0x294c   :  { %4090 = vmatmul.mubr.msk.bf16.vlgmr.msra.gmra.mrb[44].mxu1 %vm331_vm2, %v1530_v7 }
0x294d   :  { %4102 = vmatpush3.bf16.msra.mxu1 %v4568_v8  ;;  %4105 = vmatprep.mubr.msk.bf16.mxu1 %vm4507_vm0, %v4506_v0 }
0x294e   :  { %4103 = vmatprep.subr.bf16.mxu1 %v4506_v0 }
0x2951   :  { %4104 = vmatpush3.bf16.msra.mxu1 %v4583_v15 }
0x2952   :  { %4117 = vmatprep.subr.bf16.mxu1 %v4506_v0 }
0x2a1f   :  { %v1568_v16 = vpop.f32.mrb[44].mxu1 }
0x2a20   :  { %v1574_v37 = vadd.f32 %v1568_v16, %v225_v27  ;;  %v4091_v39 = vpop.f32.mrb[45].mxu1 }
0x2a21   :  { %v1571_v41 = vpop.f32.mrb[46].mxu1 }
0x2a22   :  { %4364 = vtanh.f32 %v1574_v37  ;;  %v4092_v42 = vpop.f32.mrb[47].mxu1  ;;  %v3778_v44 = vmul.f32 -1.442695, %v1574_v37 }
0x2a24   :  { %4366 = vpow2.f32 %v3778_v44 }
0x2a2c   :  { %v4365_v43 = vpop.eup %4364 }
0x2a2d   :  { %1584 = vrot.lane.b32.xlu0 %v4365_v43, %s4509_s17 }
0x2a2e   :  { %v4367_v45 = vpop.eup %4366 }
0x2a2f   :  { %v1578_v12 = vadd.f32 1.0, %v4367_v45 }
0x2a31   :  { %4368 = vrcp.f32 %v1578_v12 }
0x2a3b   :  { %v4369_v46 = vpop.eup %4368 }
0x2a3c   :  { %v1582_v13 = vmul.f32 %v4369_v46, %v1512_v62 }
0x2a9f   :  { %v1585_v48 = vpop.permute.xlu0 %1584 }
0x2aa0   :  { %v1587_v49 = vmul.f32 %v4369_v46, %v1585_v48 }
0x2aa2   :  { %1589 = vrot.lane.b32.xlu1 %v1587_v49, %s4510_s18  ;;  %v233_v49 = vadd.f32 %v4966_v2, %v4862_v20 }
0x2b14   :  { %v1590_v51 = vpop.permute.xlu1 %1589 }
0x2b15   :  { %v1592_v55 = vadd.f32 %v1590_v51, %v1582_v13 }
0x2b17   :  { %4370 = vtanh.f32 %v1592_v55 }
0x2b21   :  { %v4371_v56 = vpop.eup %4370 }
0x2b22   :  { %1595 = vrot.lane.b32.xlu0 %v4371_v56, %s4509_s17 }
0x2b94   :  { %v1596_v57 = vpop.permute.xlu0 %1595 }
0x2b95   :  { %v5024_v17 = vmul.f32 %v4369_v46, %v1596_v57 }
0x2b97   :  { %v1607_v9 = vpack.c.bf16 %v5024_v17, %v5024_v17 }
0x2b99   :  { %1609 = vrot.lane.b32.xlu1 %v1607_v9, %s4510_s18 }
0x2c0b   :  { %v1610_v52 = vpop.permute.xlu1 %1609 }
0x2c0c   :  { %4098 = vmatmul.mubr.msk.bf16.vlgmr.msra.gmra.mrb[48].mxu0 %vm331_vm2, %v1610_v52 }
0x2c0d   :  { %4110 = vmatpush3.bf16.msra.mxu0 %v4568_v8  ;;  %4113 = vmatprep.mubr.msk.bf16.mxu0 %vm4507_vm0, %v4506_v0 }
0x2c0e   :  { %4111 = vmatprep.subr.bf16.mxu0 %v4506_v0 }
0x2c11   :  { %4112 = vmatpush3.bf16.msra.mxu0 %v4583_v15 }
0x2c12   :  { %4125 = vmatprep.subr.bf16.mxu0 %v4506_v0 }
0x2cdf   :  { %v1648_v11 = vpop.f32.mrb[48].mxu0 }
0x2ce0   :  { %v1654_v60 = vadd.f32 %v1648_v11, %v230_v59  ;;  %v4099_v62 = vpop.f32.mrb[49].mxu0 }
0x2ce1   :  { %v1651_v1 = vpop.f32.mrb[50].mxu0 }
0x2ce2   :  { %4372 = vtanh.f32 %v1654_v60  ;;  %v4100_v3 = vpop.f32.mrb[51].mxu0  ;;  %v3780_v7 = vmul.f32 -1.442695, %v1654_v60 }
0x2ce4   :  { %4374 = vpow2.f32 %v3780_v7 }
0x2cec   :  { %v4373_v5 = vpop.eup %4372 }
0x2ced   :  { %1664 = vrot.lane.b32.xlu0 %v4373_v5, %s4509_s17 }
0x2cee   :  { %v4375_v27 = vpop.eup %4374 }
0x2cef   :  { %v1658_v16 = vadd.f32 1.0, %v4375_v27 }
0x2cf1   :  { %4376 = vrcp.f32 %v1658_v16 }
0x2cfb   :  { %v4377_v37 = vpop.eup %4376 }
0x2cfc   :  { %v1662_v19 = vmul.f32 %v4377_v37, %v1592_v55 }
0x2d5f   :  { %v1665_v39 = vpop.permute.xlu0 %1664 }
0x2d60   :  { %v1667_v41 = vmul.f32 %v4377_v37, %v1665_v39 }
0x2d62   :  { %1669 = vrot.lane.b32.xlu1 %v1667_v41, %s4510_s18  ;;  %v238_v41 = vadd.f32 %v4966_v2, %v4856_v18 }
0x2dd4   :  { %v1670_v42 = vpop.permute.xlu1 %1669 }
0x2dd5   :  { %v1672_v43 = vadd.f32 %v1670_v42, %v1662_v19 }
0x2dd7   :  { %4378 = vtanh.f32 %v1672_v43 }
0x2de1   :  { %v4379_v44 = vpop.eup %4378 }
0x2de2   :  { %1675 = vrot.lane.b32.xlu0 %v4379_v44, %s4509_s17 }
0x2e54   :  { %v1676_v45 = vpop.permute.xlu0 %1675 }
0x2e55   :  { %v5041_v12 = vmul.f32 %v4377_v37, %v1676_v45 }
0x2e57   :  { %v1687_v46 = vpack.c.bf16 %v5041_v12, %v5041_v12 }
0x2e59   :  { %1689 = vrot.lane.b32.xlu1 %v1687_v46, %s4510_s18 }
0x2ecb   :  { %v1690_v48 = vpop.permute.xlu1 %1689 }
0x2ecc   :  { %4106 = vmatmul.mubr.msk.bf16.vlgmr.msra.gmra.mrb[48].mxu1 %vm331_vm2, %v1690_v48 }
0x2ecd   :  { %4118 = vmatpush3.bf16.msra.mxu1 %v4568_v8  ;;  %4121 = vmatprep.mubr.msk.bf16.mxu1 %vm4507_vm0, %v4506_v0 }
0x2ece   :  { %4119 = vmatprep.subr.bf16.mxu1 %v4506_v0 }
0x2ed1   :  { %4120 = vmatpush3.bf16.msra.mxu1 %v4583_v15 }
0x2ed2   :  { %4133 = vmatprep.subr.bf16.mxu1 %v4506_v0 }
0x2f9f   :  { %v1728_v13 = vpop.f32.mrb[48].mxu1 }
0x2fa0   :  { %v1734_v51 = vadd.f32 %v1728_v13, %v233_v49  ;;  %v4107_v55 = vpop.f32.mrb[49].mxu1 }
0x2fa1   :  { %v1731_v56 = vpop.f32.mrb[50].mxu1 }
0x2fa2   :  { %4380 = vtanh.f32 %v1734_v51  ;;  %v4108_v57 = vpop.f32.mrb[51].mxu1  ;;  %v3782_v52 = vmul.f32 -1.442695, %v1734_v51 }
0x2fa4   :  { %4382 = vpow2.f32 %v3782_v52 }
0x2fac   :  { %v4381_v9 = vpop.eup %4380 }
0x2fad   :  { %1744 = vrot.lane.b32.xlu0 %v4381_v9, %s4509_s17 }
0x2fae   :  { %v4383_v59 = vpop.eup %4382 }
0x2faf   :  { %v1738_v11 = vadd.f32 1.0, %v4383_v59 }
0x2fb1   :  { %4384 = vrcp.f32 %v1738_v11 }
0x2fbb   :  { %v4385_v60 = vpop.eup %4384 }
0x2fbc   :  { %v1742_v20 = vmul.f32 %v4385_v60, %v1672_v43 }
0x301f   :  { %v1745_v62 = vpop.permute.xlu0 %1744 }
0x3020   :  { %v1747_v1 = vmul.f32 %v4385_v60, %v1745_v62 }
0x3022   :  { %1749 = vrot.lane.b32.xlu1 %v1747_v1, %s4510_s18  ;;  %v241_v1 = vadd.f32 %v4966_v2, %v4860_v54 }
0x3094   :  { %v1750_v3 = vpop.permute.xlu1 %1749 }
0x3095   :  { %v1752_v5 = vadd.f32 %v1750_v3, %v1742_v20 }
0x3097   :  { %4386 = vtanh.f32 %v1752_v5 }
0x30a1   :  { %v4387_v7 = vpop.eup %4386 }
0x30a2   :  { %1755 = vrot.lane.b32.xlu0 %v4387_v7, %s4509_s17 }
0x3114   :  { %v1756_v27 = vpop.permute.xlu0 %1755 }
0x3115   :  { %v5058_v16 = vmul.f32 %v4385_v60, %v1756_v27 }
0x3117   :  { %v1767_v37 = vpack.c.bf16 %v5058_v16, %v5058_v16 }
0x3119   :  { %1769 = vrot.lane.b32.xlu1 %v1767_v37, %s4510_s18 }
0x318b   :  { %v1770_v39 = vpop.permute.xlu1 %1769 }
0x318c   :  { %4114 = vmatmul.mubr.msk.bf16.vlgmr.msra.gmra.mrb[52].mxu0 %vm331_vm2, %v1770_v39 }
0x318d   :  { %4126 = vmatpush3.bf16.msra.mxu0 %v4568_v8  ;;  %4129 = vmatprep.mubr.msk.bf16.mxu0 %vm4507_vm0, %v4506_v0 }
0x318e   :  { %4127 = vmatprep.subr.bf16.mxu0 %v4506_v0 }
0x3191   :  { %4128 = vmatpush3.bf16.msra.mxu0 %v4583_v15 }
0x3192   :  { %4141 = vmatprep.subr.bf16.mxu0 %v4506_v0 }
0x325f   :  { %v1808_v19 = vpop.f32.mrb[52].mxu0 }
0x3260   :  { %v1814_v42 = vadd.f32 %v1808_v19, %v238_v41  ;;  %v4115_v43 = vpop.f32.mrb[53].mxu0 }
0x3261   :  { %v1811_v44 = vpop.f32.mrb[54].mxu0 }
0x3262   :  { %4388 = vtanh.f32 %v1814_v42  ;;  %v4116_v45 = vpop.f32.mrb[55].mxu0  ;;  %v3784_v48 = vmul.f32 -1.442695, %v1814_v42 }
0x3264   :  { %4390 = vpow2.f32 %v3784_v48 }
0x326c   :  { %v4389_v46 = vpop.eup %4388 }
0x326d   :  { %1824 = vrot.lane.b32.xlu0 %v4389_v46, %s4509_s17 }
0x326e   :  { %v4391_v49 = vpop.eup %4390 }
0x326f   :  { %v1818_v13 = vadd.f32 1.0, %v4391_v49 }
0x3271   :  { %4392 = vrcp.f32 %v1818_v13 }
0x327b   :  { %v4393_v51 = vpop.eup %4392 }
0x327c   :  { %v1822_v18 = vmul.f32 %v4393_v51, %v1752_v5 }
0x32df   :  { %v1825_v55 = vpop.permute.xlu0 %1824 }
0x32e0   :  { %v1827_v56 = vmul.f32 %v4393_v51, %v1825_v55 }
0x32e2   :  { %1829 = vrot.lane.b32.xlu1 %v1827_v56, %s4510_s18  ;;  %v246_v56 = vadd.f32 %v4966_v2, %v4866_v25 }
0x3354   :  { %v1830_v57 = vpop.permute.xlu1 %1829 }
0x3355   :  { %v1832_v9 = vadd.f32 %v1830_v57, %v1822_v18 }
0x3357   :  { %4394 = vtanh.f32 %v1832_v9 }
0x3361   :  { %v4395_v52 = vpop.eup %4394 }
0x3362   :  { %1835 = vrot.lane.b32.xlu0 %v4395_v52, %s4509_s17 }
0x33d4   :  { %v1836_v59 = vpop.permute.xlu0 %1835 }
0x33d5   :  { %v5075_v11 = vmul.f32 %v4393_v51, %v1836_v59 }
0x33d7   :  { %v1847_v60 = vpack.c.bf16 %v5075_v11, %v5075_v11 }
0x33d9   :  { %1849 = vrot.lane.b32.xlu1 %v1847_v60, %s4510_s18 }
0x344b   :  { %v1850_v62 = vpop.permute.xlu1 %1849 }
0x344c   :  { %4122 = vmatmul.mubr.msk.bf16.vlgmr.msra.gmra.mrb[52].mxu1 %vm331_vm2, %v1850_v62 }
0x344d   :  { %4134 = vmatpush3.bf16.msra.mxu1 %v4568_v8  ;;  %4137 = vmatprep.mubr.msk.bf16.mxu1 %vm4507_vm0, %v4506_v0 }
0x344e   :  { %4135 = vmatprep.subr.bf16.mxu1 %v4506_v0 }
0x3451   :  { %4136 = vmatpush3.bf16.msra.mxu1 %v4583_v15 }
0x3452   :  { %4149 = vmatprep.subr.bf16.mxu1 %v4506_v0 }
0x351f   :  { %v1888_v20 = vpop.f32.mrb[52].mxu1 }
0x3520   :  { %v1894_v3 = vadd.f32 %v1888_v20, %v241_v1  ;;  %v4123_v5 = vpop.f32.mrb[53].mxu1 }
0x3521   :  { %v1891_v7 = vpop.f32.mrb[54].mxu1 }
0x3522   :  { %4396 = vtanh.f32 %v1894_v3  ;;  %v4124_v27 = vpop.f32.mrb[55].mxu1  ;;  %v3786_v39 = vmul.f32 -1.442695, %v1894_v3 }
0x3524   :  { %4398 = vpow2.f32 %v3786_v39 }
0x352c   :  { %v4397_v37 = vpop.eup %4396 }
0x352d   :  { %1904 = vrot.lane.b32.xlu0 %v4397_v37, %s4509_s17 }
0x352e   :  { %v4399_v41 = vpop.eup %4398 }
0x352f   :  { %v1898_v19 = vadd.f32 1.0, %v4399_v41 }
0x3531   :  { %4400 = vrcp.f32 %v1898_v19 }
0x353b   :  { %v4401_v42 = vpop.eup %4400 }
0x353c   :  { %v1902_v54 = vmul.f32 %v4401_v42, %v1832_v9 }
0x359f   :  { %v1905_v43 = vpop.permute.xlu0 %1904 }
0x35a0   :  { %v1907_v44 = vmul.f32 %v4401_v42, %v1905_v43 }
0x35a2   :  { %1909 = vrot.lane.b32.xlu1 %v1907_v44, %s4510_s18  ;;  %v249_v44 = vadd.f32 %v4966_v2, %v4870_v28 }
0x3614   :  { %v1910_v45 = vpop.permute.xlu1 %1909 }
0x3615   :  { %v1912_v46 = vadd.f32 %v1910_v45, %v1902_v54 }
0x3617   :  { %4402 = vtanh.f32 %v1912_v46 }
0x3621   :  { %v4403_v48 = vpop.eup %4402 }
0x3622   :  { %1915 = vrot.lane.b32.xlu0 %v4403_v48, %s4509_s17 }
0x3694   :  { %v1916_v49 = vpop.permute.xlu0 %1915 }
0x3695   :  { %v5092_v13 = vmul.f32 %v4401_v42, %v1916_v49 }
0x3697   :  { %v1927_v51 = vpack.c.bf16 %v5092_v13, %v5092_v13 }
0x3699   :  { %1929 = vrot.lane.b32.xlu1 %v1927_v51, %s4510_s18 }
0x370b   :  { %v1930_v55 = vpop.permute.xlu1 %1929 }
0x370c   :  { %4130 = vmatmul.mubr.msk.bf16.vlgmr.msra.gmra.mrb[56].mxu0 %vm331_vm2, %v1930_v55 }
0x370d   :  { %4142 = vmatpush3.bf16.msra.mxu0 %v4568_v8  ;;  %4145 = vmatprep.mubr.msk.bf16.mxu0 %vm4507_vm0, %v4506_v0 }
0x370e   :  { %4143 = vmatprep.subr.bf16.mxu0 %v4506_v0 }
0x3711   :  { %4144 = vmatpush3.bf16.msra.mxu0 %v4583_v15 }
0x3712   :  { %4157 = vmatprep.subr.bf16.mxu0 %v4506_v0 }
0x37df   :  { %v1968_v18 = vpop.f32.mrb[56].mxu0 }
0x37e0   :  { %v1974_v57 = vadd.f32 %v1968_v18, %v246_v56  ;;  %v4131_v9 = vpop.f32.mrb[57].mxu0 }
0x37e1   :  { %v1971_v52 = vpop.f32.mrb[58].mxu0 }
0x37e2   :  { %4404 = vtanh.f32 %v1974_v57  ;;  %v4132_v59 = vpop.f32.mrb[59].mxu0  ;;  %v3788_v62 = vmul.f32 -1.442695, %v1974_v57 }
0x37e4   :  { %4406 = vpow2.f32 %v3788_v62 }
0x37ec   :  { %v4405_v60 = vpop.eup %4404 }
0x37ed   :  { %1984 = vrot.lane.b32.xlu0 %v4405_v60, %s4509_s17 }
0x37ee   :  { %v4407_v1 = vpop.eup %4406 }
0x37ef   :  { %v1978_v20 = vadd.f32 1.0, %v4407_v1 }
0x37f1   :  { %4408 = vrcp.f32 %v1978_v20 }
0x37fb   :  { %v4409_v3 = vpop.eup %4408 }
0x37fc   :  { %v1982_v25 = vmul.f32 %v4409_v3, %v1912_v46 }
0x385f   :  { %v1985_v5 = vpop.permute.xlu0 %1984 }
0x3860   :  { %v1987_v7 = vmul.f32 %v4409_v3, %v1985_v5 }
0x3862   :  { %1989 = vrot.lane.b32.xlu1 %v1987_v7, %s4510_s18  ;;  %v254_v7 = vadd.f32 %v4966_v2, %v4864_v24 }
0x38d4   :  { %v1990_v27 = vpop.permute.xlu1 %1989 }
0x38d5   :  { %v1992_v37 = vadd.f32 %v1990_v27, %v1982_v25 }
0x38d7   :  { %4410 = vtanh.f32 %v1992_v37 }
0x38e1   :  { %v4411_v39 = vpop.eup %4410 }
0x38e2   :  { %1995 = vrot.lane.b32.xlu0 %v4411_v39, %s4509_s17 }
0x3954   :  { %v1996_v41 = vpop.permute.xlu0 %1995 }
0x3955   :  { %v5109_v19 = vmul.f32 %v4409_v3, %v1996_v41 }
0x3957   :  { %v2007_v42 = vpack.c.bf16 %v5109_v19, %v5109_v19 }
0x3959   :  { %2009 = vrot.lane.b32.xlu1 %v2007_v42, %s4510_s18 }
0x39cb   :  { %v2010_v43 = vpop.permute.xlu1 %2009 }
0x39cc   :  { %4138 = vmatmul.mubr.msk.bf16.vlgmr.msra.gmra.mrb[56].mxu1 %vm331_vm2, %v2010_v43 }
0x39cd   :  { %4150 = vmatpush3.bf16.msra.mxu1 %v4568_v8  ;;  %4153 = vmatprep.mubr.msk.bf16.mxu1 %vm4507_vm0, %v4506_v0 }
0x39ce   :  { %4151 = vmatprep.subr.bf16.mxu1 %v4506_v0 }
0x39d1   :  { %4152 = vmatpush3.bf16.msra.mxu1 %v4583_v15 }
0x39d2   :  { %4165 = vmatprep.subr.bf16.mxu1 %v4506_v0 }
0x3a9f   :  { %v2048_v54 = vpop.f32.mrb[56].mxu1 }
0x3aa0   :  { %v2054_v45 = vadd.f32 %v2048_v54, %v249_v44  ;;  %v4139_v46 = vpop.f32.mrb[57].mxu1 }
0x3aa1   :  { %v2051_v48 = vpop.f32.mrb[58].mxu1 }
0x3aa2   :  { %4412 = vtanh.f32 %v2054_v45  ;;  %v4140_v49 = vpop.f32.mrb[59].mxu1  ;;  %v3790_v55 = vmul.f32 -1.442695, %v2054_v45 }
0x3aa4   :  { %4414 = vpow2.f32 %v3790_v55 }
0x3aac   :  { %v4413_v51 = vpop.eup %4412 }
0x3aad   :  { %2064 = vrot.lane.b32.xlu0 %v4413_v51, %s4509_s17 }
0x3aae   :  { %v4415_v56 = vpop.eup %4414 }
0x3aaf   :  { %v2058_v18 = vadd.f32 1.0, %v4415_v56 }
0x3ab1   :  { %4416 = vrcp.f32 %v2058_v18 }
0x3abb   :  { %v4417_v57 = vpop.eup %4416 }
0x3abc   :  { %v2062_v28 = vmul.f32 %v4417_v57, %v1992_v37 }
0x3b1f   :  { %v2065_v9 = vpop.permute.xlu0 %2064 }
0x3b20   :  { %v2067_v52 = vmul.f32 %v4417_v57, %v2065_v9 }
0x3b22   :  { %2069 = vrot.lane.b32.xlu1 %v2067_v52, %s4510_s18  ;;  %v257_v52 = vadd.f32 %v4966_v2, %v4868_v26 }
0x3b94   :  { %v2070_v59 = vpop.permute.xlu1 %2069 }
0x3b95   :  { %v2072_v60 = vadd.f32 %v2070_v59, %v2062_v28 }
0x3b97   :  { %4418 = vtanh.f32 %v2072_v60 }
0x3ba1   :  { %v4419_v62 = vpop.eup %4418 }
0x3ba2   :  { %2075 = vrot.lane.b32.xlu0 %v4419_v62, %s4509_s17 }
0x3c14   :  { %v2076_v1 = vpop.permute.xlu0 %2075 }
0x3c15   :  { %v5126_v20 = vmul.f32 %v4417_v57, %v2076_v1 }
0x3c17   :  { %v2087_v3 = vpack.c.bf16 %v5126_v20, %v5126_v20 }
0x3c19   :  { %2089 = vrot.lane.b32.xlu1 %v2087_v3, %s4510_s18 }
0x3c8b   :  { %v2090_v5 = vpop.permute.xlu1 %2089 }
0x3c8c   :  { %4146 = vmatmul.mubr.msk.bf16.vlgmr.msra.gmra.mrb[60].mxu0 %vm331_vm2, %v2090_v5 }
0x3c8d   :  { %4158 = vmatpush3.bf16.msra.mxu0 %v4568_v8  ;;  %4161 = vmatprep.mubr.msk.bf16.mxu0 %vm4507_vm0, %v4506_v0 }
0x3c8e   :  { %4159 = vmatprep.subr.bf16.mxu0 %v4506_v0 }
0x3c91   :  { %4160 = vmatpush3.bf16.msra.mxu0 %v4583_v15 }
0x3c92   :  { %4173 = vmatprep.subr.bf16.mxu0 %v4506_v0 }
0x3d5f   :  { %v2128_v25 = vpop.f32.mrb[60].mxu0 }
0x3d60   :  { %v2134_v27 = vadd.f32 %v2128_v25, %v254_v7  ;;  %v4147_v37 = vpop.f32.mrb[61].mxu0 }
0x3d61   :  { %v2131_v39 = vpop.f32.mrb[62].mxu0 }
0x3d62   :  { %4420 = vtanh.f32 %v2134_v27  ;;  %v4148_v41 = vpop.f32.mrb[63].mxu0  ;;  %v3792_v43 = vmul.f32 -1.442695, %v2134_v27 }
0x3d64   :  { %4422 = vpow2.f32 %v3792_v43 }
0x3d6c   :  { %v4421_v42 = vpop.eup %4420 }
0x3d6d   :  { %2144 = vrot.lane.b32.xlu0 %v4421_v42, %s4509_s17 }
0x3d6e   :  { %v4423_v44 = vpop.eup %4422 }
0x3d6f   :  { %v2138_v54 = vadd.f32 1.0, %v4423_v44 }
0x3d71   :  { %4424 = vrcp.f32 %v2138_v54 }
0x3d7b   :  { %v4425_v45 = vpop.eup %4424 }
0x3d7c   :  { %v2142_v24 = vmul.f32 %v4425_v45, %v2072_v60 }
0x3ddf   :  { %v2145_v46 = vpop.permute.xlu0 %2144 }
0x3de0   :  { %v2147_v48 = vmul.f32 %v4425_v45, %v2145_v46 }
0x3de2   :  { %2149 = vrot.lane.b32.xlu1 %v2147_v48, %s4510_s18  ;;  %v262_v48 = vadd.f32 %v4966_v2, %v4879_v30 }
0x3e54   :  { %v2150_v49 = vpop.permute.xlu1 %2149 }
0x3e55   :  { %v2152_v51 = vadd.f32 %v2150_v49, %v2142_v24 }
0x3e57   :  { %4426 = vtanh.f32 %v2152_v51 }
0x3e61   :  { %v4427_v55 = vpop.eup %4426 }
0x3e62   :  { %2155 = vrot.lane.b32.xlu0 %v4427_v55, %s4509_s17 }
0x3ed4   :  { %v2156_v56 = vpop.permute.xlu0 %2155 }
0x3ed5   :  { %v5143_v18 = vmul.f32 %v4425_v45, %v2156_v56 }
0x3ed7   :  { %v2167_v57 = vpack.c.bf16 %v5143_v18, %v5143_v18 }
0x3ed9   :  { %2169 = vrot.lane.b32.xlu1 %v2167_v57, %s4510_s18 }
0x3f4b   :  { %v2170_v9 = vpop.permute.xlu1 %2169 }
0x3f4c   :  { %4154 = vmatmul.mubr.msk.bf16.vlgmr.msra.gmra.mrb[60].mxu1 %vm331_vm2, %v2170_v9 }
0x3f4d   :  { %4166 = vmatpush3.bf16.msra.mxu1 %v4568_v8  ;;  %4169 = vmatprep.mubr.msk.bf16.mxu1 %vm4507_vm0, %v4506_v0 }
0x3f4e   :  { %4167 = vmatprep.subr.bf16.mxu1 %v4506_v0 }
0x3f51   :  { %4168 = vmatpush3.bf16.msra.mxu1 %v4583_v15 }
0x3f52   :  { %4181 = vmatprep.subr.bf16.mxu1 %v4506_v0 }
0x401f   :  { %v2208_v28 = vpop.f32.mrb[60].mxu1 }
0x4020   :  { %v2214_v59 = vadd.f32 %v2208_v28, %v257_v52  ;;  %v4155_v60 = vpop.f32.mrb[61].mxu1 }
0x4021   :  { %v2211_v62 = vpop.f32.mrb[62].mxu1 }
0x4022   :  { %4428 = vtanh.f32 %v2214_v59  ;;  %v4156_v1 = vpop.f32.mrb[63].mxu1  ;;  %v3794_v5 = vmul.f32 -1.442695, %v2214_v59 }
0x4024   :  { %4430 = vpow2.f32 %v3794_v5 }
0x402c   :  { %v4429_v3 = vpop.eup %4428 }
0x402d   :  { %2224 = vrot.lane.b32.xlu0 %v4429_v3, %s4509_s17 }
0x402e   :  { %v4431_v7 = vpop.eup %4430 }
0x402f   :  { %v2218_v25 = vadd.f32 1.0, %v4431_v7 }
0x4031   :  { %4432 = vrcp.f32 %v2218_v25 }
0x403b   :  { %v4433_v27 = vpop.eup %4432 }
0x403c   :  { %v2222_v26 = vmul.f32 %v4433_v27, %v2152_v51 }
0x409f   :  { %v2225_v37 = vpop.permute.xlu0 %2224 }
0x40a0   :  { %v2227_v39 = vmul.f32 %v4433_v27, %v2225_v37 }
0x40a2   :  { %2229 = vrot.lane.b32.xlu1 %v2227_v39, %s4510_s18  ;;  %v265_v39 = vadd.f32 %v4966_v2, %v4885_v32 }
0x4114   :  { %v2230_v41 = vpop.permute.xlu1 %2229 }
0x4115   :  { %v2232_v42 = vadd.f32 %v2230_v41, %v2222_v26 }
0x4117   :  { %4434 = vtanh.f32 %v2232_v42 }
0x4121   :  { %v4435_v43 = vpop.eup %4434 }
0x4122   :  { %2235 = vrot.lane.b32.xlu0 %v4435_v43, %s4509_s17 }
0x4194   :  { %v2236_v44 = vpop.permute.xlu0 %2235 }
0x4195   :  { %v5160_v54 = vmul.f32 %v4433_v27, %v2236_v44 }
0x4197   :  { %v2247_v45 = vpack.c.bf16 %v5160_v54, %v5160_v54 }
0x4199   :  { %2249 = vrot.lane.b32.xlu1 %v2247_v45, %s4510_s18 }
0x420b   :  { %v2250_v46 = vpop.permute.xlu1 %2249 }
0x420c   :  { %4162 = vmatmul.mubr.msk.bf16.vlgmr.msra.gmra.mrb[64].mxu0 %vm331_vm2, %v2250_v46 }
0x420d   :  { %4174 = vmatpush3.bf16.msra.mxu0 %v4568_v8  ;;  %4177 = vmatprep.mubr.msk.bf16.mxu0 %vm4507_vm0, %v4506_v0 }
0x420e   :  { %4175 = vmatprep.subr.bf16.mxu0 %v4506_v0 }
0x4211   :  { %4176 = vmatpush3.bf16.msra.mxu0 %v4583_v15 }
0x4212   :  { %4189 = vmatprep.subr.bf16.mxu0 %v4506_v0 }
0x42df   :  { %v2288_v24 = vpop.f32.mrb[64].mxu0 }
0x42e0   :  { %v2294_v49 = vadd.f32 %v2288_v24, %v262_v48  ;;  %v4163_v51 = vpop.f32.mrb[65].mxu0 }
0x42e1   :  { %v2291_v55 = vpop.f32.mrb[66].mxu0 }
0x42e2   :  { %4436 = vtanh.f32 %v2294_v49  ;;  %v4164_v56 = vpop.f32.mrb[67].mxu0  ;;  %v3796_v9 = vmul.f32 -1.442695, %v2294_v49 }
0x42e4   :  { %4438 = vpow2.f32 %v3796_v9 }
0x42ec   :  { %v4437_v57 = vpop.eup %4436 }
0x42ed   :  { %2304 = vrot.lane.b32.xlu0 %v4437_v57, %s4509_s17 }
0x42ee   :  { %v4439_v52 = vpop.eup %4438 }
0x42ef   :  { %v2298_v28 = vadd.f32 1.0, %v4439_v52 }
0x42f1   :  { %4440 = vrcp.f32 %v2298_v28 }
0x42fb   :  { %v4441_v59 = vpop.eup %4440 }
0x42fc   :  { %v2302_v30 = vmul.f32 %v4441_v59, %v2232_v42 }
0x435f   :  { %v2305_v60 = vpop.permute.xlu0 %2304 }
0x4360   :  { %v2307_v62 = vmul.f32 %v4441_v59, %v2305_v60 }
0x4362   :  { %2309 = vrot.lane.b32.xlu1 %v2307_v62, %s4510_s18  ;;  %v270_v62 = vadd.f32 %v4966_v2, %v4877_v29 }
0x43d4   :  { %v2310_v1 = vpop.permute.xlu1 %2309 }
0x43d5   :  { %v2312_v3 = vadd.f32 %v2310_v1, %v2302_v30 }
0x43d7   :  { %4442 = vtanh.f32 %v2312_v3 }
0x43e1   :  { %v4443_v5 = vpop.eup %4442 }
0x43e2   :  { %2315 = vrot.lane.b32.xlu0 %v4443_v5, %s4509_s17 }
0x4454   :  { %v2316_v7 = vpop.permute.xlu0 %2315 }
0x4455   :  { %v5177_v25 = vmul.f32 %v4441_v59, %v2316_v7 }
0x4457   :  { %v2327_v27 = vpack.c.bf16 %v5177_v25, %v5177_v25 }
0x4459   :  { %2329 = vrot.lane.b32.xlu1 %v2327_v27, %s4510_s18 }
0x44cb   :  { %v2330_v37 = vpop.permute.xlu1 %2329 }
0x44cc   :  { %4170 = vmatmul.mubr.msk.bf16.vlgmr.msra.gmra.mrb[64].mxu1 %vm331_vm2, %v2330_v37 }
0x44cd   :  { %4182 = vmatpush3.bf16.msra.mxu1 %v4568_v8  ;;  %4185 = vmatprep.mubr.msk.bf16.mxu1 %vm4507_vm0, %v4506_v0 }
0x44ce   :  { %4183 = vmatprep.subr.bf16.mxu1 %v4506_v0 }
0x44d1   :  { %4184 = vmatpush3.bf16.msra.mxu1 %v4583_v15 }
0x44d2   :  { %4197 = vmatprep.subr.bf16.mxu1 %v4506_v0 }
0x459f   :  { %v2368_v26 = vpop.f32.mrb[64].mxu1 }
0x45a0   :  { %v2374_v41 = vadd.f32 %v2368_v26, %v265_v39  ;;  %v4171_v42 = vpop.f32.mrb[65].mxu1 }
0x45a1   :  { %v2371_v43 = vpop.f32.mrb[66].mxu1 }
0x45a2   :  { %4444 = vtanh.f32 %v2374_v41  ;;  %v4172_v44 = vpop.f32.mrb[67].mxu1  ;;  %v3798_v46 = vmul.f32 -1.442695, %v2374_v41 }
0x45a4   :  { %4446 = vpow2.f32 %v3798_v46 }
0x45ac   :  { %v4445_v45 = vpop.eup %4444 }
0x45ad   :  { %2384 = vrot.lane.b32.xlu0 %v4445_v45, %s4509_s17 }
0x45ae   :  { %v4447_v48 = vpop.eup %4446 }
0x45af   :  { %v2378_v24 = vadd.f32 1.0, %v4447_v48 }
0x45b1   :  { %4448 = vrcp.f32 %v2378_v24 }
0x45bb   :  { %v4449_v49 = vpop.eup %4448 }
0x45bc   :  { %v2382_v32 = vmul.f32 %v4449_v49, %v2312_v3 }
0x461f   :  { %v2385_v51 = vpop.permute.xlu0 %2384 }
0x4620   :  { %v2387_v55 = vmul.f32 %v4449_v49, %v2385_v51  ;;  %v5226_v51 = vld [vmem:[%s5796_s3] ss:$0 sm:$0xff] }
0x4622   :  { %2389 = vrot.lane.b32.xlu1 %v2387_v55, %s4510_s18  ;;  %v273_v55 = vadd.f32 %v5226_v51, %v4882_v31 }
0x4694   :  { %v2390_v56 = vpop.permute.xlu1 %2389 }
0x4695   :  { %v2392_v57 = vadd.f32 %v2390_v56, %v2382_v32 }
0x4697   :  { %4450 = vtanh.f32 %v2392_v57 }
0x46a1   :  { %v4451_v9 = vpop.eup %4450 }
0x46a2   :  { %2395 = vrot.lane.b32.xlu0 %v4451_v9, %s4509_s17 }
0x4714   :  { %v2396_v52 = vpop.permute.xlu0 %2395 }
0x4715   :  { %v5194_v28 = vmul.f32 %v4449_v49, %v2396_v52 }
0x4717   :  { %v2407_v59 = vpack.c.bf16 %v5194_v28, %v5194_v28 }
0x4719   :  { %2409 = vrot.lane.b32.xlu1 %v2407_v59, %s4510_s18 }
0x478b   :  { %v2410_v60 = vpop.permute.xlu1 %2409 }
0x478c   :  { %4178 = vmatmul.mubr.msk.bf16.vlgmr.msra.gmra.mrb[68].mxu0 %vm331_vm2, %v2410_v60 }
0x478d   :  { %4190 = vmatpush3.bf16.msra.mxu0 %v4568_v8  ;;  %4193 = vmatprep.mubr.msk.bf16.mxu0 %vm4507_vm0, %v4506_v0 }
0x478e   :  { %4191 = vmatprep.subr.bf16.mxu0 %v4506_v0 }
0x4791   :  { %4192 = vmatpush3.bf16.msra.mxu0 %v4583_v15 }
0x4792   :  { %4205 = vmatprep.subr.bf16.mxu0 %v4506_v0 }
0x485f   :  { %v2448_v30 = vpop.f32.mrb[68].mxu0 }
0x4860   :  { %v2454_v1 = vadd.f32 %v2448_v30, %v270_v62  ;;  %v4179_v3 = vpop.f32.mrb[69].mxu0 }
0x4861   :  { %v2451_v5 = vpop.f32.mrb[70].mxu0 }
0x4862   :  { %4452 = vtanh.f32 %v2454_v1  ;;  %v4180_v7 = vpop.f32.mrb[71].mxu0  ;;  %v3800_v37 = vmul.f32 -1.442695, %v2454_v1 }
0x4864   :  { %4454 = vpow2.f32 %v3800_v37 }
0x486c   :  { %v4453_v27 = vpop.eup %4452 }
0x486d   :  { %2464 = vrot.lane.b32.xlu0 %v4453_v27, %s4509_s17 }
0x486e   :  { %v4455_v39 = vpop.eup %4454 }
0x486f   :  { %v2458_v26 = vadd.f32 1.0, %v4455_v39 }
0x4871   :  { %4456 = vrcp.f32 %v2458_v26 }
0x487b   :  { %v4457_v41 = vpop.eup %4456 }
0x487c   :  { %v2462_v29 = vmul.f32 %v4457_v41, %v2392_v57 }
0x48df   :  { %v2465_v42 = vpop.permute.xlu0 %2464 }
0x48e0   :  { %v2467_v43 = vmul.f32 %v4457_v41, %v2465_v42 }
0x48e2   :  { %2469 = vrot.lane.b32.xlu1 %v2467_v43, %s4510_s18  ;;  %v278_v43 = vadd.f32 %v5226_v51, %v4889_v34 }
0x4954   :  { %v2470_v2 = vpop.permute.xlu1 %2469 }
0x4955   :  { %v2472_v44 = vadd.f32 %v2470_v2, %v2462_v29 }
0x4957   :  { %4458 = vtanh.f32 %v2472_v44 }
0x4961   :  { %v4459_v45 = vpop.eup %4458 }
0x4962   :  { %2475 = vrot.lane.b32.xlu0 %v4459_v45, %s4509_s17 }
0x49d4   :  { %v2476_v46 = vpop.permute.xlu0 %2475 }
0x49d5   :  { %v5211_v48 = vmul.f32 %v4457_v41, %v2476_v46 }
0x49d7   :  { %v2487_v24 = vpack.c.bf16 %v5211_v48, %v5211_v48 }
0x49d9   :  { %2489 = vrot.lane.b32.xlu1 %v2487_v24, %s4510_s18 }
0x4a4b   :  { %v2490_v49 = vpop.permute.xlu1 %2489 }
0x4a4c   :  { %4186 = vmatmul.mubr.msk.bf16.vlgmr.msra.gmra.mrb[68].mxu1 %vm331_vm2, %v2490_v49 }
0x4a4d   :  { %4198 = vmatpush3.bf16.msra.mxu1 %v4568_v8  ;;  %4201 = vmatprep.mubr.msk.bf16.mxu1 %vm4507_vm0, %v4506_v0 }
0x4a4e   :  { %4199 = vmatprep.subr.bf16.mxu1 %v4506_v0 }
0x4a51   :  { %4200 = vmatpush3.bf16.msra.mxu1 %v4583_v15 }
0x4a52   :  { %4213 = vmatprep.subr.bf16.mxu1 %v4506_v0 }
0x4b1f   :  { %v2528_v32 = vpop.f32.mrb[68].mxu1 }
0x4b20   :  { %v2534_v56 = vadd.f32 %v2528_v32, %v273_v55  ;;  %v4187_v57 = vpop.f32.mrb[69].mxu1 }
0x4b21   :  { %v2531_v9 = vpop.f32.mrb[70].mxu1 }
0x4b22   :  { %4460 = vtanh.f32 %v2534_v56  ;;  %v4188_v52 = vpop.f32.mrb[71].mxu1  ;;  %v3802_v60 = vmul.f32 -1.442695, %v2534_v56 }
0x4b24   :  { %4462 = vpow2.f32 %v3802_v60 }
0x4b2c   :  { %v4461_v59 = vpop.eup %4460 }
0x4b2d   :  { %2544 = vrot.lane.b32.xlu0 %v4461_v59, %s4509_s17 }
0x4b2e   :  { %v4463_v62 = vpop.eup %4462 }
0x4b2f   :  { %v2538_v30 = vadd.f32 1.0, %v4463_v62 }
0x4b31   :  { %4464 = vrcp.f32 %v2538_v30 }
0x4b3b   :  { %v4465_v1 = vpop.eup %4464 }
0x4b3c   :  { %v2542_v31 = vmul.f32 %v4465_v1, %v2472_v44 }
0x4b9f   :  { %v2545_v3 = vpop.permute.xlu0 %2544 }
0x4ba0   :  { %v2547_v5 = vmul.f32 %v4465_v1, %v2545_v3 }
0x4ba2   :  { %2549 = vrot.lane.b32.xlu1 %v2547_v5, %s4510_s18  ;;  %v281_v5 = vadd.f32 %v5226_v51, %v4893_v36 }
0x4c14   :  { %v2550_v7 = vpop.permute.xlu1 %2549 }
0x4c15   :  { %v2552_v27 = vadd.f32 %v2550_v7, %v2542_v31 }
0x4c17   :  { %4466 = vtanh.f32 %v2552_v27 }
0x4c21   :  { %v4467_v37 = vpop.eup %4466 }
0x4c22   :  { %2555 = vrot.lane.b32.xlu0 %v4467_v37, %s4509_s17 }
0x4c94   :  { %v2556_v39 = vpop.permute.xlu0 %2555 }
0x4c95   :  { %v5233_v26 = vmul.f32 %v4465_v1, %v2556_v39 }
0x4c97   :  { %v2567_v41 = vpack.c.bf16 %v5233_v26, %v5233_v26 }
0x4c99   :  { %2569 = vrot.lane.b32.xlu1 %v2567_v41, %s4510_s18 }
0x4d0b   :  { %v2570_v42 = vpop.permute.xlu1 %2569 }
0x4d0c   :  { %4194 = vmatmul.mubr.msk.bf16.vlgmr.msra.gmra.mrb[72].mxu0 %vm331_vm2, %v2570_v42 }
0x4d0d   :  { %4206 = vmatpush3.bf16.msra.mxu0 %v4568_v8  ;;  %4209 = vmatprep.mubr.msk.bf16.mxu0 %vm4507_vm0, %v4506_v0 }
0x4d0e   :  { %4207 = vmatprep.subr.bf16.mxu0 %v4506_v0 }
0x4d11   :  { %4208 = vmatpush3.bf16.msra.mxu0 %v4583_v15 }
0x4ddf   :  { %v2608_v29 = vpop.f32.mrb[72].mxu0 }
0x4de0   :  { %v2614_v2 = vadd.f32 %v2608_v29, %v278_v43  ;;  %v4195_v44 = vpop.f32.mrb[73].mxu0 }
0x4de1   :  { %v2611_v45 = vpop.f32.mrb[74].mxu0 }
0x4de2   :  { %4468 = vtanh.f32 %v2614_v2  ;;  %v4196_v46 = vpop.f32.mrb[75].mxu0  ;;  %v3804_v49 = vmul.f32 -1.442695, %v2614_v2 }
0x4de4   :  { %4470 = vpow2.f32 %v3804_v49 }
0x4dec   :  { %v4469_v24 = vpop.eup %4468 }
0x4ded   :  { %2624 = vrot.lane.b32.xlu0 %v4469_v24, %s4509_s17 }
0x4dee   :  { %v4471_v55 = vpop.eup %4470 }
0x4def   :  { %v2618_v32 = vadd.f32 1.0, %v4471_v55 }
0x4df1   :  { %4472 = vrcp.f32 %v2618_v32 }
0x4dfb   :  { %v4473_v56 = vpop.eup %4472 }
0x4dfc   :  { %v2622_v34 = vmul.f32 %v4473_v56, %v2552_v27 }
0x4e5f   :  { %v2625_v57 = vpop.permute.xlu0 %2624 }
0x4e60   :  { %v2627_v9 = vmul.f32 %v4473_v56, %v2625_v57 }
0x4e62   :  { %2629 = vrot.lane.b32.xlu1 %v2627_v9, %s4510_s18 }
0x4ed4   :  { %v2630_v52 = vpop.permute.xlu1 %2629 }
0x4ed5   :  { %v2632_v59 = vadd.f32 %v2630_v52, %v2622_v34 }
0x4ed7   :  { %4474 = vtanh.f32 %v2632_v59 }
0x4ee1   :  { %v4475_v60 = vpop.eup %4474 }
0x4ee2   :  { %2635 = vrot.lane.b32.xlu0 %v4475_v60, %s4509_s17 }
0x4f54   :  { %v2636_v62 = vpop.permute.xlu0 %2635 }
0x4f55   :  { %v5249_v30 = vmul.f32 %v4473_v56, %v2636_v62  ;;  %v286_v56 = vadd.f32 %v5226_v51, %v4887_v33 }
0x4f57   :  { %v2647_v1 = vpack.c.bf16 %v5249_v30, %v5249_v30 }
0x4f59   :  { %2649 = vrot.lane.b32.xlu1 %v2647_v1, %s4510_s18 }
0x4fcb   :  { %v2650_v3 = vpop.permute.xlu1 %2649 }
0x4fcc   :  { %4202 = vmatmul.mubr.msk.bf16.vlgmr.msra.gmra.mrb[72].mxu1 %vm331_vm2, %v2650_v3 }
0x4fcd   :  { %4214 = vmatpush3.bf16.msra.mxu1 %v4568_v8  ;;  %4217 = vmatprep.mubr.msk.bf16.mxu1 %vm4507_vm0, %v4506_v0 }
0x4fce   :  { %4215 = vmatprep.subr.bf16.mxu1 %v4506_v0 }
0x4fd1   :  { %4216 = vmatpush3.bf16.msra.mxu1 %v4583_v15 }
0x509f   :  { %v2688_v31 = vpop.f32.mrb[72].mxu1 }
0x50a0   :  { %v2694_v7 = vadd.f32 %v2688_v31, %v281_v5  ;;  %v4203_v27 = vpop.f32.mrb[73].mxu1 }
0x50a1   :  { %v2691_v37 = vpop.f32.mrb[74].mxu1 }
0x50a2   :  { %4476 = vtanh.f32 %v2694_v7  ;;  %v4204_v39 = vpop.f32.mrb[75].mxu1  ;;  %v3806_v8 = vmul.f32 -1.442695, %v2694_v7 }
0x50a4   :  { %4478 = vpow2.f32 %v3806_v8 }
0x50ac   :  { %v4477_v41 = vpop.eup %4476 }
0x50ad   :  { %2704 = vrot.lane.b32.xlu0 %v4477_v41, %s4509_s17 }
0x50ae   :  { %v4479_v42 = vpop.eup %4478 }
0x50af   :  { %v2698_v43 = vadd.f32 1.0, %v4479_v42 }
0x50b1   :  { %4480 = vrcp.f32 %v2698_v43  ;;  %v289_v43 = vadd.f32 %v5226_v51, %v4891_v35 }
0x50bb   :  { %v4481_v29 = vpop.eup %4480 }
0x50bc   :  { %v2702_v36 = vmul.f32 %v4481_v29, %v2632_v59 }
0x511f   :  { %v2705_v2 = vpop.permute.xlu0 %2704 }
0x5120   :  { %v2707_v15 = vmul.f32 %v4481_v29, %v2705_v2 }
0x5122   :  { %2709 = vrot.lane.b32.xlu1 %v2707_v15, %s4510_s18 }
0x5194   :  { %v2710_v44 = vpop.permute.xlu1 %2709 }
0x5195   :  { %v2712_v45 = vadd.f32 %v2710_v44, %v2702_v36 }
0x5197   :  { %4482 = vtanh.f32 %v2712_v45 }
0x51a1   :  { %v4483_v46 = vpop.eup %4482 }
0x51a2   :  { %2715 = vrot.lane.b32.xlu0 %v4483_v46, %s4509_s17 }
0x5214   :  { %v2716_v24 = vpop.permute.xlu0 %2715 }
0x5215   :  { %v5265_v49 = vmul.f32 %v4481_v29, %v2716_v24 }
0x5217   :  { %v2727_v55 = vpack.c.bf16 %v5265_v49, %v5265_v49 }
0x5219   :  { %2729 = vrot.lane.b32.xlu1 %v2727_v55, %s4510_s18 }
0x528b   :  { %v2730_v32 = vpop.permute.xlu1 %2729 }
0x528c   :  { %4210 = vmatmul.mubr.msk.bf16.vlgmr.msra.gmra.mrb[76].mxu0 %vm331_vm2, %v2730_v32 }
0x528d   :  { %4229 = vmatprep.mubr.msk.f32.mxu0 %vm4507_vm0, %v4506_v0 }
0x535f   :  { %v2768_v57 = vpop.f32.mrb[76].mxu0 }
0x5360   :  { %v2774_v9 = vadd.f32 %v2768_v57, %v286_v56  ;;  %v4211_v34 = vpop.f32.mrb[77].mxu0 }
0x5361   :  { %v2771_v52 = vpop.f32.mrb[78].mxu0 }
0x5362   :  { %4484 = vtanh.f32 %v2774_v9  ;;  %v4212_v59 = vpop.f32.mrb[79].mxu0  ;;  %v3808_v62 = vmul.f32 -1.442695, %v2774_v9 }
0x5364   :  { %4486 = vpow2.f32 %v3808_v62 }
0x536c   :  { %v4485_v60 = vpop.eup %4484 }
0x536d   :  { %2784 = vrot.lane.b32.xlu0 %v4485_v60, %s4509_s17 }
0x536e   :  { %v4487_v1 = vpop.eup %4486 }
0x536f   :  { %v2778_v3 = vadd.f32 1.0, %v4487_v1 }
0x5371   :  { %4488 = vrcp.f32 %v2778_v3 }
0x537b   :  { %v4489_v5 = vpop.eup %4488 }
0x537c   :  { %v2782_v33 = vmul.f32 %v4489_v5, %v2712_v45 }
0x53df   :  { %v2785_v31 = vpop.permute.xlu0 %2784 }
0x53e0   :  { %v2787_v0 = vmul.f32 %v4489_v5, %v2785_v31 }
0x53e2   :  { %2789 = vrot.lane.b32.xlu1 %v2787_v0, %s4510_s18 }
0x5454   :  { %v2790_v7 = vpop.permute.xlu1 %2789 }
0x5455   :  { %v2792_v27 = vadd.f32 %v2790_v7, %v2782_v33 }
0x5457   :  { %4490 = vtanh.f32 %v2792_v27 }
0x5461   :  { %v4491_v37 = vpop.eup %4490 }
0x5462   :  { %2795 = vrot.lane.b32.xlu0 %v4491_v37, %s4509_s17 }
0x54d4   :  { %v2796_v39 = vpop.permute.xlu0 %2795 }
0x54d5   :  { %v5278_v41 = vmul.f32 %v4489_v5, %v2796_v39 }
0x54d7   :  { %v2807_v8 = vpack.c.bf16 %v5278_v41, %v5278_v41 }
0x54d9   :  { %2809 = vrot.lane.b32.xlu1 %v2807_v8, %s4510_s18 }
0x554b   :  { %v2810_v42 = vpop.permute.xlu1 %2809 }
0x554c   :  { %4218 = vmatmul.mubr.msk.bf16.vlgmr.msra.gmra.mrb[76].mxu1 %vm331_vm2, %v2810_v42 }
0x561f   :  { %v2848_v29 = vpop.f32.mrb[76].mxu1 }
0x5620   :  { %v2854_v2 = vadd.f32 %v2848_v29, %v289_v43  ;;  %v4219_v15 = vpop.f32.mrb[77].mxu1 }
0x5621   :  { %v2851_v36 = vpop.f32.mrb[78].mxu1 }
0x5622   :  { %4492 = vtanh.f32 %v2854_v2  ;;  %v4220_v44 = vpop.f32.mrb[79].mxu1  ;;  %v3810_v46 = vmul.f32 -1.442695, %v2854_v2 }
0x5624   :  { %4494 = vpow2.f32 %v3810_v46 }
0x562c   :  { %v4493_v45 = vpop.eup %4492 }
0x562d   :  { %2864 = vrot.lane.b32.xlu0 %v4493_v45, %s4509_s17 }
0x562e   :  { %v4495_v35 = vpop.eup %4494 }
0x562f   :  { %v2858_v51 = vadd.f32 1.0, %v4495_v35 }
0x5631   :  { %480 = vrot.lane.b32.xlu0 %v4630_v61, %s4510_s18  ;;  %4496 = vrcp.f32 %v2858_v51 }
0x5635   :  { %640 = vrot.lane.b32.xlu0 %v4678_v50, %s4510_s18 }
0x5639   :  { %1120 = vrot.lane.b32.xlu0 %v4917_v47, %s4510_s18 }
0x563b   :  { %v5293_v24 = vpop.eup %4496 }
0x569f   :  { %v2865_v55 = vpop.permute.xlu0 %2864 }
0x56a0   :  { %v2867_v32 = vmul.f32 %v5293_v24, %v2865_v55 }
0x56a2   :  { %2869 = vrot.lane.b32.xlu1 %v2867_v32, %s4510_s18 }
0x56a3   :  { %v481_v56 = vpop.permute.xlu0 %480 }
0x56a4   :  { %484 = vst.msk [vmem:[#allocation3 + $0x8] sm:$0xff] %vm331_vm2, %v481_v56 }
0x56a6   :  { %401 = vrot.lane.b32.xlu1 %v4614_v40, %s4510_s18  ;;  %v2862_v40 = vmul.f32 %v5293_v24, %v2792_v27 }
0x56a7   :  { %v641_v61 = vpop.permute.xlu0 %640 }
0x56a8   :  { %644 = vst.msk [vmem:[#allocation3 + $0x18] sm:$0xff] %vm331_vm2, %v641_v61 }
0x56aa   :  { %560 = vrot.lane.b32.xlu1 %v4647_v23, %s4510_s18 }
0x56ab   :  { %v1121_v50 = vpop.permute.xlu0 %1120  ;;  %v5390_v1 = vld [vmem:[#allocation3 + $0x8] sm:$0xff] }
0x56ac   :  { %1124 = vst.msk [vmem:[#allocation3 + $0x48] sm:$0xff] %vm331_vm2, %v1121_v50 }
0x56ae   :  { %1040 = vrot.lane.b32.xlu1 %v4900_v58, %s4510_s18 }
0x56af   :  { %v5402_v33 = vld [vmem:[#allocation3 + $0x18] sm:$0xff] }
0x56b2   :  { %720 = vrot.lane.b32.xlu1 %v4698_v14, %s4510_s18 }
0x56b3   :  { %v5412_v8 = vld [vmem:[#allocation3 + $0x48] sm:$0xff] }
0x56b6   :  { %800 = vrot.lane.b32.xlu1 %v4714_v21, %s4510_s18 }
0x56ba   :  { %1680 = vrot.lane.b32.xlu1 %v5041_v12, %s4510_s18 }
0x56be   :  { %880 = vrot.lane.b32.xlu1 %v4731_v63, %s4510_s18 }
0x56c2   :  { %1840 = vrot.lane.b32.xlu1 %v5075_v11, %s4510_s18 }
0x56c6   :  { %1440 = vrot.lane.b32.xlu1 %v4990_v10, %s4510_s18 }
0x56ca   :  { %2320 = vrot.lane.b32.xlu1 %v5177_v25, %s4510_s18 }
0x56ce   :  { %1520 = vrot.lane.b32.xlu1 %v5007_v6, %s4510_s18 }
0x56d2   :  { %2480 = vrot.lane.b32.xlu1 %v5211_v48, %s4510_s18 }
0x56d6   :  { %2080 = vrot.lane.b32.xlu1 %v5126_v20, %s4510_s18 }
0x56da   :  { %2640 = vrot.lane.b32.xlu1 %v5249_v30, %s4510_s18 }
0x56de   :  { %2720 = vrot.lane.b32.xlu1 %v5265_v49, %s4510_s18 }
0x5714   :  { %v2870_v23 = vpop.permute.xlu1 %2869 }
0x5715   :  { %v2872_v14 = vadd.f32 %v2870_v23, %v2862_v40 }
0x5717   :  { %4498 = vtanh.f32 %v2872_v14 }
0x5718   :  { %v402_v21 = vpop.permute.xlu1 %401 }
0x5719   :  { %404 = vst.msk [vmem:[#allocation3] sm:$0xff] %vm331_vm2, %v402_v21 }
0x571c   :  { %v561_v63 = vpop.permute.xlu1 %560 }
0x571d   :  { %564 = vst.msk [vmem:[#allocation3 + $0x10] sm:$0xff] %vm331_vm2, %v561_v63 }
0x5720   :  { %v1041_v58 = vpop.permute.xlu1 %1040  ;;  %v5392_v3 = vld [vmem:[#allocation3] sm:$0xff] }
0x5721   :  { %v4499_v47 = vpop.eup %4498  ;;  %1044 = vst.msk [vmem:[#allocation3 + $0x40] sm:$0xff] %vm331_vm2, %v1041_v58 }
0x5722   :  { %2875 = vrot.lane.b32.xlu0 %v4499_v47, %s4509_s17 }
0x5724   :  { %v721_v10 = vpop.permute.xlu1 %720  ;;  %v5400_v0 = vld [vmem:[#allocation3 + $0x10] sm:$0xff] }
0x5725   :  { %724 = vst.msk [vmem:[#allocation3 + $0x20] sm:$0xff] %vm331_vm2, %v721_v10 }
0x5726   :  { %1200 = vrot.lane.b32.xlu0 %v4934_v38, %s4510_s18 }
0x5728   :  { %v801_v6 = vpop.permute.xlu1 %800 }
0x5729   :  { %804 = vst.msk [vmem:[#allocation3 + $0x28] sm:$0xff] %vm331_vm2, %v801_v6 }
0x572a   :  { %1280 = vrot.lane.b32.xlu0 %v4951_v22, %s4510_s18 }
0x572c   :  { %v1681_v12 = vpop.permute.xlu1 %1680  ;;  %v5420_v15 = vld [vmem:[#allocation3 + $0x20] sm:$0xff] }
0x572d   :  { %1684 = vst.msk [vmem:[#allocation3 + $0x80] sm:$0xff] %vm331_vm2, %v1681_v12 }
0x572e   :  { %1760 = vrot.lane.b32.xlu0 %v5058_v16, %s4510_s18 }
0x5730   :  { %v881_v11 = vpop.permute.xlu1 %880  ;;  %v5430_v51 = vld [vmem:[#allocation3 + $0x28] sm:$0xff] }
0x5731   :  { %884 = vst.msk [vmem:[#allocation3 + $0x30] sm:$0xff] %vm331_vm2, %v881_v11 }
0x5732   :  { %1360 = vrot.lane.b32.xlu0 %v4973_v53, %s4510_s18 }
0x5734   :  { %v1841_v20 = vpop.permute.xlu1 %1840  ;;  %v5440_v50 = vld [vmem:[#allocation3 + $0x80] sm:$0xff] }
0x5735   :  { %1844 = vst.msk [vmem:[#allocation3 + $0x90] sm:$0xff] %vm331_vm2, %v1841_v20 }
0x5736   :  { %960 = vrot.lane.b32.xlu0 %v4837_v4, %s4510_s18 }
0x5738   :  { %v1441_v38 = vpop.permute.xlu1 %1440  ;;  %v5450_v58 = vld [vmem:[#allocation3 + $0x30] sm:$0xff] }
0x5739   :  { %1444 = vst.msk [vmem:[#allocation3 + $0x68] sm:$0xff] %vm331_vm2, %v1441_v38 }
0x573a   :  { %1920 = vrot.lane.b32.xlu0 %v5092_v13, %s4510_s18 }
0x573c   :  { %v2321_v22 = vpop.permute.xlu1 %2320  ;;  %v5460_v20 = vld [vmem:[#allocation3 + $0x90] sm:$0xff] }
0x573d   :  { %2324 = vst.msk [vmem:[#allocation3 + $0xc0] sm:$0xff] %vm331_vm2, %v2321_v22 }
0x573e   :  { %2400 = vrot.lane.b32.xlu0 %v5194_v28, %s4510_s18 }
0x5740   :  { %v1521_v16 = vpop.permute.xlu1 %1520 }
0x5741   :  { %1524 = vst.msk [vmem:[#allocation3 + $0x70] sm:$0xff] %vm331_vm2, %v1521_v16 }
0x5742   :  { %2000 = vrot.lane.b32.xlu0 %v5109_v19, %s4510_s18 }
0x5744   :  { %v2481_v53 = vpop.permute.xlu1 %2480 }
0x5745   :  { %2484 = vst.msk [vmem:[#allocation3 + $0xd0] sm:$0xff] %vm331_vm2, %v2481_v53 }
0x5746   :  { %1600 = vrot.lane.b32.xlu0 %v5024_v17, %s4510_s18 }
0x5748   :  { %v2081_v4 = vpop.permute.xlu1 %2080 }
0x5749   :  { %2084 = vst.msk [vmem:[#allocation3 + $0xa8] sm:$0xff] %vm331_vm2, %v2081_v4 }
0x574a   :  { %2560 = vrot.lane.b32.xlu0 %v5233_v26, %s4510_s18 }
0x574c   :  { %v2641_v13 = vpop.permute.xlu1 %2640 }
0x574d   :  { %2644 = vst.msk [vmem:[#allocation3 + $0xe0] sm:$0xff] %vm331_vm2, %v2641_v13  ;;  %v5470_v13 = vld [vmem:[#allocation3 + $0x68] sm:$0xff] }
0x574e   :  { %2160 = vrot.lane.b32.xlu0 %v5143_v18, %s4510_s18 }
0x5750   :  { %v2721_v25 = vpop.permute.xlu1 %2720 }
0x5751   :  { %2724 = vst.msk [vmem:[#allocation3 + $0xe8] sm:$0xff] %vm331_vm2, %v2721_v25 }
0x5752   :  { %2240 = vrot.lane.b32.xlu0 %v5160_v54, %s4510_s18 }
0x5756   :  { %2800 = vrot.lane.b32.xlu0 %v5278_v41, %s4510_s18  ;;  %v5410_v41 = vld [vmem:[#allocation3 + $0x40] sm:$0xff] }
0x5794   :  { %v2876_v17 = vpop.permute.xlu0 %2875 }
0x5795   :  { %v2878_v19 = vmul.f32 %v5293_v24, %v2876_v17 }
0x5797   :  { %2880 = vrot.lane.b32.xlu1 %v2878_v19, %s4510_s18 }
0x5798   :  { %v1201_v28 = vpop.permute.xlu0 %1200 }
0x5799   :  { %1204 = vst.msk [vmem:[#allocation3 + $0x50] sm:$0xff] %vm331_vm2, %v1201_v28 }
0x579c   :  { %v1281_v48 = vpop.permute.xlu0 %1280 }
0x579d   :  { %1284 = vst.msk [vmem:[#allocation3 + $0x58] sm:$0xff] %vm331_vm2, %v1281_v48 }
0x57a0   :  { %v1761_v18 = vpop.permute.xlu0 %1760  ;;  %v5422_v36 = vld [vmem:[#allocation3 + $0x50] sm:$0xff] }
0x57a1   :  { %1764 = vst.msk [vmem:[#allocation3 + $0x88] sm:$0xff] %vm331_vm2, %v1761_v18  ;;  %v5480_v18 = vld [vmem:[#allocation3 + $0xc0] sm:$0xff] }
0x57a4   :  { %v1361_v26 = vpop.permute.xlu0 %1360  ;;  %v5432_v24 = vld [vmem:[#allocation3 + $0x58] sm:$0xff] }
0x57a5   :  { %1364 = vst.msk [vmem:[#allocation3 + $0x60] sm:$0xff] %vm331_vm2, %v1361_v26 }
0x57a8   :  { %v961_v54 = vpop.permute.xlu0 %960  ;;  %v5442_v40 = vld [vmem:[#allocation3 + $0x88] sm:$0xff] }
0x57a9   :  { %964 = vst.msk [vmem:[#allocation3 + $0x38] sm:$0xff] %vm331_vm2, %v961_v54 }
0x57ac   :  { %v1921_v30 = vpop.permute.xlu0 %1920  ;;  %v5452_v47 = vld [vmem:[#allocation3 + $0x60] sm:$0xff] }
0x57ad   :  { %1924 = vst.msk [vmem:[#allocation3 + $0x98] sm:$0xff] %vm331_vm2, %v1921_v30 }
0x57b0   :  { %v2401_v49 = vpop.permute.xlu0 %2400  ;;  %v5462_v38 = vld [vmem:[#allocation3 + $0x38] sm:$0xff] }
0x57b1   :  { %2404 = vst.msk [vmem:[#allocation3 + $0xc8] sm:$0xff] %vm331_vm2, %v2401_v49 }
0x57b4   :  { %v2001_v57 = vpop.permute.xlu0 %2000  ;;  %v5472_v25 = vld [vmem:[#allocation3 + $0x98] sm:$0xff] }
0x57b5   :  { %2004 = vst.msk [vmem:[#allocation3 + $0xa0] sm:$0xff] %vm331_vm2, %v2001_v57 }
0x57b8   :  { %v1601_v9 = vpop.permute.xlu0 %1600  ;;  %v5482_v26 = vld [vmem:[#allocation3 + $0xc8] sm:$0xff] }
0x57b9   :  { %1604 = vst.msk [vmem:[#allocation3 + $0x78] sm:$0xff] %vm331_vm2, %v1601_v9  ;;  %v5490_v9 = vld [vmem:[#allocation3 + $0x70] sm:$0xff] }
0x57bc   :  { %v2561_v34 = vpop.permute.xlu0 %2560 }
0x57bd   :  { %2564 = vst.msk [vmem:[#allocation3 + $0xd8] sm:$0xff] %vm331_vm2, %v2561_v34  ;;  %v5492_v34 = vld [vmem:[#allocation3 + $0xa0] sm:$0xff] }
0x57c0   :  { %v2161_v52 = vpop.permute.xlu0 %2160 }
0x57c1   :  { %2164 = vst.msk [vmem:[#allocation3 + $0xb0] sm:$0xff] %vm331_vm2, %v2161_v52 }
0x57c4   :  { %v2241_v59 = vpop.permute.xlu0 %2240 }
0x57c5   :  { %2244 = vst.msk [vmem:[#allocation3 + $0xb8] sm:$0xff] %vm331_vm2, %v2241_v59 }
0x57c8   :  { %v2801_v60 = vpop.permute.xlu0 %2800 }
0x57c9   :  { %2804 = vst.msk [vmem:[#allocation3 + $0xf0] sm:$0xff] %vm331_vm2, %v2801_v60 }
0x5809   :  { %v5388_v62 = vpop.permute.xlu1 %2880 }
0x580a   :  { %2884 = vst.msk [vmem:[#allocation3 + $0xf8] sm:$0xff] %vm331_vm2, %v5388_v62  ;;  %v2918_v5 = vmul.f32 %v5390_v1, %v5388_v62  ;;  %v2917_v31 = vmul.f32 %v5392_v3, %v5388_v62  ;;  %v2919_v37 = vmul.f32 %v5400_v0, %v5388_v62  ;;  %v2920_v39 = vmul.f32 %v5402_v33, %v5388_v62 }
0x580b   :  { %v2925_v29 = vmul.f32 %v5410_v41, %v5388_v62  ;;  %v2926_v2 = vmul.f32 %v5412_v8, %v5388_v62  ;;  %v2921_v46 = vmul.f32 %v5420_v15, %v5388_v62  ;;  %v2927_v35 = vmul.f32 %v5422_v36, %v5388_v62 }
0x580c   :  { %v2952_v7 = vsel %vm331_vm2, %v2918_v5, 0.0  ;;  %v2949_v27 = vsel %vm331_vm2, %v2917_v31, 0.0  ;;  %v2955_v42 = vsel %vm331_vm2, %v2919_v37, 0.0  ;;  %v2958_v43 = vsel %vm331_vm2, %v2920_v39, 0.0  ;;  %v5500_v31 = vld [vmem:[#allocation3 + $0xd0] sm:$0xff] }
0x580d   :  { %2953 = vadd.xlane.f32.xlu0 %v2952_v7  ;;  %2950 = vadd.xlane.f32.xlu1 %v2949_v27  ;;  %v2973_v44 = vsel %vm331_vm2, %v2925_v29, 0.0  ;;  %v2976_v45 = vsel %vm331_vm2, %v2926_v2, 0.0  ;;  %v2961_v55 = vsel %vm331_vm2, %v2921_v46, 0.0  ;;  %v2979_v32 = vsel %vm331_vm2, %v2927_v35, 0.0  ;;  %v5502_v7 = vld [vmem:[#allocation3 + $0x78] sm:$0xff]  ;;  %v5520_v35 = vld [vmem:[#allocation3 + $0xe0] sm:$0xff] }
0x580e   :  { %v2922_v56 = vmul.f32 %v5430_v51, %v5388_v62  ;;  %v2928_v61 = vmul.f32 %v5432_v24, %v5388_v62  ;;  %v2933_v21 = vmul.f32 %v5440_v50, %v5388_v62  ;;  %v2934_v63 = vmul.f32 %v5442_v40, %v5388_v62  ;;  %v5512_v29 = vld [vmem:[#allocation3 + $0xd8] sm:$0xff] }
0x580f   :  { %v2923_v12 = vmul.f32 %v5450_v58, %v5388_v62  ;;  %v2929_v11 = vmul.f32 %v5452_v47, %v5388_v62  ;;  %v2935_v53 = vmul.f32 %v5460_v20, %v5388_v62  ;;  %v2924_v4 = vmul.f32 %v5462_v38, %v5388_v62 }
0x5810   :  { %v2964_v23 = vsel %vm331_vm2, %v2922_v56, 0.0  ;;  %v2982_v14 = vsel %vm331_vm2, %v2928_v61, 0.0  ;;  %v2997_v10 = vsel %vm331_vm2, %v2933_v21, 0.0  ;;  %v3000_v6 = vsel %vm331_vm2, %v2934_v63, 0.0  ;;  %v5532_v21 = vld [vmem:[#allocation3 + $0xb8] sm:$0xff] }
0x5811   :  { %2956 = vadd.xlane.f32.xlu0 %v2955_v42  ;;  %2959 = vadd.xlane.f32.xlu1 %v2958_v43  ;;  %v2967_v22 = vsel %vm331_vm2, %v2923_v12, 0.0  ;;  %v2985_v16 = vsel %vm331_vm2, %v2929_v11, 0.0  ;;  %v3003_v17 = vsel %vm331_vm2, %v2935_v53, 0.0  ;;  %v2970_v19 = vsel %vm331_vm2, %v2924_v4, 0.0  ;;  %v5510_v43 = vld [vmem:[#allocation3 + $0xa8] sm:$0xff]  ;;  %v5540_v11 = vld [vmem:[#allocation3 + $0xf8] sm:$0xff] }
0x5812   :  { %v2930_v28 = vmul.f32 %v5470_v13, %v5388_v62  ;;  %v2936_v48 = vmul.f32 %v5472_v25, %v5388_v62  ;;  %v2941_v49 = vmul.f32 %v5480_v18, %v5388_v62  ;;  %v2942_v57 = vmul.f32 %v5482_v26, %v5388_v62 }
0x5813   :  { %v2931_v60 = vmul.f32 %v5490_v9, %v5388_v62  ;;  %v2937_v5 = vmul.f32 %v5492_v34, %v5388_v62  ;;  %v2943_v39 = vmul.f32 %v5500_v31, %v5388_v62  ;;  %v2932_v42 = vmul.f32 %v5502_v7, %v5388_v62 }
0x5814   :  { %v2988_v54 = vsel %vm331_vm2, %v2930_v28, 0.0  ;;  %v3006_v30 = vsel %vm331_vm2, %v2936_v48, 0.0  ;;  %v3021_v52 = vsel %vm331_vm2, %v2941_v49, 0.0  ;;  %v3024_v59 = vsel %vm331_vm2, %v2942_v57, 0.0 }
0x5815   :  { %2974 = vadd.xlane.f32.xlu0 %v2973_v44  ;;  %2977 = vadd.xlane.f32.xlu1 %v2976_v45  ;;  %v2991_v27 = vsel %vm331_vm2, %v2931_v60, 0.0  ;;  %v3009_v37 = vsel %vm331_vm2, %v2937_v5, 0.0  ;;  %v3027_v2 = vsel %vm331_vm2, %v2943_v39, 0.0  ;;  %v2994_v44 = vsel %vm331_vm2, %v2932_v42, 0.0 }
0x5816   :  { %v2938_v45 = vmul.f32 %v5510_v43, %v5388_v62  ;;  %v2944_v46 = vmul.f32 %v5512_v29, %v5388_v62  ;;  %v2945_v61 = vmul.f32 %v5520_v35, %v5388_v62  ;;  %v2940_v12 = vmul.f32 %v5532_v21, %v5388_v62 }
0x5817   :  { %v2948_v4 = vmul.f32 %v5540_v11, %v5388_v62  ;;  %v3077_v57 = vlaneseq }
0x5818   :  { %v3030_v56 = vsel %vm331_vm2, %v2944_v46, 0.0  ;;  %v3033_v63 = vsel %vm331_vm2, %v2945_v61, 0.0  ;;  %v3018_v53 = vsel %vm331_vm2, %v2940_v12, 0.0 }
0x5819   :  { %2962 = vadd.xlane.f32.xlu0 %v2961_v55  ;;  %2980 = vadd.xlane.f32.xlu1 %v2979_v32  ;;  %v5522_v55 = vld [vmem:[#allocation3 + $0xb0] sm:$0xff]  ;;  %v3012_v32 = vsel %vm331_vm2, %v2938_v45, 0.0  ;;  %v3078_v60 = vand.u32 127, %v3077_v57  ;;  %v3080_v5 = vshrl.u32 %v3077_v57, 7 }
0x581d   :  { %2965 = vadd.xlane.f32.xlu0 %v2964_v23  ;;  %2983 = vadd.xlane.f32.xlu1 %v2982_v14  ;;  %v2939_v23 = vmul.f32 %v5522_v55, %v5388_v62  ;;  %v5530_v14 = vld [vmem:[#allocation3 + $0xe8] sm:$0xff] }
0x5821   :  { %2998 = vadd.xlane.f32.xlu0 %v2997_v10  ;;  %3001 = vadd.xlane.f32.xlu1 %v3000_v6  ;;  %v3015_v10 = vsel %vm331_vm2, %v2939_v23, 0.0  ;;  %v2946_v6 = vmul.f32 %v5530_v14, %v5388_v62 }
0x5825   :  { %2968 = vadd.xlane.f32.xlu0 %v2967_v22  ;;  %2986 = vadd.xlane.f32.xlu1 %v2985_v16  ;;  %v5542_v22 = vld [vmem:[#allocation3 + $0xf0] sm:$0xff]  ;;  %v3036_v16 = vsel %vm331_vm2, %v2946_v6, 0.0 }
0x5829   :  { %3004 = vadd.xlane.f32.xlu0 %v3003_v17  ;;  %2971 = vadd.xlane.f32.xlu1 %v2970_v19  ;;  %v2947_v17 = vmul.f32 %v5542_v22, %v5388_v62  ;;  %v3042_v19 = vsel %vm331_vm2, %v2948_v4, 0.0  ;;  %v5552_v62 = vsub.s32 %v3078_v60, %v3080_v5 }
0x582b   :  { %v3039_v28 = vsel %vm331_vm2, %v2947_v17, 0.0 }
0x582d   :  { %2989 = vadd.xlane.f32.xlu0 %v2988_v54  ;;  %3007 = vadd.xlane.f32.xlu1 %v3006_v30 }
0x5831   :  { %3022 = vadd.xlane.f32.xlu0 %v3021_v52  ;;  %3025 = vadd.xlane.f32.xlu1 %v3024_v59 }
0x5835   :  { %2992 = vadd.xlane.f32.xlu0 %v2991_v27  ;;  %3010 = vadd.xlane.f32.xlu1 %v3009_v37 }
0x5839   :  { %3028 = vadd.xlane.f32.xlu0 %v3027_v2  ;;  %2995 = vadd.xlane.f32.xlu1 %v2994_v44 }
0x583d   :  { %3013 = vadd.xlane.f32.xlu0 %v3012_v32  ;;  %3031 = vadd.xlane.f32.xlu1 %v3030_v56 }
0x5841   :  { %3034 = vadd.xlane.f32.xlu1 %v3033_v63  ;;  %3016 = vadd.xlane.f32.xlu0 %v3015_v10 }
0x5845   :  { %3037 = vadd.xlane.f32.xlu1 %v3036_v16  ;;  %3019 = vadd.xlane.f32.xlu0 %v3018_v53 }
0x5849   :  { %3043 = vadd.xlane.f32.xlu1 %v3042_v19  ;;  %3040 = vadd.xlane.f32.xlu0 %v3039_v28 }
0x589a   :  { %v2951_v48 = vpop.xlane.xlu1 %2950  ;;  %v2954_v54 = vpop.xlane.xlu0 %2953 }
0x589b   :  { %v3082_v2 = vrot.slane %v2951_v48, %v5552_v62  ;;  %v3086_v44 = vrot.slane %v2954_v54, %v5552_v62 }
0x589d   :  { %v3208_v56 = vsel %vm3207_vm3, %v3086_v44, %v3082_v2 }
0x589e   :  { %v2960_v30 = vpop.xlane.xlu1 %2959  ;;  %v2957_v49 = vpop.xlane.xlu0 %2956 }
0x589f   :  { %v3090_v45 = vrot.slane %v2957_v49, %v5552_v62  ;;  %v3094_v61 = vrot.slane %v2960_v30, %v5552_v62 }
0x58a1   :  { %v3210_v23 = vsel %vm3209_vm4, %v3090_v45, %v3208_v56 }
0x58a2   :  { %v2978_v52 = vpop.xlane.xlu1 %2977  ;;  %v2975_v59 = vpop.xlane.xlu0 %2974  ;;  %v3212_v53 = vsel %vm3211_vm5, %v3094_v61, %v3210_v23 }
0x58a6   :  { %v2981_v27 = vpop.xlane.xlu1 %2980  ;;  %v2963_v37 = vpop.xlane.xlu0 %2962 }
0x58a7   :  { %v3098_v63 = vrot.slane %v2963_v37, %v5552_v62  ;;  %v3118_v37 = vrot.slane %v2978_v52, %v5552_v62  ;;  %v3122_v2 = vrot.slane %v2981_v27, %v5552_v62 }
0x58a9   :  { %v3214_v4 = vsel %vm3213_vm6, %v3098_v63, %v3212_v53 }
0x58aa   :  { %v2984_v39 = vpop.xlane.xlu1 %2983  ;;  %v2966_v42 = vpop.xlane.xlu0 %2965 }
0x58ab   :  { %v3102_v12 = vrot.slane %v2966_v42, %v5552_v62  ;;  %v3114_v42 = vrot.slane %v2975_v59, %v5552_v62  ;;  %v3126_v44 = vrot.slane %v2984_v39, %v5552_v62 }
0x58ad   :  { %v3216_v28 = vsel %vm3215_vm7, %v3102_v12, %v3214_v4  ;;  %v3221_v23 = vsel %vm3207_vm3, %v3118_v37, %v3114_v42 }
0x58ae   :  { %v3002_v46 = vpop.xlane.xlu1 %3001  ;;  %v2999_v32 = vpop.xlane.xlu0 %2998 }
0x58b2   :  { %v2987_v10 = vpop.xlane.xlu1 %2986  ;;  %v2969_v6 = vpop.xlane.xlu0 %2968 }
0x58b3   :  { %v3106_v16 = vrot.slane %v2969_v6, %v5552_v62  ;;  %v3130_v45 = vrot.slane %v2987_v10, %v5552_v62  ;;  %v3222_v6 = vsel %vm3209_vm4, %v3122_v2, %v3221_v23 }
0x58b4   :  { %v3223_v52 = vsel %vm3211_vm5, %v3126_v44, %v3222_v6 }
0x58b5   :  { %v3218_v54 = vsel %vm3217_vm8, %v3106_v16, %v3216_v28  ;;  %v3224_v59 = vsel %vm3213_vm6, %v3130_v45, %v3223_v52 }
0x58b6   :  { %v2972_v17 = vpop.xlane.xlu1 %2971  ;;  %v3005_v19 = vpop.xlane.xlu0 %3004 }
0x58b7   :  { %v3110_v48 = vrot.slane %v2972_v17, %v5552_v62 }
0x58b9   :  { %v3220_v30 = vsel %vm3219_vm9, %v3110_v48, %v3218_v54  ;;  %v3150_v48 = vrot.slane %v3002_v46, %v5552_v62  ;;  %v3146_v54 = vrot.slane %v2999_v32, %v5552_v62 }
0x58ba   :  { %v3008_v49 = vpop.xlane.xlu1 %3007  ;;  %3246 = vxpose.xlu0.b32.start [1/4] (short) (narrow) %v3220_v30, 8  ;;  %v2990_v57 = vpop.xlane.xlu0 %2989  ;;  %v3154_v30 = vrot.slane %v3005_v19, %v5552_v62 }
0x58bb   :  { %v3134_v63 = vrot.slane %v2990_v57, %v5552_v62  ;;  %v3158_v57 = vrot.slane %v3008_v49, %v5552_v62  ;;  %v3228_v44 = vsel %vm3207_vm3, %v3150_v48, %v3146_v54 }
0x58bd   :  { %v3225_v39 = vsel %vm3215_vm7, %v3134_v63, %v3224_v59 }
0x58be   :  { %v3026_v60 = vpop.xlane.xlu1 %3025  ;;  %v3023_v5 = vpop.xlane.xlu0 %3022 }
0x58bf   :  { %v3182_v23 = vrot.slane %v3026_v60, %v5552_v62  ;;  %v3178_v46 = vrot.slane %v3023_v5, %v5552_v62 }
0x58c1   :  { %v3235_v5 = vsel %vm3207_vm3, %v3182_v23, %v3178_v46 }
0x58c2   :  { %v3011_v56 = vpop.xlane.xlu1 %3010  ;;  %v2993_v61 = vpop.xlane.xlu0 %2992 }
0x58c3   :  { %v3138_v12 = vrot.slane %v2993_v61, %v5552_v62  ;;  %v3162_v37 = vrot.slane %v3011_v56, %v5552_v62  ;;  %v3229_v61 = vsel %vm3209_vm4, %v3154_v30, %v3228_v44 }
0x58c4   :  { %v3230_v19 = vsel %vm3211_vm5, %v3158_v57, %v3229_v61 }
0x58c5   :  { %v3226_v53 = vsel %vm3217_vm8, %v3138_v12, %v3225_v39  ;;  %v3231_v56 = vsel %vm3213_vm6, %v3162_v37, %v3230_v19 }
0x58c6   :  { %v2996_v16 = vpop.xlane.xlu1 %2995  ;;  %v3029_v27 = vpop.xlane.xlu0 %3028 }
0x58c7   :  { %v3142_v10 = vrot.slane %v2996_v16, %v5552_v62  ;;  %v3186_v49 = vrot.slane %v3029_v27, %v5552_v62 }
0x58c9   :  { %v3227_v4 = vsel %vm3219_vm9, %v3142_v10, %v3226_v53  ;;  %v3236_v27 = vsel %vm3209_vm4, %v3186_v49, %v3235_v5 }
0x58ca   :  { %v3032_v17 = vpop.xlane.xlu1 %3031  ;;  %3247 = vxpose.xlu0.b32.cont [2/4] (short) (narrow) %v3227_v4, 8  ;;  %v3014_v28 = vpop.xlane.xlu0 %3013 }
0x58cb   :  { %v3166_v45 = vrot.slane %v3014_v28, %v5552_v62  ;;  %v3190_v63 = vrot.slane %v3032_v17, %v5552_v62 }
0x58cd   :  { %v3232_v52 = vsel %vm3215_vm7, %v3166_v45, %v3231_v56  ;;  %v3237_v53 = vsel %vm3211_vm5, %v3190_v63, %v3236_v27 }
0x58ce   :  { %v3035_v42 = vpop.xlane.xlu1 %3034  ;;  %v3017_v2 = vpop.xlane.xlu0 %3016 }
0x58cf   :  { %v3170_v32 = vrot.slane %v3017_v2, %v5552_v62  ;;  %v3194_v59 = vrot.slane %v3035_v42, %v5552_v62 }
0x58d1   :  { %v3233_v39 = vsel %vm3217_vm8, %v3170_v32, %v3232_v52  ;;  %v3238_v28 = vsel %vm3213_vm6, %v3194_v59, %v3237_v53 }
0x58d2   :  { %v3038_v6 = vpop.xlane.xlu1 %3037  ;;  %v3020_v12 = vpop.xlane.xlu0 %3019 }
0x58d3   :  { %v3174_v60 = vrot.slane %v3020_v12, %v5552_v62  ;;  %v3198_v16 = vrot.slane %v3038_v6, %v5552_v62 }
0x58d5   :  { %v3234_v10 = vsel %vm3219_vm9, %v3174_v60, %v3233_v39  ;;  %v3239_v30 = vsel %vm3215_vm7, %v3198_v16, %v3238_v28 }
0x58d6   :  { %v3044_v4 = vpop.xlane.xlu1 %3043  ;;  %3248 = vxpose.xlu0.b32.cont [3/4] (short) (narrow) %v3234_v10, 8  ;;  %v3041_v17 = vpop.xlane.xlu0 %3040 }
0x58d7   :  { %v3206_v48 = vrot.slane %v3044_v4, %v5552_v62  ;;  %v3202_v54 = vrot.slane %v3041_v17, %v5552_v62 }
0x58d9   :  { %v3240_v57 = vsel %vm3217_vm8, %v3202_v54, %v3239_v30 }
0x58da   :  { %v3241_v37 = vsel %vm3219_vm9, %v3206_v48, %v3240_v57 }
0x58db   :  { %3249 = vxpose.xlu0.b32.end [4/4] (short) (narrow) %v3241_v37, 8 }
0x594f   :  { %v3262_v42 = vpop.trf.xlu0 }
0x5950   :  { %v3278_v2 = vsel %vm331_vm2, %v3262_v42, -inf }
0x5951   :  { %3279 = vmax.xlane.f32.xlu1 %v3278_v2 }
0x59de   :  { %v3280_v44 = vpop.xlane.xlu1 %3279 }
0x59df   :  { %v3281_v45 = vsub.f32 %v3262_v42, %v3280_v44 }
0x59e1   :  { %v3282_v61 = vmul.f32 1.442695, %v3281_v45 }
0x59e3   :  { %4500 = vpow2.f32 %v3282_v61 }
0x59ed   :  { %v4501_v23 = vpop.eup %4500 }
0x59ee   :  { %v3284_v46 = vsel %vm331_vm2, %v4501_v23, 0.0 }
0x59ef   :  { %3285 = vadd.xlane.f32.xlu1 %v3284_v46 }
0x5a7c   :  { %v3286_v32 = vpop.xlane.xlu1 %3285 }
0x5a7d   :  { %4502 = vrcp.f32 %v3286_v32 }
0x5a87   :  { %v4503_v19 = vpop.eup %4502 }
0x5a88   :  { %v5616_v49 = vmul.f32 %v4503_v19, %v4501_v23 }
0x5a8a   :  { %v3295_v56 = vmul.f32 %v5616_v49, %v5450_v58  ;;  %v3289_v63 = vmul.f32 %v5616_v49, %v5392_v3  ;;  %v3316_v52 = vmul.f32 %v5616_v49, %v5512_v29  ;;  %v3290_v59 = vmul.f32 %v5616_v49, %v5390_v1 }
0x5a8b   :  { %v3317_v58 = vmul.f32 %v5616_v49, %v5520_v35  ;;  %v3291_v3 = vmul.f32 %v5616_v49, %v5400_v0  ;;  %v3318_v1 = vmul.f32 %v5616_v49, %v5530_v14  ;;  %v3292_v39 = vmul.f32 %v5616_v49, %v5402_v33 }
0x5a8c   :  { %v3339_v6 = vsel %vm331_vm2, %v3295_v56, 0.0  ;;  %v3321_v12 = vsel %vm331_vm2, %v3289_v63, 0.0  ;;  %v3402_v60 = vsel %vm331_vm2, %v3316_v52, 0.0  ;;  %v3324_v5 = vsel %vm331_vm2, %v3290_v59, 0.0 }
0x5a8d   :  { %3340 = vadd.xlane.f32.xlu0 %v3339_v6  ;;  %3322 = vadd.xlane.f32.xlu1 %v3321_v12  ;;  %v3405_v16 = vsel %vm331_vm2, %v3317_v58, 0.0  ;;  %v3327_v29 = vsel %vm331_vm2, %v3291_v3, 0.0  ;;  %v3408_v27 = vsel %vm331_vm2, %v3318_v1, 0.0  ;;  %v3330_v35 = vsel %vm331_vm2, %v3292_v39, 0.0 }
0x5a8e   :  { %v3320_v0 = vmul.f32 %v5616_v49, %v5540_v11  ;;  %v3297_v10 = vmul.f32 %v5616_v49, %v5410_v41  ;;  %v3298_v33 = vmul.f32 %v5616_v49, %v5412_v8  ;;  %v3293_v17 = vmul.f32 %v5616_v49, %v5420_v15 }
0x5a8f   :  { %v3299_v41 = vmul.f32 %v5616_v49, %v5422_v36  ;;  %v3294_v48 = vmul.f32 %v5616_v49, %v5430_v51  ;;  %v3300_v54 = vmul.f32 %v5616_v49, %v5432_v24  ;;  %v3305_v30 = vmul.f32 %v5616_v49, %v5440_v50 }
0x5a90   :  { %v3414_v53 = vsel %vm331_vm2, %v3320_v0, 0.0  ;;  %v3345_v14 = vsel %vm331_vm2, %v3297_v10, 0.0  ;;  %v3348_v4 = vsel %vm331_vm2, %v3298_v33, 0.0  ;;  %v3333_v11 = vsel %vm331_vm2, %v3293_v17, 0.0 }
0x5a91   :  { %3403 = vadd.xlane.f32.xlu0 %v3402_v60  ;;  %3325 = vadd.xlane.f32.xlu1 %v3324_v5  ;;  %v3351_v28 = vsel %vm331_vm2, %v3299_v41, 0.0  ;;  %v3336_v8 = vsel %vm331_vm2, %v3294_v48, 0.0  ;;  %v3354_v15 = vsel %vm331_vm2, %v3300_v54, 0.0  ;;  %v3369_v36 = vsel %vm331_vm2, %v3305_v30, 0.0  ;;  %v3643_v60 = vld [vmem:[%s5797_s4 + $0x10] sm:$0xff] }
0x5a92   :  { %v3306_v57 = vmul.f32 %v5616_v49, %v5442_v40  ;;  %v3301_v37 = vmul.f32 %v5616_v49, %v5452_v47  ;;  %v3307_v42 = vmul.f32 %v5616_v49, %v5460_v20  ;;  %v3296_v2 = vmul.f32 %v5616_v49, %v5462_v38 }
0x5a93   :  { %v3302_v44 = vmul.f32 %v5616_v49, %v5470_v13  ;;  %v3308_v45 = vmul.f32 %v5616_v49, %v5472_v25  ;;  %v3313_v61 = vmul.f32 %v5616_v49, %v5480_v18  ;;  %v3314_v23 = vmul.f32 %v5616_v49, %v5482_v26 }
0x5a94   :  { %v3372_v51 = vsel %vm331_vm2, %v3306_v57, 0.0  ;;  %v3357_v24 = vsel %vm331_vm2, %v3301_v37, 0.0  ;;  %v3375_v50 = vsel %vm331_vm2, %v3307_v42, 0.0  ;;  %v3342_v40 = vsel %vm331_vm2, %v3296_v2, 0.0 }
0x5a95   :  { %3406 = vadd.xlane.f32.xlu0 %v3405_v16  ;;  %3328 = vadd.xlane.f32.xlu1 %v3327_v29  ;;  %v3360_v47 = vsel %vm331_vm2, %v3302_v44, 0.0  ;;  %v3378_v20 = vsel %vm331_vm2, %v3308_v45, 0.0  ;;  %v3393_v38 = vsel %vm331_vm2, %v3313_v61, 0.0  ;;  %v3396_v13 = vsel %vm331_vm2, %v3314_v23, 0.0 }
0x5a96   :  { %v3303_v46 = vmul.f32 %v5616_v49, %v5490_v9  ;;  %v3309_v32 = vmul.f32 %v5616_v49, %v5492_v34  ;;  %v3315_v19 = vmul.f32 %v5616_v49, %v5500_v31  ;;  %v3304_v56 = vmul.f32 %v5616_v49, %v5502_v7 }
0x5a97   :  { %v3310_v63 = vmul.f32 %v5616_v49, %v5510_v43  ;;  %v3311_v6 = vmul.f32 %v5616_v49, %v5522_v55  ;;  %v3312_v12 = vmul.f32 %v5616_v49, %v5532_v21  ;;  %v3319_v52 = vmul.f32 %v5616_v49, %v5542_v22  ;;  %v3641_v55 = vld [vmem:[%s5797_s4] sm:$0xff]  ;;  %v3642_v21 = vld [vmem:[%s5797_s4 + $0x8] sm:$0xff]  ;;  %v3644_v22 = vld [vmem:[%s5797_s4 + $0x18] sm:$0xff] }
0x5a98   :  { %v3363_v25 = vsel %vm331_vm2, %v3303_v46, 0.0  ;;  %v3381_v18 = vsel %vm331_vm2, %v3309_v32, 0.0  ;;  %v3399_v26 = vsel %vm331_vm2, %v3315_v19, 0.0  ;;  %v3366_v9 = vsel %vm331_vm2, %v3304_v56, 0.0 }
0x5a99   :  { %3409 = vadd.xlane.f32.xlu0 %v3408_v27  ;;  %3331 = vadd.xlane.f32.xlu1 %v3330_v35  ;;  %v3384_v34 = vsel %vm331_vm2, %v3310_v63, 0.0  ;;  %v3387_v31 = vsel %vm331_vm2, %v3311_v6, 0.0  ;;  %v3390_v7 = vsel %vm331_vm2, %v3312_v12, 0.0  ;;  %v3411_v43 = vsel %vm331_vm2, %v3319_v52, 0.0 }
0x5a9a   :  { %v4511_v59 = vmov 0.0|0.0   ;;  %v4233_v5 = vpack.c.bf16 %v3642_v21, %v3641_v55  ;;  %v4236_v49 = vpack.c.bf16 %v3644_v22, %v3643_v60 }
0x5a9b   :  { %4232 = vmatprep.subr.bf16.mxu0 %v4511_v59 }
0x5a9c   :  { %4234 = vmatpush3.bf16.msra.mxu0 %v4233_v5 }
0x5a9d   :  { %3415 = vadd.xlane.f32.xlu0 %v3414_v53  ;;  %3346 = vadd.xlane.f32.xlu1 %v3345_v14 }
0x5a9e   :  { %4235 = vmatprep.subr.bf16.mxu0 %v4511_v59 }
0x5aa0   :  { %4237 = vmatpush3.bf16.msra.mxu0 %v4236_v49 }
0x5aa1   :  { %3349 = vadd.xlane.f32.xlu1 %v3348_v4 }
0x5aa5   :  { %3334 = vadd.xlane.f32.xlu1 %v3333_v11 }
0x5aa9   :  { %3352 = vadd.xlane.f32.xlu1 %v3351_v28 }
0x5aad   :  { %3337 = vadd.xlane.f32.xlu1 %v3336_v8 }
0x5ab1   :  { %3355 = vadd.xlane.f32.xlu1 %v3354_v15 }
0x5ab5   :  { %3370 = vadd.xlane.f32.xlu1 %v3369_v36 }
0x5ab9   :  { %3373 = vadd.xlane.f32.xlu1 %v3372_v51 }
0x5abd   :  { %3358 = vadd.xlane.f32.xlu1 %v3357_v24 }
0x5ac1   :  { %3376 = vadd.xlane.f32.xlu1 %v3375_v50 }
0x5ac5   :  { %3343 = vadd.xlane.f32.xlu1 %v3342_v40 }
0x5ac9   :  { %3361 = vadd.xlane.f32.xlu1 %v3360_v47 }
0x5acd   :  { %3379 = vadd.xlane.f32.xlu1 %v3378_v20 }
0x5ad1   :  { %3394 = vadd.xlane.f32.xlu1 %v3393_v38 }
0x5ad5   :  { %3397 = vadd.xlane.f32.xlu1 %v3396_v13 }
0x5ad9   :  { %3364 = vadd.xlane.f32.xlu1 %v3363_v25 }
0x5add   :  { %3382 = vadd.xlane.f32.xlu1 %v3381_v18 }
0x5ae1   :  { %3400 = vadd.xlane.f32.xlu1 %v3399_v26 }
0x5ae5   :  { %3367 = vadd.xlane.f32.xlu1 %v3366_v9 }
0x5ae9   :  { %3385 = vadd.xlane.f32.xlu1 %v3384_v34 }
0x5aed   :  { %3388 = vadd.xlane.f32.xlu1 %v3387_v31 }
0x5af1   :  { %3391 = vadd.xlane.f32.xlu1 %v3390_v7 }
0x5af5   :  { %3412 = vadd.xlane.f32.xlu1 %v3411_v43 }
0x5b1a   :  { %v3323_v58 = vpop.xlane.xlu1 %3322  ;;  %v3341_v30 = vpop.xlane.xlu0 %3340 }
0x5b1b   :  { %v3452_v11 = vrot.slane %v3323_v58, %v5552_v62  ;;  %v3476_v37 = vrot.slane %v3341_v30, %v5552_v62 }
0x5b1e   :  { %v3326_v3 = vpop.xlane.xlu1 %3325  ;;  %v3404_v18 = vpop.xlane.xlu0 %3403 }
0x5b1f   :  { %v3456_v33 = vrot.slane %v3326_v3, %v5552_v62 }
0x5b21   :  { %v3577_v48 = vsel %vm3207_vm3, %v3456_v33, %v3452_v11 }
0x5b22   :  { %v3329_v16 = vpop.xlane.xlu1 %3328  ;;  %v3407_v52 = vpop.xlane.xlu0 %3406 }
0x5b23   :  { %v3460_v4 = vrot.slane %v3329_v16, %v5552_v62  ;;  %v3564_v11 = vrot.slane %v3407_v52, %v5552_v62 }
0x5b25   :  { %v3578_v54 = vsel %vm3209_vm4, %v3460_v4, %v3577_v48 }
0x5b26   :  { %v3332_v29 = vpop.xlane.xlu1 %3331 }
0x5b27   :  { %v3464_v41 = vrot.slane %v3332_v29, %v5552_v62 }
0x5b29   :  { %v3579_v36 = vsel %vm3211_vm5, %v3464_v41, %v3578_v54 }
0x5b2a   :  { %v3347_v1 = vpop.xlane.xlu1 %3346 }
0x5b2b   :  { %v3484_v13 = vrot.slane %v3347_v1, %v5552_v62  ;;  %v3410_v1 = vpop.xlane.xlu0 %3409 }
0x5b2c   :  { %v3568_v30 = vrot.slane %v3410_v1, %v5552_v62 }
0x5b2e   :  { %v3350_v39 = vpop.xlane.xlu1 %3349 }
0x5b2f   :  { %v3488_v38 = vrot.slane %v3350_v39, %v5552_v62 }
0x5b31   :  { %v3584_v19 = vsel %vm3207_vm3, %v3488_v38, %v3484_v13 }
0x5b32   :  { %v3335_v27 = vpop.xlane.xlu1 %3334 }
0x5b33   :  { %v3468_v28 = vrot.slane %v3335_v27, %v5552_v62 }
0x5b35   :  { %v3580_v57 = vsel %vm3213_vm6, %v3468_v28, %v3579_v36 }
0x5b36   :  { %v3353_v35 = vpop.xlane.xlu1 %3352 }
0x5b37   :  { %v3492_v23 = vrot.slane %v3353_v35, %v5552_v62 }
0x5b39   :  { %v3585_v56 = vsel %vm3209_vm4, %v3492_v23, %v3584_v19 }
0x5b3a   :  { %v3338_v0 = vpop.xlane.xlu1 %3337 }
0x5b3b   :  { %v3472_v8 = vrot.slane %v3338_v0, %v5552_v62  ;;  %v3560_v0 = vrot.slane %v3404_v18, %v5552_v62 }
0x5b3d   :  { %v3581_v51 = vsel %vm3215_vm7, %v3472_v8, %v3580_v57  ;;  %v3416_v8 = vpop.xlane.xlu0 %3415 }
0x5b3e   :  { %v3356_v10 = vpop.xlane.xlu1 %3355  ;;  %v3582_v50 = vsel %vm3217_vm8, %v3476_v37, %v3581_v51  ;;  %v3576_v51 = vrot.slane %v3416_v8, %v5552_v62 }
0x5b3f   :  { %v3496_v46 = vrot.slane %v3356_v10, %v5552_v62 }
0x5b41   :  { %v3586_v63 = vsel %vm3211_vm5, %v3496_v46, %v3585_v56 }
0x5b42   :  { %v3371_v53 = vpop.xlane.xlu1 %3370 }
0x5b43   :  { %v3516_v49 = vrot.slane %v3371_v53, %v5552_v62 }
0x5b46   :  { %v3374_v14 = vpop.xlane.xlu1 %3373 }
0x5b47   :  { %v3520_v21 = vrot.slane %v3374_v14, %v5552_v62 }
0x5b49   :  { %v3591_v39 = vsel %vm3207_vm3, %v3520_v21, %v3516_v49 }
0x5b4a   :  { %v3359_v17 = vpop.xlane.xlu1 %3358 }
0x5b4b   :  { %v3500_v25 = vrot.slane %v3359_v17, %v5552_v62 }
0x5b4d   :  { %v3587_v34 = vsel %vm3213_vm6, %v3500_v25, %v3586_v63 }
0x5b4e   :  { %v3377_v15 = vpop.xlane.xlu1 %3376 }
0x5b4f   :  { %v3524_v5 = vrot.slane %v3377_v15, %v5552_v62 }
0x5b51   :  { %v3592_v10 = vsel %vm3209_vm4, %v3524_v5, %v3591_v39 }
0x5b52   :  { %v3344_v24 = vpop.xlane.xlu1 %3343 }
0x5b53   :  { %v3480_v42 = vrot.slane %v3344_v24, %v5552_v62 }
0x5b55   :  { %v3583_v2 = vsel %vm3219_vm9, %v3480_v42, %v3582_v50 }
0x5b56   :  { %3609 = vxpose.xlu1.b32.start [1/4] (short) (narrow) %v3583_v2, 8  ;;  %v3362_v40 = vpop.xlane.xlu1 %3361  ;;  %v3811_v2 = vld [vmem:[%s5798_s5] ss:$0 sm:$0xff] }
0x5b57   :  { %v3504_v26 = vrot.slane %v3362_v40, %v5552_v62 }
0x5b59   :  { %v3588_v31 = vsel %vm3215_vm7, %v3504_v26, %v3587_v34 }
0x5b5a   :  { %v3380_v44 = vpop.xlane.xlu1 %3379 }
0x5b5b   :  { %v3528_v58 = vrot.slane %v3380_v44, %v5552_v62 }
0x5b5d   :  { %v3593_v14 = vsel %vm3211_vm5, %v3528_v58, %v3592_v10 }
0x5b5e   :  { %v3395_v47 = vpop.xlane.xlu1 %3394 }
0x5b5f   :  { %v3548_v22 = vrot.slane %v3395_v47, %v5552_v62 }
0x5b62   :  { %v3398_v45 = vpop.xlane.xlu1 %3397 }
0x5b63   :  { %v3552_v59 = vrot.slane %v3398_v45, %v5552_v62 }
0x5b65   :  { %v3598_v3 = vsel %vm3207_vm3, %v3552_v59, %v3548_v22 }
0x5b66   :  { %v3365_v20 = vpop.xlane.xlu1 %3364 }
0x5b67   :  { %v3508_v9 = vrot.slane %v3365_v20, %v5552_v62 }
0x5b69   :  { %v3589_v7 = vsel %vm3217_vm8, %v3508_v9, %v3588_v31 }
0x5b6a   :  { %v3383_v61 = vpop.xlane.xlu1 %3382 }
0x5b6b   :  { %v3532_v16 = vrot.slane %v3383_v61, %v5552_v62 }
0x5b6d   :  { %v3594_v33 = vsel %vm3213_vm6, %v3532_v16, %v3593_v14 }
0x5b6e   :  { %v3401_v32 = vpop.xlane.xlu1 %3400 }
0x5b6f   :  { %v3556_v60 = vrot.slane %v3401_v32, %v5552_v62 }
0x5b71   :  { %v3599_v27 = vsel %vm3209_vm4, %v3556_v60, %v3598_v3 }
0x5b72   :  { %v3368_v6 = vpop.xlane.xlu1 %3367  ;;  %v3600_v4 = vsel %vm3211_vm5, %v3560_v0, %v3599_v27 }
0x5b73   :  { %v3512_v12 = vrot.slane %v3368_v6, %v5552_v62  ;;  %v3601_v15 = vsel %vm3213_vm6, %v3564_v11, %v3600_v4 }
0x5b74   :  { %v3602_v37 = vsel %vm3215_vm7, %v3568_v30, %v3601_v15 }
0x5b75   :  { %v3590_v43 = vsel %vm3219_vm9, %v3512_v12, %v3589_v7 }
0x5b76   :  { %3610 = vxpose.xlu1.b32.cont [2/4] (short) (narrow) %v3590_v43, 8  ;;  %v3386_v55 = vpop.xlane.xlu1 %3385 }
0x5b77   :  { %v3536_v35 = vrot.slane %v3386_v55, %v5552_v62 }
0x5b79   :  { %v3595_v41 = vsel %vm3215_vm7, %v3536_v35, %v3594_v33 }
0x5b7a   :  { %v3389_v29 = vpop.xlane.xlu1 %3388 }
0x5b7b   :  { %v3540_v53 = vrot.slane %v3389_v29, %v5552_v62 }
0x5b7d   :  { %v3596_v48 = vsel %vm3217_vm8, %v3540_v53, %v3595_v41 }
0x5b7e   :  { %v3392_v17 = vpop.xlane.xlu1 %3391 }
0x5b7f   :  { %v3544_v28 = vrot.slane %v3392_v17, %v5552_v62 }
0x5b81   :  { %v3597_v54 = vsel %vm3219_vm9, %v3544_v28, %v3596_v48 }
0x5b82   :  { %3611 = vxpose.xlu1.b32.cont [3/4] (short) (narrow) %v3597_v54, 8  ;;  %v3413_v36 = vpop.xlane.xlu1 %3412 }
0x5b83   :  { %v3572_v57 = vrot.slane %v3413_v36, %v5552_v62 }
0x5b85   :  { %v3603_v24 = vsel %vm3217_vm8, %v3572_v57, %v3602_v37 }
0x5b86   :  { %v3604_v42 = vsel %vm3219_vm9, %v3576_v51, %v3603_v24 }
0x5b87   :  { %3612 = vxpose.xlu1.b32.end [4/4] (short) (narrow) %v3604_v42, 8 }
0x5bfb   :  { %v3625_v50 = vpop.trf.xlu1 }
0x5bfc   :  { %4230 = vmatmul.mubr.msk.f32.vlgmr.msra.gmra.mrb[80].mxu0 %vm331_vm2, %v3625_v50 }
0x5ccf   :  { %v3721_v40 = vpop.f32.mrb[80].mxu0 }
0x5cd0   :  { %v3722_v44 = vadd.f32 %v3811_v2, %v3721_v40  ;;  %v4231_v47 = vpop.f32.mrb[81].mxu0 }
0x5cd2   :  { %3726 = vst.msk [vmem:[%s5799_s6] sm:$0xff] %vm3725_vm10, %v3722_v44 }

</bundles_post_ra>
